<compile_context>
chip_gen: v7x
topology: tpu7x:2x2x1
jax: 0.10.0
libtpu: 0.0.40
codegen_flags: <defaults>
</compile_context>

<pallas_src>
import numpy as np
import jax
import jax.numpy as jnp
from jax.experimental import pallas as pl
from jax.experimental.pallas import tpu as pltpu


_NEG_SLOPE = 0.2
_LANE_TILE_TARGET = 2048            # lane tile over the flattened spatial dim
_VMEM_LIMIT = 48 * 1024 * 1024      # safe on v7x (64 MiB/TC); plenty on v5e/v6e


def _round_up(x, m):
    return ((x + m - 1) // m) * m


def _cdiv(a, b):
    return -(-a // b)


def _pick_tile(length, unit, target=_LANE_TILE_TARGET):
    """Lane tile: multiple of `unit`, <= target, and >= 2 grid steps whenever
    the problem is big enough (so the 'parallel' axis spans both v7x TCs)."""
    total = _cdiv(max(length, 1), unit)
    t = max(1, target // unit)
    if total >= 2:
        t = min(t, _cdiv(total, 2))
    return min(t, total) * unit


def _leaky(x):
    return jnp.where(x > 0, x, _NEG_SLOPE * x)


# ----------------------------------------------------------------------------
# Padded-flat activation layout: (C, flat_pad) bf16, where flat index
# p = n*hp*wp + i*wp + j holds the activation of pixel (i-1, j-1) for
# i in [1,H], j in [1,W]; the 1-px border ring and the tail are zero.
# This IS the zero-padded input of the next 3x3 conv -> convs chain in HBM
# with no re-pad / slice between them.
# ----------------------------------------------------------------------------
def _geom(n, h, w):
    hp, wp = h + 2, w + 2
    flat_len = n * hp * wp
    halo_w = _round_up(wp + 1, 128)          # halo >= max |tap offset|
    tn = _pick_tile(flat_len, halo_w)
    nb = _cdiv(flat_len, tn)
    return dict(n=n, h=h, w=w, hp=hp, wp=wp, flat_len=flat_len,
                halo_w=halo_w, tn=tn, nb=nb, flat_pad=nb * tn)


def to_flat(x, g):
    c = x.shape[0]
    xp = jnp.pad(x.astype(jnp.bfloat16), ((0, 0), (0, 0), (1, 1), (1, 1)))
    xf = xp.reshape(c, g["flat_len"])
    return jnp.pad(xf, ((0, 0), (0, g["flat_pad"] - g["flat_len"])))


def from_flat(yf, g):
    c = yf.shape[0]
    y = yf[:, :g["flat_len"]].reshape(c, g["n"], g["hp"], g["wp"])
    return y[:, :, 1:1 + g["h"], 1:1 + g["w"]]


def interior_mask(g):
    """Compile-time constant: 1.0 on interior pixels, 0.0 on ring/tail."""
    m = np.zeros((g["n"], g["hp"], g["wp"]), np.float32)
    m[:, 1:1 + g["h"], 1:1 + g["w"]] = 1.0
    out = np.zeros((1, g["flat_pad"]), np.float32)
    out[0, :g["flat_len"]] = m.reshape(-1)
    return jnp.asarray(out)


# ----------------------------------------------------------------------------
# Pallas kernel 1: fused 3x3 conv (pad=1, no bias) + LeakyReLU(0.2), merged-K.
# For every output lane p the 9 taps read input lanes p + (di-1)*wp + (dj-1);
# those shifted slabs (for one or two input tensors) are stacked along
# sublanes into a (9*sum(Cin), tn) operand and contracted in ONE MXU GEMM.
# Halo blocks (backward + forward, clamped at the ends) provide the +-(wp+1)
# reach; clamped (wrong) halo data only ever feeds masked (ring/tail) outputs.
# ----------------------------------------------------------------------------
def _make_conv3x3_kernel(n_in, offs, tn, halo_w):
    def kernel(*refs):
        w_ref, mask_ref = refs[0], refs[1]
        o_ref = refs[-1]
        slabs = []
        for idx in range(n_in):
            prev = refs[2 + 3 * idx][...]
            main = refs[3 + 3 * idx][...]
            nxt = refs[4 + 3 * idx][...]
            xcat = jnp.concatenate([prev, main, nxt], axis=-1)   # (cin, tn+2*halo)
            for off in offs:                                     # 9 static taps
                a = halo_w + off
                slabs.append(xcat[:, a:a + tn])
        xstk = jnp.concatenate(slabs, axis=0)                    # (9*sum(cin), tn)
        acc = jnp.dot(w_ref[...], xstk, preferred_element_type=jnp.float32)
        acc = _leaky(acc)
        acc = jnp.where(mask_ref[...] > 0, acc, 0.0)             # zero ring + tail
        o_ref[...] = acc.astype(o_ref.dtype)
    return kernel


def conv3x3_lrelu_flat(xflats, w_packed, g, mask):
    """xflats: list of padded-flat inputs (cin_i, flat_pad) bf16.
    w_packed: (cout, 9*sum(cin_i)) bf16, column (group_off + t*cin_i + c) =
    torch_weight[o, group_c_base + c, di, dj] with t = 3*di + dj.
    Returns the conv+LeakyReLU result in the same padded-flat layout."""
    cins = [xf.shape[0] for xf in xflats]
    cout, ktot = w_packed.shape
    assert ktot == 9 * sum(cins)
    tn, halo_w, nb = g["tn"], g["halo_w"], g["nb"]
    for xf in xflats:
        assert xf.shape[1] == g["flat_pad"]
    r = tn // halo_w
    last = nb * r - 1
    offs = tuple((di - 1) * g["wp"] + (dj - 1)
                 for di in range(3) for dj in range(3))

    prev_map = lambda j: (0, jnp.maximum(j * r - 1, 0))
    main_map = lambda j: (0, j)
    next_map = lambda j: (0, jnp.minimum((j + 1) * r, last))

    in_specs = [pl.BlockSpec((cout, ktot), lambda j: (0, 0)),    # resident weight
                pl.BlockSpec((1, tn), lambda j: (0, j))]         # interior mask
    args = [w_packed, mask]
    for xf, cin in zip(xflats, cins):
        in_specs += [pl.BlockSpec((cin, halo_w), prev_map),      # backward halo
                     pl.BlockSpec((cin, tn), main_map),          # current tile
                     pl.BlockSpec((cin, halo_w), next_map)]      # forward halo
        args += [xf, xf, xf]

    return pl.pallas_call(
        _make_conv3x3_kernel(len(xflats), offs, tn, halo_w),
        out_shape=jax.ShapeDtypeStruct((cout, g["flat_pad"]), jnp.bfloat16),
        grid_spec=pltpu.PrefetchScalarGridSpec(
            num_scalar_prefetch=0,
            grid=(nb,),
            in_specs=in_specs,
            out_specs=pl.BlockSpec((cout, tn), lambda j: (0, j)),
        ),
        compiler_params=pltpu.CompilerParams(
            dimension_semantics=("parallel",),
            vmem_limit_bytes=_VMEM_LIMIT,
        ),
    )(*args)


def conv_block_flat(xflats, w1, w2, g):
    """Two fused conv3x3+LeakyReLU layers, chained entirely in the padded-flat
    layout (Dropout2d p=0.0 is the identity)."""
    mask = interior_mask(g)
    y1 = conv3x3_lrelu_flat(xflats, w1, g, mask)
    return conv3x3_lrelu_flat([y1], w2, g, mask)


# ----------------------------------------------------------------------------
# Pallas kernel 2: generic fused GEMM  out = act(A @ B [+ bias])
#   A (M, K) is a small resident weight, B (K, L) has the flattened spatial
#   dim in lanes.  Used for the 2x2 transpose conv and the final 1x1 conv.
# ----------------------------------------------------------------------------
def _make_mm_kernel(leaky, has_bias):
    if has_bias:
        def kernel(a_ref, b_ref, bias_ref, o_ref):
            acc = jnp.dot(a_ref[...], b_ref[...], preferred_element_type=jnp.float32)
            acc = acc + bias_ref[...]                  # lane-dense bias tile
            if leaky:
                acc = _leaky(acc)
            o_ref[...] = acc.astype(o_ref.dtype)
    else:
        def kernel(a_ref, b_ref, o_ref):
            acc = jnp.dot(a_ref[...], b_ref[...], preferred_element_type=jnp.float32)
            if leaky:
                acc = _leaky(acc)
            o_ref[...] = acc.astype(o_ref.dtype)
    return kernel


def mm_lanes(a, b, bias=None, leaky=False, out_dtype=jnp.bfloat16):
    m, k = a.shape
    k2, length = b.shape
    assert k == k2
    tn = _pick_tile(length, 128)
    len_pad = _round_up(length, tn)
    nb = len_pad // tn
    if len_pad != length:
        b = jnp.pad(b, ((0, 0), (0, len_pad - length)))

    in_specs = [pl.BlockSpec((m, k), lambda j: (0, 0)),
                pl.BlockSpec((k, tn), lambda j: (0, j))]
    args = [a.astype(jnp.bfloat16), b.astype(jnp.bfloat16)]
    if bias is not None:
        bias_tile = jnp.broadcast_to(bias.astype(jnp.float32).reshape(m, 1), (m, tn))
        in_specs.append(pl.BlockSpec((m, tn), lambda j: (0, 0)))
        args.append(bias_tile)

    out = pl.pallas_call(
        _make_mm_kernel(leaky, bias is not None),
        out_shape=jax.ShapeDtypeStruct((m, len_pad), out_dtype),
        grid_spec=pltpu.PrefetchScalarGridSpec(
            num_scalar_prefetch=0,
            grid=(nb,),
            in_specs=in_specs,
            out_specs=pl.BlockSpec((m, tn), lambda j: (0, j)),
        ),
        compiler_params=pltpu.CompilerParams(
            dimension_semantics=("parallel",),
            vmem_limit_bytes=_VMEM_LIMIT,
        ),
    )(*args)
    return out[:, :length] if len_pad != length else out


# ----------------------------------------------------------------------------
# U-Net building blocks (CNHW layout)
# ----------------------------------------------------------------------------
def transpose_conv2x2_lrelu(x, wmat):
    """x: (Cin, N, H, W); wmat: (4*Cout, Cin) with row (a*2+b)*Cout + o ==
    torch_weight[c, o, a, b].  ConvTranspose2d(k=2, s=2, bias=False) +
    LeakyReLU(0.2) (LeakyReLU commutes with the disjoint 2x2 scatter)."""
    cin, n, h, w = x.shape
    cout = wmat.shape[0] // 4
    y4 = mm_lanes(wmat, x.reshape(cin, n * h * w), leaky=True)
    y4 = y4.reshape(2, 2, cout, n, h, w)
    # TODO(synk): the 2x2 interleave stays a plain-JAX strided layout pass.
    y = jnp.transpose(y4, (2, 3, 4, 0, 5, 1))
    return y.reshape(cout, n, 2 * h, 2 * w)


def conv1x1_bias(x, wf, bf):
    """Conv2d(k=1, s=1) with bias, no activation."""
    cin, n, h, w = x.shape
    y = mm_lanes(wf, x.reshape(cin, n * h * w), bias=bf, leaky=False,
                 out_dtype=jnp.float32)
    return y.reshape(-1, n, h, w)


def avg_pool2x2(x):
    """F.avg_pool2d(k=2, s=2): trivially mem-bound -> plain VPU reshape-mean."""
    # TODO(synk): kept as a plain-JAX reshape-mean (no matmul-like compute).
    c, n, h, w = x.shape
    ho, wo = h // 2, w // 2
    xt = x[:, :, :2 * ho, :2 * wo].reshape(c, n, ho, 2, wo, 2).astype(jnp.float32)
    return xt.mean(axis=(3, 5)).astype(x.dtype)


# ----------------------------------------------------------------------------
# Parameters (packed merged-K weights) and forward pass
# ----------------------------------------------------------------------------
def _pack_conv_w(w, splits=None):
    """w: (cout, cin_total, 3, 3) torch layout.  splits: list of input-channel
    group sizes (default one group) matching the kernel-input order; per group
    the packed column index is t*cin + c with t = 3*di + dj."""
    cout, cin_total = w.shape[0], w.shape[1]
    if splits is None:
        splits = [cin_total]
    cols, off = [], 0
    for cin in splits:
        wg = w[:, off:off + cin]
        off += cin
        cols.append(jnp.transpose(wg, (0, 2, 3, 1)).reshape(cout, 9 * cin))
    return jnp.concatenate(cols, axis=1).astype(jnp.bfloat16)


def init_unet_params(key, in_chans, out_chans, chans, num_pool_layers):
    keys = iter(jax.random.split(key, 128))

    def conv_w(cin, cout, splits=None):
        w = jax.random.normal(next(keys), (cout, cin, 3, 3), jnp.float32) / np.sqrt(9 * cin)
        return _pack_conv_w(w, splits)

    def tconv_w(cin, cout):
        w = jax.random.normal(next(keys), (4 * cout, cin), jnp.float32) / np.sqrt(4 * cin)
        return w.astype(jnp.bfloat16)

    down = [(conv_w(in_chans, chans), conv_w(chans, chans))]
    ch = chans
    for _ in range(num_pool_layers - 1):
        down.append((conv_w(ch, ch * 2), conv_w(ch * 2, ch * 2)))
        ch *= 2
    bottleneck = (conv_w(ch, ch * 2), conv_w(ch * 2, ch * 2))
    up_t, up_c = [], []
    for _ in range(num_pool_layers - 1):
        up_t.append(tconv_w(ch * 2, ch))
        up_c.append((conv_w(2 * ch, ch, splits=[ch, ch]), conv_w(ch, ch)))
        ch //= 2
    up_t.append(tconv_w(ch * 2, ch))
    up_c.append((conv_w(2 * ch, ch, splits=[ch, ch]), conv_w(ch, ch)))
    final_w = (jax.random.normal(next(keys), (out_chans, ch), jnp.float32)
               / np.sqrt(ch)).astype(jnp.bfloat16)
    final_b = jax.random.normal(next(keys), (out_chans,), jnp.float32) * 0.01
    return {"down": down, "bottleneck": bottleneck, "up_t": up_t, "up_c": up_c,
            "final_w": final_w, "final_b": final_b}


def unet_forward_cnhw(params, x):
    stack = []
    out = x.astype(jnp.bfloat16)                        # (C, N, H, W)
    # down-sampling path
    for (w1, w2) in params["down"]:
        g = _geom(out.shape[1], out.shape[2], out.shape[3])
        yf = conv_block_flat([to_flat(out, g)], w1, w2, g)
        stack.append((yf, g))                           # skip kept in flat layout
        out = avg_pool2x2(from_flat(yf, g))
    # bottleneck
    g = _geom(out.shape[1], out.shape[2], out.shape[3])
    w1, w2 = params["bottleneck"]
    out = from_flat(conv_block_flat([to_flat(out, g)], w1, w2, g), g)
    # up-sampling path
    for wt, (w1, w2) in zip(params["up_t"], params["up_c"]):
        skip_f, gs = stack.pop()
        up = transpose_conv2x2_lrelu(out, wt)
        pad_h = gs["h"] - up.shape[2]
        pad_w = gs["w"] - up.shape[3]
        assert 0 <= pad_h <= 1 and 0 <= pad_w <= 1      # same semantics as reference
        if pad_h or pad_w:                              # reflect pad right/bottom
            up = jnp.pad(up, ((0, 0), (0, 0), (0, pad_h), (0, pad_w)), mode="reflect")
        # concat-free: split weight consumes the upsampled path and the skip
        # (already in padded-flat layout) as two kernel inputs.
        yf = conv_block_flat([to_flat(up, gs), skip_f], w1, w2, gs)
        out = from_flat(yf, gs)
    # final 1x1 conv with bias (last element of the reference's up_conv Sequential)
    return conv1x1_bias(out, params["final_w"], params["final_b"])


def unet_forward_nchw(params, x_nchw):
    x = jnp.transpose(x_nchw, (1, 0, 2, 3))             # NCHW -> CNHW
    y = unet_forward_cnhw(params, x)
    return jnp.transpose(y, (1, 0, 2, 3))               # CNHW -> NCHW


# ----------------------------------------------------------------------------
if __name__ == "__main__":
    key = jax.random.PRNGKey(0)
    kx, kp = jax.random.split(key)

    # Unet(in_chans=4, out_chans=4, chans=8, num_pool_layers=2, drop_prob=0.0)
    in_chans, out_chans, chans, num_pool_layers = 4, 4, 8, 2
    x = jax.random.normal(kx, (2, in_chans, 16, 16), jnp.float32)   # NCHW input

    params = init_unet_params(kp, in_chans, out_chans, chans, num_pool_layers)

    fwd = jax.jit(unet_forward_nchw)
    y = jax.block_until_ready(fwd(params, x))

    assert y.shape == (2, out_chans, 16, 16), y.shape
    assert bool(jnp.all(jnp.isfinite(y)))
    print("KERNEL_OK")
</pallas_src>

<mosaic_0001>
module attributes {stable_mosaic.version = 11 : i64} {
  func.func @kernel(%arg0: i32, %arg1: memref<8x36xbf16, #tpu.memory_space<vmem>>, %arg2: memref<1x384xf32, #tpu.memory_space<vmem>>, %arg3: memref<4x128xbf16, #tpu.memory_space<vmem>>, %arg4: memref<4x384xbf16, #tpu.memory_space<vmem>>, %arg5: memref<4x128xbf16, #tpu.memory_space<vmem>>, %arg6: memref<8x384xbf16, #tpu.memory_space<vmem>>) attributes {dimension_semantics = [#tpu.dimension_semantics<parallel>], iteration_bounds = array<i64: 2>, scalar_prefetch = 0 : i64, scratch_operands = 0 : i64, tpu.core_type = #tpu.core_type<tc>, window_params = [{pipeline_mode = #tpu.pipeline_mode<synchronous>, transform_indices = @transform_0, window_bounds = array<i64: 8, 36>}, {transform_indices = @transform_1, window_bounds = array<i64: 1, 384>}, {transform_indices = @transform_2, window_bounds = array<i64: 4, 128>}, {transform_indices = @transform_3, window_bounds = array<i64: 4, 384>}, {transform_indices = @transform_4, window_bounds = array<i64: 4, 128>}, {transform_indices = @transform_5, window_bounds = array<i64: 8, 384>}]} {
    %c0 = arith.constant 0 : index
    %c0_0 = arith.constant 0 : index
    %0 = vector.load %arg3[%c0, %c0_0] : memref<4x128xbf16, #tpu.memory_space<vmem>>, vector<4x128xbf16>
    %c0_1 = arith.constant 0 : index
    %c0_2 = arith.constant 0 : index
    %1 = vector.load %arg4[%c0_1, %c0_2] : memref<4x384xbf16, #tpu.memory_space<vmem>>, vector<4x384xbf16>
    %c0_3 = arith.constant 0 : index
    %c0_4 = arith.constant 0 : index
    %2 = vector.load %arg5[%c0_3, %c0_4] : memref<4x128xbf16, #tpu.memory_space<vmem>>, vector<4x128xbf16>
    %3 = tpu.concatenate %0, %1, %2 in 1 : vector<4x128xbf16>, vector<4x384xbf16>, vector<4x128xbf16> -> vector<4x640xbf16>
    %4 = vector.extract_strided_slice %3 {offsets = [0, 109], sizes = [4, 384], strides = [1, 1]} : vector<4x640xbf16> to vector<4x384xbf16>
    %5 = vector.extract_strided_slice %3 {offsets = [0, 110], sizes = [4, 384], strides = [1, 1]} : vector<4x640xbf16> to vector<4x384xbf16>
    %6 = vector.extract_strided_slice %3 {offsets = [0, 111], sizes = [4, 384], strides = [1, 1]} : vector<4x640xbf16> to vector<4x384xbf16>
    %7 = vector.extract_strided_slice %3 {offsets = [0, 127], sizes = [4, 384], strides = [1, 1]} : vector<4x640xbf16> to vector<4x384xbf16>
    %8 = vector.extract_strided_slice %3 {offsets = [0, 128], sizes = [4, 384], strides = [1, 1]} : vector<4x640xbf16> to vector<4x384xbf16>
    %9 = vector.extract_strided_slice %3 {offsets = [0, 129], sizes = [4, 384], strides = [1, 1]} : vector<4x640xbf16> to vector<4x384xbf16>
    %10 = vector.extract_strided_slice %3 {offsets = [0, 145], sizes = [4, 384], strides = [1, 1]} : vector<4x640xbf16> to vector<4x384xbf16>
    %11 = vector.extract_strided_slice %3 {offsets = [0, 146], sizes = [4, 384], strides = [1, 1]} : vector<4x640xbf16> to vector<4x384xbf16>
    %12 = vector.extract_strided_slice %3 {offsets = [0, 147], sizes = [4, 384], strides = [1, 1]} : vector<4x640xbf16> to vector<4x384xbf16>
    %13 = tpu.concatenate %4, %5, %6, %7, %8, %9, %10, %11, %12 in 0 : vector<4x384xbf16>, vector<4x384xbf16>, vector<4x384xbf16>, vector<4x384xbf16>, vector<4x384xbf16>, vector<4x384xbf16>, vector<4x384xbf16>, vector<4x384xbf16>, vector<4x384xbf16> -> vector<36x384xbf16>
    %c0_5 = arith.constant 0 : index
    %c0_6 = arith.constant 0 : index
    %14 = vector.load %arg1[%c0_5, %c0_6] : memref<8x36xbf16, #tpu.memory_space<vmem>>, vector<8x36xbf16>
    %cst = arith.constant dense<0.000000e+00> : vector<8x384xf32>
    %15 = tpu.matmul %14, %13, %cst {dimension_numbers = #tpu.dot_dimension_numbers<[1], [0], [0], [1], [0, 0, 1, 1], [], []>} : vector<8x36xbf16>, vector<36x384xbf16>, vector<8x384xf32> -> vector<8x384xf32>
    %cst_7 = arith.constant 0.000000e+00 : f32
    %16 = vector.broadcast %cst_7 : f32 to vector<8x384xf32>
    %17 = arith.cmpf ogt, %15, %16 : vector<8x384xf32>
    %cst_8 = arith.constant 2.000000e-01 : f32
    %18 = vector.broadcast %cst_8 : f32 to vector<8x384xf32>
    %19 = arith.mulf %18, %15 : vector<8x384xf32>
    %20 = arith.select %17, %15, %19 : vector<8x384xi1>, vector<8x384xf32>
    %c0_9 = arith.constant 0 : index
    %c0_10 = arith.constant 0 : index
    %21 = vector.load %arg2[%c0_9, %c0_10] : memref<1x384xf32, #tpu.memory_space<vmem>>, vector<1x384xf32>
    %cst_11 = arith.constant 0.000000e+00 : f32
    %22 = vector.broadcast %cst_11 : f32 to vector<1x384xf32>
    %23 = arith.cmpf ogt, %21, %22 : vector<1x384xf32>
    %cst_12 = arith.constant 0.000000e+00 : f32
    %24 = vector.shape_cast %23 : vector<1x384xi1> to vector<1x384xi1>
    %25 = vector.broadcast %24 : vector<1x384xi1> to vector<8x384xi1>
    %26 = vector.broadcast %cst_12 : f32 to vector<8x384xf32>
    %27 = arith.select %25, %20, %26 : vector<8x384xi1>, vector<8x384xf32>
    %28 = arith.truncf %27 : vector<8x384xf32> to vector<8x384xbf16>
    %c0_13 = arith.constant 0 : index
    %c0_14 = arith.constant 0 : index
    %29 = vector.load %arg6[%c0_13, %c0_14] : memref<8x384xbf16, #tpu.memory_space<vmem>>, vector<8x384xbf16>
    tpu.vector_store %arg6[%c0_13, %c0_14], %28 {strides = array<i32>} : memref<8x384xbf16, #tpu.memory_space<vmem>>, vector<8x384xbf16>,
    return
  }
  func.func @transform_0(%arg0: i32) -> (i32, i32) {
    %c0_i32 = arith.constant 0 : i32
    %c0_i32_0 = arith.constant 0 : i32
    %c0_i32_1 = arith.constant 0 : i32
    return %c0_i32, %c0_i32_0 : i32, i32
  }
  func.func @transform_1(%arg0: i32) -> (i32, i32) {
    %c0_i32 = arith.constant 0 : i32
    %c0_i32_0 = arith.constant 0 : i32
    return %c0_i32, %arg0 : i32, i32
  }
  func.func @transform_2(%arg0: i32) -> (i32, i32) {
    %c3_i32 = arith.constant 3 : i32
    %0 = arith.muli %arg0, %c3_i32 : i32
    %c1_i32 = arith.constant 1 : i32
    %1 = arith.subi %0, %c1_i32 : i32
    %c0_i32 = arith.constant 0 : i32
    %2 = arith.maxsi %1, %c0_i32 : i32
    %c0_i32_0 = arith.constant 0 : i32
    %c0_i32_1 = arith.constant 0 : i32
    return %c0_i32_0, %2 : i32, i32
  }
  func.func @transform_3(%arg0: i32) -> (i32, i32) {
    %c0_i32 = arith.constant 0 : i32
    %c0_i32_0 = arith.constant 0 : i32
    return %c0_i32, %arg0 : i32, i32
  }
  func.func @transform_4(%arg0: i32) -> (i32, i32) {
    %c1_i32 = arith.constant 1 : i32
    %0 = arith.addi %arg0, %c1_i32 : i32
    %c3_i32 = arith.constant 3 : i32
    %1 = arith.muli %0, %c3_i32 : i32
    %c5_i32 = arith.constant 5 : i32
    %2 = arith.minsi %1, %c5_i32 : i32
    %c0_i32 = arith.constant 0 : i32
    %c0_i32_0 = arith.constant 0 : i32
    return %c0_i32, %2 : i32, i32
  }
  func.func @transform_5(%arg0: i32) -> (i32, i32) {
    %c0_i32 = arith.constant 0 : i32
    %c0_i32_0 = arith.constant 0 : i32
    return %c0_i32, %arg0 : i32, i32
  }
}

module attributes {stable_mosaic.version = 11 : i64} {
  func.func @kernel(%arg0: i32, %arg1: memref<8x72xbf16, #tpu.memory_space<vmem>>, %arg2: memref<1x384xf32, #tpu.memory_space<vmem>>, %arg3: memref<8x128xbf16, #tpu.memory_space<vmem>>, %arg4: memref<8x384xbf16, #tpu.memory_space<vmem>>, %arg5: memref<8x128xbf16, #tpu.memory_space<vmem>>, %arg6: memref<8x384xbf16, #tpu.memory_space<vmem>>) attributes {dimension_semantics = [#tpu.dimension_semantics<parallel>], iteration_bounds = array<i64: 2>, scalar_prefetch = 0 : i64, scratch_operands = 0 : i64, tpu.core_type = #tpu.core_type<tc>, window_params = [{pipeline_mode = #tpu.pipeline_mode<synchronous>, transform_indices = @transform_0, window_bounds = array<i64: 8, 72>}, {transform_indices = @transform_1, window_bounds = array<i64: 1, 384>}, {transform_indices = @transform_2, window_bounds = array<i64: 8, 128>}, {transform_indices = @transform_3, window_bounds = array<i64: 8, 384>}, {transform_indices = @transform_4, window_bounds = array<i64: 8, 128>}, {transform_indices = @transform_5, window_bounds = array<i64: 8, 384>}]} {
    %c0 = arith.constant 0 : index
    %c0_0 = arith.constant 0 : index
    %0 = vector.load %arg3[%c0, %c0_0] : memref<8x128xbf16, #tpu.memory_space<vmem>>, vector<8x128xbf16>
    %c0_1 = arith.constant 0 : index
    %c0_2 = arith.constant 0 : index
    %1 = vector.load %arg4[%c0_1, %c0_2] : memref<8x384xbf16, #tpu.memory_space<vmem>>, vector<8x384xbf16>
    %c0_3 = arith.constant 0 : index
    %c0_4 = arith.constant 0 : index
    %2 = vector.load %arg5[%c0_3, %c0_4] : memref<8x128xbf16, #tpu.memory_space<vmem>>, vector<8x128xbf16>
    %3 = tpu.concatenate %0, %1, %2 in 1 : vector<8x128xbf16>, vector<8x384xbf16>, vector<8x128xbf16> -> vector<8x640xbf16>
    %4 = vector.extract_strided_slice %3 {offsets = [0, 109], sizes = [8, 384], strides = [1, 1]} : vector<8x640xbf16> to vector<8x384xbf16>
    %5 = vector.extract_strided_slice %3 {offsets = [0, 110], sizes = [8, 384], strides = [1, 1]} : vector<8x640xbf16> to vector<8x384xbf16>
    %6 = vector.extract_strided_slice %3 {offsets = [0, 111], sizes = [8, 384], strides = [1, 1]} : vector<8x640xbf16> to vector<8x384xbf16>
    %7 = vector.extract_strided_slice %3 {offsets = [0, 127], sizes = [8, 384], strides = [1, 1]} : vector<8x640xbf16> to vector<8x384xbf16>
    %8 = vector.extract_strided_slice %3 {offsets = [0, 128], sizes = [8, 384], strides = [1, 1]} : vector<8x640xbf16> to vector<8x384xbf16>
    %9 = vector.extract_strided_slice %3 {offsets = [0, 129], sizes = [8, 384], strides = [1, 1]} : vector<8x640xbf16> to vector<8x384xbf16>
    %10 = vector.extract_strided_slice %3 {offsets = [0, 145], sizes = [8, 384], strides = [1, 1]} : vector<8x640xbf16> to vector<8x384xbf16>
    %11 = vector.extract_strided_slice %3 {offsets = [0, 146], sizes = [8, 384], strides = [1, 1]} : vector<8x640xbf16> to vector<8x384xbf16>
    %12 = vector.extract_strided_slice %3 {offsets = [0, 147], sizes = [8, 384], strides = [1, 1]} : vector<8x640xbf16> to vector<8x384xbf16>
    %13 = tpu.concatenate %4, %5, %6, %7, %8, %9, %10, %11, %12 in 0 : vector<8x384xbf16>, vector<8x384xbf16>, vector<8x384xbf16>, vector<8x384xbf16>, vector<8x384xbf16>, vector<8x384xbf16>, vector<8x384xbf16>, vector<8x384xbf16>, vector<8x384xbf16> -> vector<72x384xbf16>
    %c0_5 = arith.constant 0 : index
    %c0_6 = arith.constant 0 : index
    %14 = vector.load %arg1[%c0_5, %c0_6] : memref<8x72xbf16, #tpu.memory_space<vmem>>, vector<8x72xbf16>
    %cst = arith.constant dense<0.000000e+00> : vector<8x384xf32>
    %15 = tpu.matmul %14, %13, %cst {dimension_numbers = #tpu.dot_dimension_numbers<[1], [0], [0], [1], [0, 0, 1, 1], [], []>} : vector<8x72xbf16>, vector<72x384xbf16>, vector<8x384xf32> -> vector<8x384xf32>
    %cst_7 = arith.constant 0.000000e+00 : f32
    %16 = vector.broadcast %cst_7 : f32 to vector<8x384xf32>
    %17 = arith.cmpf ogt, %15, %16 : vector<8x384xf32>
    %cst_8 = arith.constant 2.000000e-01 : f32
    %18 = vector.broadcast %cst_8 : f32 to vector<8x384xf32>
    %19 = arith.mulf %18, %15 : vector<8x384xf32>
    %20 = arith.select %17, %15, %19 : vector<8x384xi1>, vector<8x384xf32>
    %c0_9 = arith.constant 0 : index
    %c0_10 = arith.constant 0 : index
    %21 = vector.load %arg2[%c0_9, %c0_10] : memref<1x384xf32, #tpu.memory_space<vmem>>, vector<1x384xf32>
    %cst_11 = arith.constant 0.000000e+00 : f32
    %22 = vector.broadcast %cst_11 : f32 to vector<1x384xf32>
    %23 = arith.cmpf ogt, %21, %22 : vector<1x384xf32>
    %cst_12 = arith.constant 0.000000e+00 : f32
    %24 = vector.shape_cast %23 : vector<1x384xi1> to vector<1x384xi1>
    %25 = vector.broadcast %24 : vector<1x384xi1> to vector<8x384xi1>
    %26 = vector.broadcast %cst_12 : f32 to vector<8x384xf32>
    %27 = arith.select %25, %20, %26 : vector<8x384xi1>, vector<8x384xf32>
    %28 = arith.truncf %27 : vector<8x384xf32> to vector<8x384xbf16>
    %c0_13 = arith.constant 0 : index
    %c0_14 = arith.constant 0 : index
    %29 = vector.load %arg6[%c0_13, %c0_14] : memref<8x384xbf16, #tpu.memory_space<vmem>>, vector<8x384xbf16>
    tpu.vector_store %arg6[%c0_13, %c0_14], %28 {strides = array<i32>} : memref<8x384xbf16, #tpu.memory_space<vmem>>, vector<8x384xbf16>,
    return
  }
  func.func @transform_0(%arg0: i32) -> (i32, i32) {
    %c0_i32 = arith.constant 0 : i32
    %c0_i32_0 = arith.constant 0 : i32
    %c0_i32_1 = arith.constant 0 : i32
    return %c0_i32, %c0_i32_0 : i32, i32
  }
  func.func @transform_1(%arg0: i32) -> (i32, i32) {
    %c0_i32 = arith.constant 0 : i32
    %c0_i32_0 = arith.constant 0 : i32
    return %c0_i32, %arg0 : i32, i32
  }
  func.func @transform_2(%arg0: i32) -> (i32, i32) {
    %c3_i32 = arith.constant 3 : i32
    %0 = arith.muli %arg0, %c3_i32 : i32
    %c1_i32 = arith.constant 1 : i32
    %1 = arith.subi %0, %c1_i32 : i32
    %c0_i32 = arith.constant 0 : i32
    %2 = arith.maxsi %1, %c0_i32 : i32
    %c0_i32_0 = arith.constant 0 : i32
    %c0_i32_1 = arith.constant 0 : i32
    return %c0_i32_0, %2 : i32, i32
  }
  func.func @transform_3(%arg0: i32) -> (i32, i32) {
    %c0_i32 = arith.constant 0 : i32
    %c0_i32_0 = arith.constant 0 : i32
    return %c0_i32, %arg0 : i32, i32
  }
  func.func @transform_4(%arg0: i32) -> (i32, i32) {
    %c1_i32 = arith.constant 1 : i32
    %0 = arith.addi %arg0, %c1_i32 : i32
    %c3_i32 = arith.constant 3 : i32
    %1 = arith.muli %0, %c3_i32 : i32
    %c5_i32 = arith.constant 5 : i32
    %2 = arith.minsi %1, %c5_i32 : i32
    %c0_i32 = arith.constant 0 : i32
    %c0_i32_0 = arith.constant 0 : i32
    return %c0_i32, %2 : i32, i32
  }
  func.func @transform_5(%arg0: i32) -> (i32, i32) {
    %c0_i32 = arith.constant 0 : i32
    %c0_i32_0 = arith.constant 0 : i32
    return %c0_i32, %arg0 : i32, i32
  }
}

module attributes {stable_mosaic.version = 11 : i64} {
  func.func @kernel(%arg0: i32, %arg1: memref<16x72xbf16, #tpu.memory_space<vmem>>, %arg2: memref<1x128xf32, #tpu.memory_space<vmem>>, %arg3: memref<8x128xbf16, #tpu.memory_space<vmem>>, %arg4: memref<8x128xbf16, #tpu.memory_space<vmem>>, %arg5: memref<8x128xbf16, #tpu.memory_space<vmem>>, %arg6: memref<16x128xbf16, #tpu.memory_space<vmem>>) attributes {dimension_semantics = [#tpu.dimension_semantics<parallel>], iteration_bounds = array<i64: 2>, scalar_prefetch = 0 : i64, scratch_operands = 0 : i64, tpu.core_type = #tpu.core_type<tc>, window_params = [{pipeline_mode = #tpu.pipeline_mode<synchronous>, transform_indices = @transform_0, window_bounds = array<i64: 16, 72>}, {transform_indices = @transform_1, window_bounds = array<i64: 1, 128>}, {transform_indices = @transform_2, window_bounds = array<i64: 8, 128>}, {transform_indices = @transform_3, window_bounds = array<i64: 8, 128>}, {transform_indices = @transform_4, window_bounds = array<i64: 8, 128>}, {transform_indices = @transform_5, window_bounds = array<i64: 16, 128>}]} {
    %c0 = arith.constant 0 : index
    %c0_0 = arith.constant 0 : index
    %0 = vector.load %arg3[%c0, %c0_0] : memref<8x128xbf16, #tpu.memory_space<vmem>>, vector<8x128xbf16>
    %c0_1 = arith.constant 0 : index
    %c0_2 = arith.constant 0 : index
    %1 = vector.load %arg4[%c0_1, %c0_2] : memref<8x128xbf16, #tpu.memory_space<vmem>>, vector<8x128xbf16>
    %c0_3 = arith.constant 0 : index
    %c0_4 = arith.constant 0 : index
    %2 = vector.load %arg5[%c0_3, %c0_4] : memref<8x128xbf16, #tpu.memory_space<vmem>>, vector<8x128xbf16>
    %3 = tpu.concatenate %0, %1, %2 in 1 : vector<8x128xbf16>, vector<8x128xbf16>, vector<8x128xbf16> -> vector<8x384xbf16>
    %4 = vector.extract_strided_slice %3 {offsets = [0, 117], sizes = [8, 128], strides = [1, 1]} : vector<8x384xbf16> to vector<8x128xbf16>
    %5 = vector.extract_strided_slice %3 {offsets = [0, 118], sizes = [8, 128], strides = [1, 1]} : vector<8x384xbf16> to vector<8x128xbf16>
    %6 = vector.extract_strided_slice %3 {offsets = [0, 119], sizes = [8, 128], strides = [1, 1]} : vector<8x384xbf16> to vector<8x128xbf16>
    %7 = vector.extract_strided_slice %3 {offsets = [0, 127], sizes = [8, 128], strides = [1, 1]} : vector<8x384xbf16> to vector<8x128xbf16>
    %8 = vector.extract_strided_slice %3 {offsets = [0, 128], sizes = [8, 128], strides = [1, 1]} : vector<8x384xbf16> to vector<8x128xbf16>
    %9 = vector.extract_strided_slice %3 {offsets = [0, 129], sizes = [8, 128], strides = [1, 1]} : vector<8x384xbf16> to vector<8x128xbf16>
    %10 = vector.extract_strided_slice %3 {offsets = [0, 137], sizes = [8, 128], strides = [1, 1]} : vector<8x384xbf16> to vector<8x128xbf16>
    %11 = vector.extract_strided_slice %3 {offsets = [0, 138], sizes = [8, 128], strides = [1, 1]} : vector<8x384xbf16> to vector<8x128xbf16>
    %12 = vector.extract_strided_slice %3 {offsets = [0, 139], sizes = [8, 128], strides = [1, 1]} : vector<8x384xbf16> to vector<8x128xbf16>
    %13 = tpu.concatenate %4, %5, %6, %7, %8, %9, %10, %11, %12 in 0 : vector<8x128xbf16>, vector<8x128xbf16>, vector<8x128xbf16>, vector<8x128xbf16>, vector<8x128xbf16>, vector<8x128xbf16>, vector<8x128xbf16>, vector<8x128xbf16>, vector<8x128xbf16> -> vector<72x128xbf16>
    %c0_5 = arith.constant 0 : index
    %c0_6 = arith.constant 0 : index
    %14 = vector.load %arg1[%c0_5, %c0_6] : memref<16x72xbf16, #tpu.memory_space<vmem>>, vector<16x72xbf16>
    %cst = arith.constant dense<0.000000e+00> : vector<16x128xf32>
    %15 = tpu.matmul %14, %13, %cst {dimension_numbers = #tpu.dot_dimension_numbers<[1], [0], [0], [1], [0, 0, 1, 1], [], []>} : vector<16x72xbf16>, vector<72x128xbf16>, vector<16x128xf32> -> vector<16x128xf32>
    %cst_7 = arith.constant 0.000000e+00 : f32
    %16 = vector.broadcast %cst_7 : f32 to vector<16x128xf32>
    %17 = arith.cmpf ogt, %15, %16 : vector<16x128xf32>
    %cst_8 = arith.constant 2.000000e-01 : f32
    %18 = vector.broadcast %cst_8 : f32 to vector<16x128xf32>
    %19 = arith.mulf %18, %15 : vector<16x128xf32>
    %20 = arith.select %17, %15, %19 : vector<16x128xi1>, vector<16x128xf32>
    %c0_9 = arith.constant 0 : index
    %c0_10 = arith.constant 0 : index
    %21 = vector.load %arg2[%c0_9, %c0_10] : memref<1x128xf32, #tpu.memory_space<vmem>>, vector<1x128xf32>
    %cst_11 = arith.constant 0.000000e+00 : f32
    %22 = vector.broadcast %cst_11 : f32 to vector<1x128xf32>
    %23 = arith.cmpf ogt, %21, %22 : vector<1x128xf32>
    %cst_12 = arith.constant 0.000000e+00 : f32
    %24 = vector.shape_cast %23 : vector<1x128xi1> to vector<1x128xi1>
    %25 = vector.broadcast %24 : vector<1x128xi1> to vector<16x128xi1>
    %26 = vector.broadcast %cst_12 : f32 to vector<16x128xf32>
    %27 = arith.select %25, %20, %26 : vector<16x128xi1>, vector<16x128xf32>
    %28 = arith.truncf %27 : vector<16x128xf32> to vector<16x128xbf16>
    %c0_13 = arith.constant 0 : index
    %c0_14 = arith.constant 0 : index
    %29 = vector.load %arg6[%c0_13, %c0_14] : memref<16x128xbf16, #tpu.memory_space<vmem>>, vector<16x128xbf16>
    tpu.vector_store %arg6[%c0_13, %c0_14], %28 {strides = array<i32>} : memref<16x128xbf16, #tpu.memory_space<vmem>>, vector<16x128xbf16>,
    return
  }
  func.func @transform_0(%arg0: i32) -> (i32, i32) {
    %c0_i32 = arith.constant 0 : i32
    %c0_i32_0 = arith.constant 0 : i32
    %c0_i32_1 = arith.constant 0 : i32
    return %c0_i32, %c0_i32_0 : i32, i32
  }
  func.func @transform_1(%arg0: i32) -> (i32, i32) {
    %c0_i32 = arith.constant 0 : i32
    %c0_i32_0 = arith.constant 0 : i32
    return %c0_i32, %arg0 : i32, i32
  }
  func.func @transform_2(%arg0: i32) -> (i32, i32) {
    %c1_i32 = arith.constant 1 : i32
    %0 = arith.muli %arg0, %c1_i32 : i32
    %c1_i32_0 = arith.constant 1 : i32
    %1 = arith.subi %0, %c1_i32_0 : i32
    %c0_i32 = arith.constant 0 : i32
    %2 = arith.maxsi %1, %c0_i32 : i32
    %c0_i32_1 = arith.constant 0 : i32
    %c0_i32_2 = arith.constant 0 : i32
    return %c0_i32_1, %2 : i32, i32
  }
  func.func @transform_3(%arg0: i32) -> (i32, i32) {
    %c0_i32 = arith.constant 0 : i32
    %c0_i32_0 = arith.constant 0 : i32
    return %c0_i32, %arg0 : i32, i32
  }
  func.func @transform_4(%arg0: i32) -> (i32, i32) {
    %c1_i32 = arith.constant 1 : i32
    %0 = arith.addi %arg0, %c1_i32 : i32
    %c1_i32_0 = arith.constant 1 : i32
    %1 = arith.muli %0, %c1_i32_0 : i32
    %c1_i32_1 = arith.constant 1 : i32
    %2 = arith.minsi %1, %c1_i32_1 : i32
    %c0_i32 = arith.constant 0 : i32
    %c0_i32_2 = arith.constant 0 : i32
    return %c0_i32, %2 : i32, i32
  }
  func.func @transform_5(%arg0: i32) -> (i32, i32) {
    %c0_i32 = arith.constant 0 : i32
    %c0_i32_0 = arith.constant 0 : i32
    return %c0_i32, %arg0 : i32, i32
  }
}

module attributes {stable_mosaic.version = 11 : i64} {
  func.func @kernel(%arg0: i32, %arg1: memref<16x144xbf16, #tpu.memory_space<vmem>>, %arg2: memref<1x128xf32, #tpu.memory_space<vmem>>, %arg3: memref<16x128xbf16, #tpu.memory_space<vmem>>, %arg4: memref<16x128xbf16, #tpu.memory_space<vmem>>, %arg5: memref<16x128xbf16, #tpu.memory_space<vmem>>, %arg6: memref<16x128xbf16, #tpu.memory_space<vmem>>) attributes {dimension_semantics = [#tpu.dimension_semantics<parallel>], iteration_bounds = array<i64: 2>, scalar_prefetch = 0 : i64, scratch_operands = 0 : i64, tpu.core_type = #tpu.core_type<tc>, window_params = [{pipeline_mode = #tpu.pipeline_mode<synchronous>, transform_indices = @transform_0, window_bounds = array<i64: 16, 144>}, {transform_indices = @transform_1, window_bounds = array<i64: 1, 128>}, {transform_indices = @transform_2, window_bounds = array<i64: 16, 128>}, {transform_indices = @transform_3, window_bounds = array<i64: 16, 128>}, {transform_indices = @transform_4, window_bounds = array<i64: 16, 128>}, {transform_indices = @transform_5, window_bounds = array<i64: 16, 128>}]} {
    %c0 = arith.constant 0 : index
    %c0_0 = arith.constant 0 : index
    %0 = vector.load %arg3[%c0, %c0_0] : memref<16x128xbf16, #tpu.memory_space<vmem>>, vector<16x128xbf16>
    %c0_1 = arith.constant 0 : index
    %c0_2 = arith.constant 0 : index
    %1 = vector.load %arg4[%c0_1, %c0_2] : memref<16x128xbf16, #tpu.memory_space<vmem>>, vector<16x128xbf16>
    %c0_3 = arith.constant 0 : index
    %c0_4 = arith.constant 0 : index
    %2 = vector.load %arg5[%c0_3, %c0_4] : memref<16x128xbf16, #tpu.memory_space<vmem>>, vector<16x128xbf16>
    %3 = tpu.concatenate %0, %1, %2 in 1 : vector<16x128xbf16>, vector<16x128xbf16>, vector<16x128xbf16> -> vector<16x384xbf16>
    %4 = vector.extract_strided_slice %3 {offsets = [0, 117], sizes = [16, 128], strides = [1, 1]} : vector<16x384xbf16> to vector<16x128xbf16>
    %5 = vector.extract_strided_slice %3 {offsets = [0, 118], sizes = [16, 128], strides = [1, 1]} : vector<16x384xbf16> to vector<16x128xbf16>
    %6 = vector.extract_strided_slice %3 {offsets = [0, 119], sizes = [16, 128], strides = [1, 1]} : vector<16x384xbf16> to vector<16x128xbf16>
    %7 = vector.extract_strided_slice %3 {offsets = [0, 127], sizes = [16, 128], strides = [1, 1]} : vector<16x384xbf16> to vector<16x128xbf16>
    %8 = vector.extract_strided_slice %3 {offsets = [0, 128], sizes = [16, 128], strides = [1, 1]} : vector<16x384xbf16> to vector<16x128xbf16>
    %9 = vector.extract_strided_slice %3 {offsets = [0, 129], sizes = [16, 128], strides = [1, 1]} : vector<16x384xbf16> to vector<16x128xbf16>
    %10 = vector.extract_strided_slice %3 {offsets = [0, 137], sizes = [16, 128], strides = [1, 1]} : vector<16x384xbf16> to vector<16x128xbf16>
    %11 = vector.extract_strided_slice %3 {offsets = [0, 138], sizes = [16, 128], strides = [1, 1]} : vector<16x384xbf16> to vector<16x128xbf16>
    %12 = vector.extract_strided_slice %3 {offsets = [0, 139], sizes = [16, 128], strides = [1, 1]} : vector<16x384xbf16> to vector<16x128xbf16>
    %13 = tpu.concatenate %4, %5, %6, %7, %8, %9, %10, %11, %12 in 0 : vector<16x128xbf16>, vector<16x128xbf16>, vector<16x128xbf16>, vector<16x128xbf16>, vector<16x128xbf16>, vector<16x128xbf16>, vector<16x128xbf16>, vector<16x128xbf16>, vector<16x128xbf16> -> vector<144x128xbf16>
    %c0_5 = arith.constant 0 : index
    %c0_6 = arith.constant 0 : index
    %14 = vector.load %arg1[%c0_5, %c0_6] : memref<16x144xbf16, #tpu.memory_space<vmem>>, vector<16x144xbf16>
    %cst = arith.constant dense<0.000000e+00> : vector<16x128xf32>
    %15 = tpu.matmul %14, %13, %cst {dimension_numbers = #tpu.dot_dimension_numbers<[1], [0], [0], [1], [0, 0, 1, 1], [], []>} : vector<16x144xbf16>, vector<144x128xbf16>, vector<16x128xf32> -> vector<16x128xf32>
    %cst_7 = arith.constant 0.000000e+00 : f32
    %16 = vector.broadcast %cst_7 : f32 to vector<16x128xf32>
    %17 = arith.cmpf ogt, %15, %16 : vector<16x128xf32>
    %cst_8 = arith.constant 2.000000e-01 : f32
    %18 = vector.broadcast %cst_8 : f32 to vector<16x128xf32>
    %19 = arith.mulf %18, %15 : vector<16x128xf32>
    %20 = arith.select %17, %15, %19 : vector<16x128xi1>, vector<16x128xf32>
    %c0_9 = arith.constant 0 : index
    %c0_10 = arith.constant 0 : index
    %21 = vector.load %arg2[%c0_9, %c0_10] : memref<1x128xf32, #tpu.memory_space<vmem>>, vector<1x128xf32>
    %cst_11 = arith.constant 0.000000e+00 : f32
    %22 = vector.broadcast %cst_11 : f32 to vector<1x128xf32>
    %23 = arith.cmpf ogt, %21, %22 : vector<1x128xf32>
    %cst_12 = arith.constant 0.000000e+00 : f32
    %24 = vector.shape_cast %23 : vector<1x128xi1> to vector<1x128xi1>
    %25 = vector.broadcast %24 : vector<1x128xi1> to vector<16x128xi1>
    %26 = vector.broadcast %cst_12 : f32 to vector<16x128xf32>
    %27 = arith.select %25, %20, %26 : vector<16x128xi1>, vector<16x128xf32>
    %28 = arith.truncf %27 : vector<16x128xf32> to vector<16x128xbf16>
    %c0_13 = arith.constant 0 : index
    %c0_14 = arith.constant 0 : index
    %29 = vector.load %arg6[%c0_13, %c0_14] : memref<16x128xbf16, #tpu.memory_space<vmem>>, vector<16x128xbf16>
    tpu.vector_store %arg6[%c0_13, %c0_14], %28 {strides = array<i32>} : memref<16x128xbf16, #tpu.memory_space<vmem>>, vector<16x128xbf16>,
    return
  }
  func.func @transform_0(%arg0: i32) -> (i32, i32) {
    %c0_i32 = arith.constant 0 : i32
    %c0_i32_0 = arith.constant 0 : i32
    %c0_i32_1 = arith.constant 0 : i32
    return %c0_i32, %c0_i32_0 : i32, i32
  }
  func.func @transform_1(%arg0: i32) -> (i32, i32) {
    %c0_i32 = arith.constant 0 : i32
    %c0_i32_0 = arith.constant 0 : i32
    return %c0_i32, %arg0 : i32, i32
  }
  func.func @transform_2(%arg0: i32) -> (i32, i32) {
    %c1_i32 = arith.constant 1 : i32
    %0 = arith.muli %arg0, %c1_i32 : i32
    %c1_i32_0 = arith.constant 1 : i32
    %1 = arith.subi %0, %c1_i32_0 : i32
    %c0_i32 = arith.constant 0 : i32
    %2 = arith.maxsi %1, %c0_i32 : i32
    %c0_i32_1 = arith.constant 0 : i32
    %c0_i32_2 = arith.constant 0 : i32
    return %c0_i32_1, %2 : i32, i32
  }
  func.func @transform_3(%arg0: i32) -> (i32, i32) {
    %c0_i32 = arith.constant 0 : i32
    %c0_i32_0 = arith.constant 0 : i32
    return %c0_i32, %arg0 : i32, i32
  }
  func.func @transform_4(%arg0: i32) -> (i32, i32) {
    %c1_i32 = arith.constant 1 : i32
    %0 = arith.addi %arg0, %c1_i32 : i32
    %c1_i32_0 = arith.constant 1 : i32
    %1 = arith.muli %0, %c1_i32_0 : i32
    %c1_i32_1 = arith.constant 1 : i32
    %2 = arith.minsi %1, %c1_i32_1 : i32
    %c0_i32 = arith.constant 0 : i32
    %c0_i32_2 = arith.constant 0 : i32
    return %c0_i32, %2 : i32, i32
  }
  func.func @transform_5(%arg0: i32) -> (i32, i32) {
    %c0_i32 = arith.constant 0 : i32
    %c0_i32_0 = arith.constant 0 : i32
    return %c0_i32, %arg0 : i32, i32
  }
}

module attributes {stable_mosaic.version = 11 : i64} {
  func.func @kernel(%arg0: i32, %arg1: memref<32x144xbf16, #tpu.memory_space<vmem>>, %arg2: memref<1x128xf32, #tpu.memory_space<vmem>>, %arg3: memref<16x128xbf16, #tpu.memory_space<vmem>>, %arg4: memref<16x128xbf16, #tpu.memory_space<vmem>>, %arg5: memref<16x128xbf16, #tpu.memory_space<vmem>>, %arg6: memref<32x128xbf16, #tpu.memory_space<vmem>>) attributes {dimension_semantics = [#tpu.dimension_semantics<parallel>], iteration_bounds = array<i64: 1>, scalar_prefetch = 0 : i64, scratch_operands = 0 : i64, tpu.core_type = #tpu.core_type<tc>, window_params = [{pipeline_mode = #tpu.pipeline_mode<synchronous>, transform_indices = @transform_0, window_bounds = array<i64: 32, 144>}, {transform_indices = @transform_1, window_bounds = array<i64: 1, 128>}, {transform_indices = @transform_2, window_bounds = array<i64: 16, 128>}, {transform_indices = @transform_3, window_bounds = array<i64: 16, 128>}, {transform_indices = @transform_4, window_bounds = array<i64: 16, 128>}, {transform_indices = @transform_5, window_bounds = array<i64: 32, 128>}]} {
    %c0 = arith.constant 0 : index
    %c0_0 = arith.constant 0 : index
    %0 = vector.load %arg3[%c0, %c0_0] : memref<16x128xbf16, #tpu.memory_space<vmem>>, vector<16x128xbf16>
    %c0_1 = arith.constant 0 : index
    %c0_2 = arith.constant 0 : index
    %1 = vector.load %arg4[%c0_1, %c0_2] : memref<16x128xbf16, #tpu.memory_space<vmem>>, vector<16x128xbf16>
    %c0_3 = arith.constant 0 : index
    %c0_4 = arith.constant 0 : index
    %2 = vector.load %arg5[%c0_3, %c0_4] : memref<16x128xbf16, #tpu.memory_space<vmem>>, vector<16x128xbf16>
    %3 = tpu.concatenate %0, %1, %2 in 1 : vector<16x128xbf16>, vector<16x128xbf16>, vector<16x128xbf16> -> vector<16x384xbf16>
    %4 = vector.extract_strided_slice %3 {offsets = [0, 121], sizes = [16, 128], strides = [1, 1]} : vector<16x384xbf16> to vector<16x128xbf16>
    %5 = vector.extract_strided_slice %3 {offsets = [0, 122], sizes = [16, 128], strides = [1, 1]} : vector<16x384xbf16> to vector<16x128xbf16>
    %6 = vector.extract_strided_slice %3 {offsets = [0, 123], sizes = [16, 128], strides = [1, 1]} : vector<16x384xbf16> to vector<16x128xbf16>
    %7 = vector.extract_strided_slice %3 {offsets = [0, 127], sizes = [16, 128], strides = [1, 1]} : vector<16x384xbf16> to vector<16x128xbf16>
    %8 = vector.extract_strided_slice %3 {offsets = [0, 128], sizes = [16, 128], strides = [1, 1]} : vector<16x384xbf16> to vector<16x128xbf16>
    %9 = vector.extract_strided_slice %3 {offsets = [0, 129], sizes = [16, 128], strides = [1, 1]} : vector<16x384xbf16> to vector<16x128xbf16>
    %10 = vector.extract_strided_slice %3 {offsets = [0, 133], sizes = [16, 128], strides = [1, 1]} : vector<16x384xbf16> to vector<16x128xbf16>
    %11 = vector.extract_strided_slice %3 {offsets = [0, 134], sizes = [16, 128], strides = [1, 1]} : vector<16x384xbf16> to vector<16x128xbf16>
    %12 = vector.extract_strided_slice %3 {offsets = [0, 135], sizes = [16, 128], strides = [1, 1]} : vector<16x384xbf16> to vector<16x128xbf16>
    %13 = tpu.concatenate %4, %5, %6, %7, %8, %9, %10, %11, %12 in 0 : vector<16x128xbf16>, vector<16x128xbf16>, vector<16x128xbf16>, vector<16x128xbf16>, vector<16x128xbf16>, vector<16x128xbf16>, vector<16x128xbf16>, vector<16x128xbf16>, vector<16x128xbf16> -> vector<144x128xbf16>
    %c0_5 = arith.constant 0 : index
    %c0_6 = arith.constant 0 : index
    %14 = vector.load %arg1[%c0_5, %c0_6] : memref<32x144xbf16, #tpu.memory_space<vmem>>, vector<32x144xbf16>
    %cst = arith.constant dense<0.000000e+00> : vector<32x128xf32>
    %15 = tpu.matmul %14, %13, %cst {dimension_numbers = #tpu.dot_dimension_numbers<[1], [0], [0], [1], [0, 0, 1, 1], [], []>} : vector<32x144xbf16>, vector<144x128xbf16>, vector<32x128xf32> -> vector<32x128xf32>
    %cst_7 = arith.constant 0.000000e+00 : f32
    %16 = vector.broadcast %cst_7 : f32 to vector<32x128xf32>
    %17 = arith.cmpf ogt, %15, %16 : vector<32x128xf32>
    %cst_8 = arith.constant 2.000000e-01 : f32
    %18 = vector.broadcast %cst_8 : f32 to vector<32x128xf32>
    %19 = arith.mulf %18, %15 : vector<32x128xf32>
    %20 = arith.select %17, %15, %19 : vector<32x128xi1>, vector<32x128xf32>
    %c0_9 = arith.constant 0 : index
    %c0_10 = arith.constant 0 : index
    %21 = vector.load %arg2[%c0_9, %c0_10] : memref<1x128xf32, #tpu.memory_space<vmem>>, vector<1x128xf32>
    %cst_11 = arith.constant 0.000000e+00 : f32
    %22 = vector.broadcast %cst_11 : f32 to vector<1x128xf32>
    %23 = arith.cmpf ogt, %21, %22 : vector<1x128xf32>
    %cst_12 = arith.constant 0.000000e+00 : f32
    %24 = vector.shape_cast %23 : vector<1x128xi1> to vector<1x128xi1>
    %25 = vector.broadcast %24 : vector<1x128xi1> to vector<32x128xi1>
    %26 = vector.broadcast %cst_12 : f32 to vector<32x128xf32>
    %27 = arith.select %25, %20, %26 : vector<32x128xi1>, vector<32x128xf32>
    %28 = arith.truncf %27 : vector<32x128xf32> to vector<32x128xbf16>
    %c0_13 = arith.constant 0 : index
    %c0_14 = arith.constant 0 : index
    %29 = vector.load %arg6[%c0_13, %c0_14] : memref<32x128xbf16, #tpu.memory_space<vmem>>, vector<32x128xbf16>
    tpu.vector_store %arg6[%c0_13, %c0_14], %28 {strides = array<i32>} : memref<32x128xbf16, #tpu.memory_space<vmem>>, vector<32x128xbf16>,
    return
  }
  func.func @transform_0(%arg0: i32) -> (i32, i32) {
    %c0_i32 = arith.constant 0 : i32
    %c0_i32_0 = arith.constant 0 : i32
    %c0_i32_1 = arith.constant 0 : i32
    return %c0_i32, %c0_i32_0 : i32, i32
  }
  func.func @transform_1(%arg0: i32) -> (i32, i32) {
    %c0_i32 = arith.constant 0 : i32
    %c0_i32_0 = arith.constant 0 : i32
    return %c0_i32, %arg0 : i32, i32
  }
  func.func @transform_2(%arg0: i32) -> (i32, i32) {
    %c1_i32 = arith.constant 1 : i32
    %0 = arith.muli %arg0, %c1_i32 : i32
    %c1_i32_0 = arith.constant 1 : i32
    %1 = arith.subi %0, %c1_i32_0 : i32
    %c0_i32 = arith.constant 0 : i32
    %2 = arith.maxsi %1, %c0_i32 : i32
    %c0_i32_1 = arith.constant 0 : i32
    %c0_i32_2 = arith.constant 0 : i32
    return %c0_i32_1, %2 : i32, i32
  }
  func.func @transform_3(%arg0: i32) -> (i32, i32) {
    %c0_i32 = arith.constant 0 : i32
    %c0_i32_0 = arith.constant 0 : i32
    return %c0_i32, %arg0 : i32, i32
  }
  func.func @transform_4(%arg0: i32) -> (i32, i32) {
    %c1_i32 = arith.constant 1 : i32
    %0 = arith.addi %arg0, %c1_i32 : i32
    %c1_i32_0 = arith.constant 1 : i32
    %1 = arith.muli %0, %c1_i32_0 : i32
    %c0_i32 = arith.constant 0 : i32
    %2 = arith.minsi %1, %c0_i32 : i32
    %c0_i32_1 = arith.constant 0 : i32
    %c0_i32_2 = arith.constant 0 : i32
    return %c0_i32_1, %2 : i32, i32
  }
  func.func @transform_5(%arg0: i32) -> (i32, i32) {
    %c0_i32 = arith.constant 0 : i32
    %c0_i32_0 = arith.constant 0 : i32
    return %c0_i32, %arg0 : i32, i32
  }
}

module attributes {stable_mosaic.version = 11 : i64} {
  func.func @kernel(%arg0: i32, %arg1: memref<32x288xbf16, #tpu.memory_space<vmem>>, %arg2: memref<1x128xf32, #tpu.memory_space<vmem>>, %arg3: memref<32x128xbf16, #tpu.memory_space<vmem>>, %arg4: memref<32x128xbf16, #tpu.memory_space<vmem>>, %arg5: memref<32x128xbf16, #tpu.memory_space<vmem>>, %arg6: memref<32x128xbf16, #tpu.memory_space<vmem>>) attributes {dimension_semantics = [#tpu.dimension_semantics<parallel>], iteration_bounds = array<i64: 1>, scalar_prefetch = 0 : i64, scratch_operands = 0 : i64, tpu.core_type = #tpu.core_type<tc>, window_params = [{pipeline_mode = #tpu.pipeline_mode<synchronous>, transform_indices = @transform_0, window_bounds = array<i64: 32, 288>}, {transform_indices = @transform_1, window_bounds = array<i64: 1, 128>}, {transform_indices = @transform_2, window_bounds = array<i64: 32, 128>}, {transform_indices = @transform_3, window_bounds = array<i64: 32, 128>}, {transform_indices = @transform_4, window_bounds = array<i64: 32, 128>}, {transform_indices = @transform_5, window_bounds = array<i64: 32, 128>}]} {
    %c0 = arith.constant 0 : index
    %c0_0 = arith.constant 0 : index
    %0 = vector.load %arg3[%c0, %c0_0] : memref<32x128xbf16, #tpu.memory_space<vmem>>, vector<32x128xbf16>
    %c0_1 = arith.constant 0 : index
    %c0_2 = arith.constant 0 : index
    %1 = vector.load %arg4[%c0_1, %c0_2] : memref<32x128xbf16, #tpu.memory_space<vmem>>, vector<32x128xbf16>
    %c0_3 = arith.constant 0 : index
    %c0_4 = arith.constant 0 : index
    %2 = vector.load %arg5[%c0_3, %c0_4] : memref<32x128xbf16, #tpu.memory_space<vmem>>, vector<32x128xbf16>
    %3 = tpu.concatenate %0, %1, %2 in 1 : vector<32x128xbf16>, vector<32x128xbf16>, vector<32x128xbf16> -> vector<32x384xbf16>
    %4 = vector.extract_strided_slice %3 {offsets = [0, 121], sizes = [32, 128], strides = [1, 1]} : vector<32x384xbf16> to vector<32x128xbf16>
    %5 = vector.extract_strided_slice %3 {offsets = [0, 122], sizes = [32, 128], strides = [1, 1]} : vector<32x384xbf16> to vector<32x128xbf16>
    %6 = vector.extract_strided_slice %3 {offsets = [0, 123], sizes = [32, 128], strides = [1, 1]} : vector<32x384xbf16> to vector<32x128xbf16>
    %7 = vector.extract_strided_slice %3 {offsets = [0, 127], sizes = [32, 128], strides = [1, 1]} : vector<32x384xbf16> to vector<32x128xbf16>
    %8 = vector.extract_strided_slice %3 {offsets = [0, 128], sizes = [32, 128], strides = [1, 1]} : vector<32x384xbf16> to vector<32x128xbf16>
    %9 = vector.extract_strided_slice %3 {offsets = [0, 129], sizes = [32, 128], strides = [1, 1]} : vector<32x384xbf16> to vector<32x128xbf16>
    %10 = vector.extract_strided_slice %3 {offsets = [0, 133], sizes = [32, 128], strides = [1, 1]} : vector<32x384xbf16> to vector<32x128xbf16>
    %11 = vector.extract_strided_slice %3 {offsets = [0, 134], sizes = [32, 128], strides = [1, 1]} : vector<32x384xbf16> to vector<32x128xbf16>
    %12 = vector.extract_strided_slice %3 {offsets = [0, 135], sizes = [32, 128], strides = [1, 1]} : vector<32x384xbf16> to vector<32x128xbf16>
    %13 = tpu.concatenate %4, %5, %6, %7, %8, %9, %10, %11, %12 in 0 : vector<32x128xbf16>, vector<32x128xbf16>, vector<32x128xbf16>, vector<32x128xbf16>, vector<32x128xbf16>, vector<32x128xbf16>, vector<32x128xbf16>, vector<32x128xbf16>, vector<32x128xbf16> -> vector<288x128xbf16>
    %c0_5 = arith.constant 0 : index
    %c0_6 = arith.constant 0 : index
    %14 = vector.load %arg1[%c0_5, %c0_6] : memref<32x288xbf16, #tpu.memory_space<vmem>>, vector<32x288xbf16>
    %cst = arith.constant dense<0.000000e+00> : vector<32x128xf32>
    %15 = tpu.matmul %14, %13, %cst {dimension_numbers = #tpu.dot_dimension_numbers<[1], [0], [0], [1], [0, 0, 1, 1], [], []>} : vector<32x288xbf16>, vector<288x128xbf16>, vector<32x128xf32> -> vector<32x128xf32>
    %cst_7 = arith.constant 0.000000e+00 : f32
    %16 = vector.broadcast %cst_7 : f32 to vector<32x128xf32>
    %17 = arith.cmpf ogt, %15, %16 : vector<32x128xf32>
    %cst_8 = arith.constant 2.000000e-01 : f32
    %18 = vector.broadcast %cst_8 : f32 to vector<32x128xf32>
    %19 = arith.mulf %18, %15 : vector<32x128xf32>
    %20 = arith.select %17, %15, %19 : vector<32x128xi1>, vector<32x128xf32>
    %c0_9 = arith.constant 0 : index
    %c0_10 = arith.constant 0 : index
    %21 = vector.load %arg2[%c0_9, %c0_10] : memref<1x128xf32, #tpu.memory_space<vmem>>, vector<1x128xf32>
    %cst_11 = arith.constant 0.000000e+00 : f32
    %22 = vector.broadcast %cst_11 : f32 to vector<1x128xf32>
    %23 = arith.cmpf ogt, %21, %22 : vector<1x128xf32>
    %cst_12 = arith.constant 0.000000e+00 : f32
    %24 = vector.shape_cast %23 : vector<1x128xi1> to vector<1x128xi1>
    %25 = vector.broadcast %24 : vector<1x128xi1> to vector<32x128xi1>
    %26 = vector.broadcast %cst_12 : f32 to vector<32x128xf32>
    %27 = arith.select %25, %20, %26 : vector<32x128xi1>, vector<32x128xf32>
    %28 = arith.truncf %27 : vector<32x128xf32> to vector<32x128xbf16>
    %c0_13 = arith.constant 0 : index
    %c0_14 = arith.constant 0 : index
    %29 = vector.load %arg6[%c0_13, %c0_14] : memref<32x128xbf16, #tpu.memory_space<vmem>>, vector<32x128xbf16>
    tpu.vector_store %arg6[%c0_13, %c0_14], %28 {strides = array<i32>} : memref<32x128xbf16, #tpu.memory_space<vmem>>, vector<32x128xbf16>,
    return
  }
  func.func @transform_0(%arg0: i32) -> (i32, i32) {
    %c0_i32 = arith.constant 0 : i32
    %c0_i32_0 = arith.constant 0 : i32
    %c0_i32_1 = arith.constant 0 : i32
    return %c0_i32, %c0_i32_0 : i32, i32
  }
  func.func @transform_1(%arg0: i32) -> (i32, i32) {
    %c0_i32 = arith.constant 0 : i32
    %c0_i32_0 = arith.constant 0 : i32
    return %c0_i32, %arg0 : i32, i32
  }
  func.func @transform_2(%arg0: i32) -> (i32, i32) {
    %c1_i32 = arith.constant 1 : i32
    %0 = arith.muli %arg0, %c1_i32 : i32
    %c1_i32_0 = arith.constant 1 : i32
    %1 = arith.subi %0, %c1_i32_0 : i32
    %c0_i32 = arith.constant 0 : i32
    %2 = arith.maxsi %1, %c0_i32 : i32
    %c0_i32_1 = arith.constant 0 : i32
    %c0_i32_2 = arith.constant 0 : i32
    return %c0_i32_1, %2 : i32, i32
  }
  func.func @transform_3(%arg0: i32) -> (i32, i32) {
    %c0_i32 = arith.constant 0 : i32
    %c0_i32_0 = arith.constant 0 : i32
    return %c0_i32, %arg0 : i32, i32
  }
  func.func @transform_4(%arg0: i32) -> (i32, i32) {
    %c1_i32 = arith.constant 1 : i32
    %0 = arith.addi %arg0, %c1_i32 : i32
    %c1_i32_0 = arith.constant 1 : i32
    %1 = arith.muli %0, %c1_i32_0 : i32
    %c0_i32 = arith.constant 0 : i32
    %2 = arith.minsi %1, %c0_i32 : i32
    %c0_i32_1 = arith.constant 0 : i32
    %c0_i32_2 = arith.constant 0 : i32
    return %c0_i32_1, %2 : i32, i32
  }
  func.func @transform_5(%arg0: i32) -> (i32, i32) {
    %c0_i32 = arith.constant 0 : i32
    %c0_i32_0 = arith.constant 0 : i32
    return %c0_i32, %arg0 : i32, i32
  }
}

module attributes {stable_mosaic.version = 11 : i64} {
  func.func @kernel(%arg0: i32, %arg1: memref<64x32xbf16, #tpu.memory_space<vmem>>, %arg2: memref<32x128xbf16, #tpu.memory_space<vmem>>, %arg3: memref<64x128xbf16, #tpu.memory_space<vmem>>) attributes {dimension_semantics = [#tpu.dimension_semantics<parallel>], iteration_bounds = array<i64: 1>, scalar_prefetch = 0 : i64, scratch_operands = 0 : i64, tpu.core_type = #tpu.core_type<tc>, window_params = [{pipeline_mode = #tpu.pipeline_mode<synchronous>, transform_indices = @transform_0, window_bounds = array<i64: 64, 32>}, {transform_indices = @transform_1, window_bounds = array<i64: 32, 128>}, {transform_indices = @transform_2, window_bounds = array<i64: 64, 128>}]} {
    %c0 = arith.constant 0 : index
    %c0_0 = arith.constant 0 : index
    %0 = vector.load %arg1[%c0, %c0_0] : memref<64x32xbf16, #tpu.memory_space<vmem>>, vector<64x32xbf16>
    %c0_1 = arith.constant 0 : index
    %c0_2 = arith.constant 0 : index
    %1 = vector.load %arg2[%c0_1, %c0_2] : memref<32x128xbf16, #tpu.memory_space<vmem>>, vector<32x128xbf16>
    %cst = arith.constant dense<0.000000e+00> : vector<64x128xf32>
    %2 = tpu.matmul %0, %1, %cst {dimension_numbers = #tpu.dot_dimension_numbers<[1], [0], [0], [1], [0, 0, 1, 1], [], []>} : vector<64x32xbf16>, vector<32x128xbf16>, vector<64x128xf32> -> vector<64x128xf32>
    %cst_3 = arith.constant 0.000000e+00 : f32
    %3 = vector.broadcast %cst_3 : f32 to vector<64x128xf32>
    %4 = arith.cmpf ogt, %2, %3 : vector<64x128xf32>
    %cst_4 = arith.constant 2.000000e-01 : f32
    %5 = vector.broadcast %cst_4 : f32 to vector<64x128xf32>
    %6 = arith.mulf %5, %2 : vector<64x128xf32>
    %7 = arith.select %4, %2, %6 : vector<64x128xi1>, vector<64x128xf32>
    %8 = arith.truncf %7 : vector<64x128xf32> to vector<64x128xbf16>
    %c0_5 = arith.constant 0 : index
    %c0_6 = arith.constant 0 : index
    %9 = vector.load %arg3[%c0_5, %c0_6] : memref<64x128xbf16, #tpu.memory_space<vmem>>, vector<64x128xbf16>
    tpu.vector_store %arg3[%c0_5, %c0_6], %8 {strides = array<i32>} : memref<64x128xbf16, #tpu.memory_space<vmem>>, vector<64x128xbf16>,
    return
  }
  func.func @transform_0(%arg0: i32) -> (i32, i32) {
    %c0_i32 = arith.constant 0 : i32
    %c0_i32_0 = arith.constant 0 : i32
    %c0_i32_1 = arith.constant 0 : i32
    return %c0_i32, %c0_i32_0 : i32, i32
  }
  func.func @transform_1(%arg0: i32) -> (i32, i32) {
    %c0_i32 = arith.constant 0 : i32
    %c0_i32_0 = arith.constant 0 : i32
    return %c0_i32, %arg0 : i32, i32
  }
  func.func @transform_2(%arg0: i32) -> (i32, i32) {
    %c0_i32 = arith.constant 0 : i32
    %c0_i32_0 = arith.constant 0 : i32
    return %c0_i32, %arg0 : i32, i32
  }
}

module attributes {stable_mosaic.version = 11 : i64} {
  func.func @kernel(%arg0: i32, %arg1: memref<16x288xbf16, #tpu.memory_space<vmem>>, %arg2: memref<1x128xf32, #tpu.memory_space<vmem>>, %arg3: memref<16x128xbf16, #tpu.memory_space<vmem>>, %arg4: memref<16x128xbf16, #tpu.memory_space<vmem>>, %arg5: memref<16x128xbf16, #tpu.memory_space<vmem>>, %arg6: memref<16x128xbf16, #tpu.memory_space<vmem>>, %arg7: memref<16x128xbf16, #tpu.memory_space<vmem>>, %arg8: memref<16x128xbf16, #tpu.memory_space<vmem>>, %arg9: memref<16x128xbf16, #tpu.memory_space<vmem>>) attributes {dimension_semantics = [#tpu.dimension_semantics<parallel>], iteration_bounds = array<i64: 2>, scalar_prefetch = 0 : i64, scratch_operands = 0 : i64, tpu.core_type = #tpu.core_type<tc>, window_params = [{pipeline_mode = #tpu.pipeline_mode<synchronous>, transform_indices = @transform_0, window_bounds = array<i64: 16, 288>}, {transform_indices = @transform_1, window_bounds = array<i64: 1, 128>}, {transform_indices = @transform_2, window_bounds = array<i64: 16, 128>}, {transform_indices = @transform_3, window_bounds = array<i64: 16, 128>}, {transform_indices = @transform_4, window_bounds = array<i64: 16, 128>}, {transform_indices = @transform_5, window_bounds = array<i64: 16, 128>}, {transform_indices = @transform_6, window_bounds = array<i64: 16, 128>}, {transform_indices = @transform_7, window_bounds = array<i64: 16, 128>}, {transform_indices = @transform_8, window_bounds = array<i64: 16, 128>}]} {
    %c0 = arith.constant 0 : index
    %c0_0 = arith.constant 0 : index
    %0 = vector.load %arg3[%c0, %c0_0] : memref<16x128xbf16, #tpu.memory_space<vmem>>, vector<16x128xbf16>
    %c0_1 = arith.constant 0 : index
    %c0_2 = arith.constant 0 : index
    %1 = vector.load %arg4[%c0_1, %c0_2] : memref<16x128xbf16, #tpu.memory_space<vmem>>, vector<16x128xbf16>
    %c0_3 = arith.constant 0 : index
    %c0_4 = arith.constant 0 : index
    %2 = vector.load %arg5[%c0_3, %c0_4] : memref<16x128xbf16, #tpu.memory_space<vmem>>, vector<16x128xbf16>
    %3 = tpu.concatenate %0, %1, %2 in 1 : vector<16x128xbf16>, vector<16x128xbf16>, vector<16x128xbf16> -> vector<16x384xbf16>
    %4 = vector.extract_strided_slice %3 {offsets = [0, 117], sizes = [16, 128], strides = [1, 1]} : vector<16x384xbf16> to vector<16x128xbf16>
    %5 = vector.extract_strided_slice %3 {offsets = [0, 118], sizes = [16, 128], strides = [1, 1]} : vector<16x384xbf16> to vector<16x128xbf16>
    %6 = vector.extract_strided_slice %3 {offsets = [0, 119], sizes = [16, 128], strides = [1, 1]} : vector<16x384xbf16> to vector<16x128xbf16>
    %7 = vector.extract_strided_slice %3 {offsets = [0, 127], sizes = [16, 128], strides = [1, 1]} : vector<16x384xbf16> to vector<16x128xbf16>
    %8 = vector.extract_strided_slice %3 {offsets = [0, 128], sizes = [16, 128], strides = [1, 1]} : vector<16x384xbf16> to vector<16x128xbf16>
    %9 = vector.extract_strided_slice %3 {offsets = [0, 129], sizes = [16, 128], strides = [1, 1]} : vector<16x384xbf16> to vector<16x128xbf16>
    %10 = vector.extract_strided_slice %3 {offsets = [0, 137], sizes = [16, 128], strides = [1, 1]} : vector<16x384xbf16> to vector<16x128xbf16>
    %11 = vector.extract_strided_slice %3 {offsets = [0, 138], sizes = [16, 128], strides = [1, 1]} : vector<16x384xbf16> to vector<16x128xbf16>
    %12 = vector.extract_strided_slice %3 {offsets = [0, 139], sizes = [16, 128], strides = [1, 1]} : vector<16x384xbf16> to vector<16x128xbf16>
    %c0_5 = arith.constant 0 : index
    %c0_6 = arith.constant 0 : index
    %13 = vector.load %arg6[%c0_5, %c0_6] : memref<16x128xbf16, #tpu.memory_space<vmem>>, vector<16x128xbf16>
    %c0_7 = arith.constant 0 : index
    %c0_8 = arith.constant 0 : index
    %14 = vector.load %arg7[%c0_7, %c0_8] : memref<16x128xbf16, #tpu.memory_space<vmem>>, vector<16x128xbf16>
    %c0_9 = arith.constant 0 : index
    %c0_10 = arith.constant 0 : index
    %15 = vector.load %arg8[%c0_9, %c0_10] : memref<16x128xbf16, #tpu.memory_space<vmem>>, vector<16x128xbf16>
    %16 = tpu.concatenate %13, %14, %15 in 1 : vector<16x128xbf16>, vector<16x128xbf16>, vector<16x128xbf16> -> vector<16x384xbf16>
    %17 = vector.extract_strided_slice %16 {offsets = [0, 117], sizes = [16, 128], strides = [1, 1]} : vector<16x384xbf16> to vector<16x128xbf16>
    %18 = vector.extract_strided_slice %16 {offsets = [0, 118], sizes = [16, 128], strides = [1, 1]} : vector<16x384xbf16> to vector<16x128xbf16>
    %19 = vector.extract_strided_slice %16 {offsets = [0, 119], sizes = [16, 128], strides = [1, 1]} : vector<16x384xbf16> to vector<16x128xbf16>
    %20 = vector.extract_strided_slice %16 {offsets = [0, 127], sizes = [16, 128], strides = [1, 1]} : vector<16x384xbf16> to vector<16x128xbf16>
    %21 = vector.extract_strided_slice %16 {offsets = [0, 128], sizes = [16, 128], strides = [1, 1]} : vector<16x384xbf16> to vector<16x128xbf16>
    %22 = vector.extract_strided_slice %16 {offsets = [0, 129], sizes = [16, 128], strides = [1, 1]} : vector<16x384xbf16> to vector<16x128xbf16>
    %23 = vector.extract_strided_slice %16 {offsets = [0, 137], sizes = [16, 128], strides = [1, 1]} : vector<16x384xbf16> to vector<16x128xbf16>
    %24 = vector.extract_strided_slice %16 {offsets = [0, 138], sizes = [16, 128], strides = [1, 1]} : vector<16x384xbf16> to vector<16x128xbf16>
    %25 = vector.extract_strided_slice %16 {offsets = [0, 139], sizes = [16, 128], strides = [1, 1]} : vector<16x384xbf16> to vector<16x128xbf16>
    %26 = tpu.concatenate %4, %5, %6, %7, %8, %9, %10, %11, %12, %17, %18, %19, %20, %21, %22, %23 in 0 : vector<16x128xbf16>, vector<16x128xbf16>, vector<16x128xbf16>, vector<16x128xbf16>, vector<16x128xbf16>, vector<16x128xbf16>, vector<16x128xbf16>, vector<16x128xbf16>, vector<16x128xbf16>, vector<16x128xbf16>, vector<16x128xbf16>, vector<16x128xbf16>, vector<16x128xbf16>, vector<16x128xbf16>, vector<16x128xbf16>, vector<16x128xbf16> -> vector<256x128xbf16>
    %27 = tpu.concatenate %24, %25 in 0 : vector<16x128xbf16>, vector<16x128xbf16> -> vector<32x128xbf16>
    %28 = tpu.concatenate %26, %27 in 0 : vector<256x128xbf16>, vector<32x128xbf16> -> vector<288x128xbf16>
    %c0_11 = arith.constant 0 : index
    %c0_12 = arith.constant 0 : index
    %29 = vector.load %arg1[%c0_11, %c0_12] : memref<16x288xbf16, #tpu.memory_space<vmem>>, vector<16x288xbf16>
    %cst = arith.constant dense<0.000000e+00> : vector<16x128xf32>
    %30 = tpu.matmul %29, %28, %cst {dimension_numbers = #tpu.dot_dimension_numbers<[1], [0], [0], [1], [0, 0, 1, 1], [], []>} : vector<16x288xbf16>, vector<288x128xbf16>, vector<16x128xf32> -> vector<16x128xf32>
    %cst_13 = arith.constant 0.000000e+00 : f32
    %31 = vector.broadcast %cst_13 : f32 to vector<16x128xf32>
    %32 = arith.cmpf ogt, %30, %31 : vector<16x128xf32>
    %cst_14 = arith.constant 2.000000e-01 : f32
    %33 = vector.broadcast %cst_14 : f32 to vector<16x128xf32>
    %34 = arith.mulf %33, %30 : vector<16x128xf32>
    %35 = arith.select %32, %30, %34 : vector<16x128xi1>, vector<16x128xf32>
    %c0_15 = arith.constant 0 : index
    %c0_16 = arith.constant 0 : index
    %36 = vector.load %arg2[%c0_15, %c0_16] : memref<1x128xf32, #tpu.memory_space<vmem>>, vector<1x128xf32>
    %cst_17 = arith.constant 0.000000e+00 : f32
    %37 = vector.broadcast %cst_17 : f32 to vector<1x128xf32>
    %38 = arith.cmpf ogt, %36, %37 : vector<1x128xf32>
    %cst_18 = arith.constant 0.000000e+00 : f32
    %39 = vector.shape_cast %38 : vector<1x128xi1> to vector<1x128xi1>
    %40 = vector.broadcast %39 : vector<1x128xi1> to vector<16x128xi1>
    %41 = vector.broadcast %cst_18 : f32 to vector<16x128xf32>
    %42 = arith.select %40, %35, %41 : vector<16x128xi1>, vector<16x128xf32>
    %43 = arith.truncf %42 : vector<16x128xf32> to vector<16x128xbf16>
    %c0_19 = arith.constant 0 : index
    %c0_20 = arith.constant 0 : index
    %44 = vector.load %arg9[%c0_19, %c0_20] : memref<16x128xbf16, #tpu.memory_space<vmem>>, vector<16x128xbf16>
    tpu.vector_store %arg9[%c0_19, %c0_20], %43 {strides = array<i32>} : memref<16x128xbf16, #tpu.memory_space<vmem>>, vector<16x128xbf16>,
    return
  }
  func.func @transform_0(%arg0: i32) -> (i32, i32) {
    %c0_i32 = arith.constant 0 : i32
    %c0_i32_0 = arith.constant 0 : i32
    %c0_i32_1 = arith.constant 0 : i32
    return %c0_i32, %c0_i32_0 : i32, i32
  }
  func.func @transform_1(%arg0: i32) -> (i32, i32) {
    %c0_i32 = arith.constant 0 : i32
    %c0_i32_0 = arith.constant 0 : i32
    return %c0_i32, %arg0 : i32, i32
  }
  func.func @transform_2(%arg0: i32) -> (i32, i32) {
    %c1_i32 = arith.constant 1 : i32
    %0 = arith.muli %arg0, %c1_i32 : i32
    %c1_i32_0 = arith.constant 1 : i32
    %1 = arith.subi %0, %c1_i32_0 : i32
    %c0_i32 = arith.constant 0 : i32
    %2 = arith.maxsi %1, %c0_i32 : i32
    %c0_i32_1 = arith.constant 0 : i32
    %c0_i32_2 = arith.constant 0 : i32
    return %c0_i32_1, %2 : i32, i32
  }
  func.func @transform_3(%arg0: i32) -> (i32, i32) {
    %c0_i32 = arith.constant 0 : i32
    %c0_i32_0 = arith.constant 0 : i32
    return %c0_i32, %arg0 : i32, i32
  }
  func.func @transform_4(%arg0: i32) -> (i32, i32) {
    %c1_i32 = arith.constant 1 : i32
    %0 = arith.addi %arg0, %c1_i32 : i32
    %c1_i32_0 = arith.constant 1 : i32
    %1 = arith.muli %0, %c1_i32_0 : i32
    %c1_i32_1 = arith.constant 1 : i32
    %2 = arith.minsi %1, %c1_i32_1 : i32
    %c0_i32 = arith.constant 0 : i32
    %c0_i32_2 = arith.constant 0 : i32
    return %c0_i32, %2 : i32, i32
  }
  func.func @transform_5(%arg0: i32) -> (i32, i32) {
    %c1_i32 = arith.constant 1 : i32
    %0 = arith.muli %arg0, %c1_i32 : i32
    %c1_i32_0 = arith.constant 1 : i32
    %1 = arith.subi %0, %c1_i32_0 : i32
    %c0_i32 = arith.constant 0 : i32
    %2 = arith.maxsi %1, %c0_i32 : i32
    %c0_i32_1 = arith.constant 0 : i32
    %c0_i32_2 = arith.constant 0 : i32
    return %c0_i32_1, %2 : i32, i32
  }
  func.func @transform_6(%arg0: i32) -> (i32, i32) {
    %c0_i32 = arith.constant 0 : i32
    %c0_i32_0 = arith.constant 0 : i32
    return %c0_i32, %arg0 : i32, i32
  }
  func.func @transform_7(%arg0: i32) -> (i32, i32) {
    %c1_i32 = arith.constant 1 : i32
    %0 = arith.addi %arg0, %c1_i32 : i32
    %c1_i32_0 = arith.constant 1 : i32
    %1 = arith.muli %0, %c1_i32_0 : i32
    %c1_i32_1 = arith.constant 1 : i32
    %2 = arith.minsi %1, %c1_i32_1 : i32
    %c0_i32 = arith.constant 0 : i32
    %c0_i32_2 = arith.constant 0 : i32
    return %c0_i32, %2 : i32, i32
  }
  func.func @transform_8(%arg0: i32) -> (i32, i32) {
    %c0_i32 = arith.constant 0 : i32
    %c0_i32_0 = arith.constant 0 : i32
    return %c0_i32, %arg0 : i32, i32
  }
}

module attributes {stable_mosaic.version = 11 : i64} {
  func.func @kernel(%arg0: i32, %arg1: memref<32x16xbf16, #tpu.memory_space<vmem>>, %arg2: memref<16x128xbf16, #tpu.memory_space<vmem>>, %arg3: memref<32x128xbf16, #tpu.memory_space<vmem>>) attributes {dimension_semantics = [#tpu.dimension_semantics<parallel>], iteration_bounds = array<i64: 1>, scalar_prefetch = 0 : i64, scratch_operands = 0 : i64, tpu.core_type = #tpu.core_type<tc>, window_params = [{pipeline_mode = #tpu.pipeline_mode<synchronous>, transform_indices = @transform_0, window_bounds = array<i64: 32, 16>}, {transform_indices = @transform_1, window_bounds = array<i64: 16, 128>}, {transform_indices = @transform_2, window_bounds = array<i64: 32, 128>}]} {
    %c0 = arith.constant 0 : index
    %c0_0 = arith.constant 0 : index
    %0 = vector.load %arg1[%c0, %c0_0] : memref<32x16xbf16, #tpu.memory_space<vmem>>, vector<32x16xbf16>
    %c0_1 = arith.constant 0 : index
    %c0_2 = arith.constant 0 : index
    %1 = vector.load %arg2[%c0_1, %c0_2] : memref<16x128xbf16, #tpu.memory_space<vmem>>, vector<16x128xbf16>
    %cst = arith.constant dense<0.000000e+00> : vector<32x128xf32>
    %2 = tpu.matmul %0, %1, %cst {dimension_numbers = #tpu.dot_dimension_numbers<[1], [0], [0], [1], [0, 0, 1, 1], [], []>} : vector<32x16xbf16>, vector<16x128xbf16>, vector<32x128xf32> -> vector<32x128xf32>
    %cst_3 = arith.constant 0.000000e+00 : f32
    %3 = vector.broadcast %cst_3 : f32 to vector<32x128xf32>
    %4 = arith.cmpf ogt, %2, %3 : vector<32x128xf32>
    %cst_4 = arith.constant 2.000000e-01 : f32
    %5 = vector.broadcast %cst_4 : f32 to vector<32x128xf32>
    %6 = arith.mulf %5, %2 : vector<32x128xf32>
    %7 = arith.select %4, %2, %6 : vector<32x128xi1>, vector<32x128xf32>
    %8 = arith.truncf %7 : vector<32x128xf32> to vector<32x128xbf16>
    %c0_5 = arith.constant 0 : index
    %c0_6 = arith.constant 0 : index
    %9 = vector.load %arg3[%c0_5, %c0_6] : memref<32x128xbf16, #tpu.memory_space<vmem>>, vector<32x128xbf16>
    tpu.vector_store %arg3[%c0_5, %c0_6], %8 {strides = array<i32>} : memref<32x128xbf16, #tpu.memory_space<vmem>>, vector<32x128xbf16>,
    return
  }
  func.func @transform_0(%arg0: i32) -> (i32, i32) {
    %c0_i32 = arith.constant 0 : i32
    %c0_i32_0 = arith.constant 0 : i32
    %c0_i32_1 = arith.constant 0 : i32
    return %c0_i32, %c0_i32_0 : i32, i32
  }
  func.func @transform_1(%arg0: i32) -> (i32, i32) {
    %c0_i32 = arith.constant 0 : i32
    %c0_i32_0 = arith.constant 0 : i32
    return %c0_i32, %arg0 : i32, i32
  }
  func.func @transform_2(%arg0: i32) -> (i32, i32) {
    %c0_i32 = arith.constant 0 : i32
    %c0_i32_0 = arith.constant 0 : i32
    return %c0_i32, %arg0 : i32, i32
  }
}

module attributes {stable_mosaic.version = 11 : i64} {
  func.func @kernel(%arg0: i32, %arg1: memref<8x144xbf16, #tpu.memory_space<vmem>>, %arg2: memref<1x384xf32, #tpu.memory_space<vmem>>, %arg3: memref<8x128xbf16, #tpu.memory_space<vmem>>, %arg4: memref<8x384xbf16, #tpu.memory_space<vmem>>, %arg5: memref<8x128xbf16, #tpu.memory_space<vmem>>, %arg6: memref<8x128xbf16, #tpu.memory_space<vmem>>, %arg7: memref<8x384xbf16, #tpu.memory_space<vmem>>, %arg8: memref<8x128xbf16, #tpu.memory_space<vmem>>, %arg9: memref<8x384xbf16, #tpu.memory_space<vmem>>) attributes {dimension_semantics = [#tpu.dimension_semantics<parallel>], iteration_bounds = array<i64: 2>, scalar_prefetch = 0 : i64, scratch_operands = 0 : i64, tpu.core_type = #tpu.core_type<tc>, window_params = [{pipeline_mode = #tpu.pipeline_mode<synchronous>, transform_indices = @transform_0, window_bounds = array<i64: 8, 144>}, {transform_indices = @transform_1, window_bounds = array<i64: 1, 384>}, {transform_indices = @transform_2, window_bounds = array<i64: 8, 128>}, {transform_indices = @transform_3, window_bounds = array<i64: 8, 384>}, {transform_indices = @transform_4, window_bounds = array<i64: 8, 128>}, {transform_indices = @transform_5, window_bounds = array<i64: 8, 128>}, {transform_indices = @transform_6, window_bounds = array<i64: 8, 384>}, {transform_indices = @transform_7, window_bounds = array<i64: 8, 128>}, {transform_indices = @transform_8, window_bounds = array<i64: 8, 384>}]} {
    %c0 = arith.constant 0 : index
    %c0_0 = arith.constant 0 : index
    %0 = vector.load %arg3[%c0, %c0_0] : memref<8x128xbf16, #tpu.memory_space<vmem>>, vector<8x128xbf16>
    %c0_1 = arith.constant 0 : index
    %c0_2 = arith.constant 0 : index
    %1 = vector.load %arg4[%c0_1, %c0_2] : memref<8x384xbf16, #tpu.memory_space<vmem>>, vector<8x384xbf16>
    %c0_3 = arith.constant 0 : index
    %c0_4 = arith.constant 0 : index
    %2 = vector.load %arg5[%c0_3, %c0_4] : memref<8x128xbf16, #tpu.memory_space<vmem>>, vector<8x128xbf16>
    %3 = tpu.concatenate %0, %1, %2 in 1 : vector<8x128xbf16>, vector<8x384xbf16>, vector<8x128xbf16> -> vector<8x640xbf16>
    %4 = vector.extract_strided_slice %3 {offsets = [0, 109], sizes = [8, 384], strides = [1, 1]} : vector<8x640xbf16> to vector<8x384xbf16>
    %5 = vector.extract_strided_slice %3 {offsets = [0, 110], sizes = [8, 384], strides = [1, 1]} : vector<8x640xbf16> to vector<8x384xbf16>
    %6 = vector.extract_strided_slice %3 {offsets = [0, 111], sizes = [8, 384], strides = [1, 1]} : vector<8x640xbf16> to vector<8x384xbf16>
    %7 = vector.extract_strided_slice %3 {offsets = [0, 127], sizes = [8, 384], strides = [1, 1]} : vector<8x640xbf16> to vector<8x384xbf16>
    %8 = vector.extract_strided_slice %3 {offsets = [0, 128], sizes = [8, 384], strides = [1, 1]} : vector<8x640xbf16> to vector<8x384xbf16>
    %9 = vector.extract_strided_slice %3 {offsets = [0, 129], sizes = [8, 384], strides = [1, 1]} : vector<8x640xbf16> to vector<8x384xbf16>
    %10 = vector.extract_strided_slice %3 {offsets = [0, 145], sizes = [8, 384], strides = [1, 1]} : vector<8x640xbf16> to vector<8x384xbf16>
    %11 = vector.extract_strided_slice %3 {offsets = [0, 146], sizes = [8, 384], strides = [1, 1]} : vector<8x640xbf16> to vector<8x384xbf16>
    %12 = vector.extract_strided_slice %3 {offsets = [0, 147], sizes = [8, 384], strides = [1, 1]} : vector<8x640xbf16> to vector<8x384xbf16>
    %c0_5 = arith.constant 0 : index
    %c0_6 = arith.constant 0 : index
    %13 = vector.load %arg6[%c0_5, %c0_6] : memref<8x128xbf16, #tpu.memory_space<vmem>>, vector<8x128xbf16>
    %c0_7 = arith.constant 0 : index
    %c0_8 = arith.constant 0 : index
    %14 = vector.load %arg7[%c0_7, %c0_8] : memref<8x384xbf16, #tpu.memory_space<vmem>>, vector<8x384xbf16>
    %c0_9 = arith.constant 0 : index
    %c0_10 = arith.constant 0 : index
    %15 = vector.load %arg8[%c0_9, %c0_10] : memref<8x128xbf16, #tpu.memory_space<vmem>>, vector<8x128xbf16>
    %16 = tpu.concatenate %13, %14, %15 in 1 : vector<8x128xbf16>, vector<8x384xbf16>, vector<8x128xbf16> -> vector<8x640xbf16>
    %17 = vector.extract_strided_slice %16 {offsets = [0, 109], sizes = [8, 384], strides = [1, 1]} : vector<8x640xbf16> to vector<8x384xbf16>
    %18 = vector.extract_strided_slice %16 {offsets = [0, 110], sizes = [8, 384], strides = [1, 1]} : vector<8x640xbf16> to vector<8x384xbf16>
    %19 = vector.extract_strided_slice %16 {offsets = [0, 111], sizes = [8, 384], strides = [1, 1]} : vector<8x640xbf16> to vector<8x384xbf16>
    %20 = vector.extract_strided_slice %16 {offsets = [0, 127], sizes = [8, 384], strides = [1, 1]} : vector<8x640xbf16> to vector<8x384xbf16>
    %21 = vector.extract_strided_slice %16 {offsets = [0, 128], sizes = [8, 384], strides = [1, 1]} : vector<8x640xbf16> to vector<8x384xbf16>
    %22 = vector.extract_strided_slice %16 {offsets = [0, 129], sizes = [8, 384], strides = [1, 1]} : vector<8x640xbf16> to vector<8x384xbf16>
    %23 = vector.extract_strided_slice %16 {offsets = [0, 145], sizes = [8, 384], strides = [1, 1]} : vector<8x640xbf16> to vector<8x384xbf16>
    %24 = vector.extract_strided_slice %16 {offsets = [0, 146], sizes = [8, 384], strides = [1, 1]} : vector<8x640xbf16> to vector<8x384xbf16>
    %25 = vector.extract_strided_slice %16 {offsets = [0, 147], sizes = [8, 384], strides = [1, 1]} : vector<8x640xbf16> to vector<8x384xbf16>
    %26 = tpu.concatenate %4, %5, %6, %7, %8, %9, %10, %11, %12, %17, %18, %19, %20, %21, %22, %23 in 0 : vector<8x384xbf16>, vector<8x384xbf16>, vector<8x384xbf16>, vector<8x384xbf16>, vector<8x384xbf16>, vector<8x384xbf16>, vector<8x384xbf16>, vector<8x384xbf16>, vector<8x384xbf16>, vector<8x384xbf16>, vector<8x384xbf16>, vector<8x384xbf16>, vector<8x384xbf16>, vector<8x384xbf16>, vector<8x384xbf16>, vector<8x384xbf16> -> vector<128x384xbf16>
    %27 = tpu.concatenate %24, %25 in 0 : vector<8x384xbf16>, vector<8x384xbf16> -> vector<16x384xbf16>
    %28 = tpu.concatenate %26, %27 in 0 : vector<128x384xbf16>, vector<16x384xbf16> -> vector<144x384xbf16>
    %c0_11 = arith.constant 0 : index
    %c0_12 = arith.constant 0 : index
    %29 = vector.load %arg1[%c0_11, %c0_12] : memref<8x144xbf16, #tpu.memory_space<vmem>>, vector<8x144xbf16>
    %cst = arith.constant dense<0.000000e+00> : vector<8x384xf32>
    %30 = tpu.matmul %29, %28, %cst {dimension_numbers = #tpu.dot_dimension_numbers<[1], [0], [0], [1], [0, 0, 1, 1], [], []>} : vector<8x144xbf16>, vector<144x384xbf16>, vector<8x384xf32> -> vector<8x384xf32>
    %cst_13 = arith.constant 0.000000e+00 : f32
    %31 = vector.broadcast %cst_13 : f32 to vector<8x384xf32>
    %32 = arith.cmpf ogt, %30, %31 : vector<8x384xf32>
    %cst_14 = arith.constant 2.000000e-01 : f32
    %33 = vector.broadcast %cst_14 : f32 to vector<8x384xf32>
    %34 = arith.mulf %33, %30 : vector<8x384xf32>
    %35 = arith.select %32, %30, %34 : vector<8x384xi1>, vector<8x384xf32>
    %c0_15 = arith.constant 0 : index
    %c0_16 = arith.constant 0 : index
    %36 = vector.load %arg2[%c0_15, %c0_16] : memref<1x384xf32, #tpu.memory_space<vmem>>, vector<1x384xf32>
    %cst_17 = arith.constant 0.000000e+00 : f32
    %37 = vector.broadcast %cst_17 : f32 to vector<1x384xf32>
    %38 = arith.cmpf ogt, %36, %37 : vector<1x384xf32>
    %cst_18 = arith.constant 0.000000e+00 : f32
    %39 = vector.shape_cast %38 : vector<1x384xi1> to vector<1x384xi1>
    %40 = vector.broadcast %39 : vector<1x384xi1> to vector<8x384xi1>
    %41 = vector.broadcast %cst_18 : f32 to vector<8x384xf32>
    %42 = arith.select %40, %35, %41 : vector<8x384xi1>, vector<8x384xf32>
    %43 = arith.truncf %42 : vector<8x384xf32> to vector<8x384xbf16>
    %c0_19 = arith.constant 0 : index
    %c0_20 = arith.constant 0 : index
    %44 = vector.load %arg9[%c0_19, %c0_20] : memref<8x384xbf16, #tpu.memory_space<vmem>>, vector<8x384xbf16>
    tpu.vector_store %arg9[%c0_19, %c0_20], %43 {strides = array<i32>} : memref<8x384xbf16, #tpu.memory_space<vmem>>, vector<8x384xbf16>,
    return
  }
  func.func @transform_0(%arg0: i32) -> (i32, i32) {
    %c0_i32 = arith.constant 0 : i32
    %c0_i32_0 = arith.constant 0 : i32
    %c0_i32_1 = arith.constant 0 : i32
    return %c0_i32, %c0_i32_0 : i32, i32
  }
  func.func @transform_1(%arg0: i32) -> (i32, i32) {
    %c0_i32 = arith.constant 0 : i32
    %c0_i32_0 = arith.constant 0 : i32
    return %c0_i32, %arg0 : i32, i32
  }
  func.func @transform_2(%arg0: i32) -> (i32, i32) {
    %c3_i32 = arith.constant 3 : i32
    %0 = arith.muli %arg0, %c3_i32 : i32
    %c1_i32 = arith.constant 1 : i32
    %1 = arith.subi %0, %c1_i32 : i32
    %c0_i32 = arith.constant 0 : i32
    %2 = arith.maxsi %1, %c0_i32 : i32
    %c0_i32_0 = arith.constant 0 : i32
    %c0_i32_1 = arith.constant 0 : i32
    return %c0_i32_0, %2 : i32, i32
  }
  func.func @transform_3(%arg0: i32) -> (i32, i32) {
    %c0_i32 = arith.constant 0 : i32
    %c0_i32_0 = arith.constant 0 : i32
    return %c0_i32, %arg0 : i32, i32
  }
  func.func @transform_4(%arg0: i32) -> (i32, i32) {
    %c1_i32 = arith.constant 1 : i32
    %0 = arith.addi %arg0, %c1_i32 : i32
    %c3_i32 = arith.constant 3 : i32
    %1 = arith.muli %0, %c3_i32 : i32
    %c5_i32 = arith.constant 5 : i32
    %2 = arith.minsi %1, %c5_i32 : i32
    %c0_i32 = arith.constant 0 : i32
    %c0_i32_0 = arith.constant 0 : i32
    return %c0_i32, %2 : i32, i32
  }
  func.func @transform_5(%arg0: i32) -> (i32, i32) {
    %c3_i32 = arith.constant 3 : i32
    %0 = arith.muli %arg0, %c3_i32 : i32
    %c1_i32 = arith.constant 1 : i32
    %1 = arith.subi %0, %c1_i32 : i32
    %c0_i32 = arith.constant 0 : i32
    %2 = arith.maxsi %1, %c0_i32 : i32
    %c0_i32_0 = arith.constant 0 : i32
    %c0_i32_1 = arith.constant 0 : i32
    return %c0_i32_0, %2 : i32, i32
  }
  func.func @transform_6(%arg0: i32) -> (i32, i32) {
    %c0_i32 = arith.constant 0 : i32
    %c0_i32_0 = arith.constant 0 : i32
    return %c0_i32, %arg0 : i32, i32
  }
  func.func @transform_7(%arg0: i32) -> (i32, i32) {
    %c1_i32 = arith.constant 1 : i32
    %0 = arith.addi %arg0, %c1_i32 : i32
    %c3_i32 = arith.constant 3 : i32
    %1 = arith.muli %0, %c3_i32 : i32
    %c5_i32 = arith.constant 5 : i32
    %2 = arith.minsi %1, %c5_i32 : i32
    %c0_i32 = arith.constant 0 : i32
    %c0_i32_0 = arith.constant 0 : i32
    return %c0_i32, %2 : i32, i32
  }
  func.func @transform_8(%arg0: i32) -> (i32, i32) {
    %c0_i32 = arith.constant 0 : i32
    %c0_i32_0 = arith.constant 0 : i32
    return %c0_i32, %arg0 : i32, i32
  }
}

module attributes {stable_mosaic.version = 11 : i64} {
  func.func @kernel(%arg0: i32, %arg1: memref<4x8xbf16, #tpu.memory_space<vmem>>, %arg2: memref<8x256xbf16, #tpu.memory_space<vmem>>, %arg3: memref<4x256xf32, #tpu.memory_space<vmem>>, %arg4: memref<4x256xf32, #tpu.memory_space<vmem>>) attributes {dimension_semantics = [#tpu.dimension_semantics<parallel>], iteration_bounds = array<i64: 2>, scalar_prefetch = 0 : i64, scratch_operands = 0 : i64, tpu.core_type = #tpu.core_type<tc>, window_params = [{pipeline_mode = #tpu.pipeline_mode<synchronous>, transform_indices = @transform_0, window_bounds = array<i64: 4, 8>}, {transform_indices = @transform_1, window_bounds = array<i64: 8, 256>}, {pipeline_mode = #tpu.pipeline_mode<synchronous>, transform_indices = @transform_2, window_bounds = array<i64: 4, 256>}, {transform_indices = @transform_3, window_bounds = array<i64: 4, 256>}]} {
    %c0 = arith.constant 0 : index
    %c0_0 = arith.constant 0 : index
    %0 = vector.load %arg1[%c0, %c0_0] : memref<4x8xbf16, #tpu.memory_space<vmem>>, vector<4x8xbf16>
    %c0_1 = arith.constant 0 : index
    %c0_2 = arith.constant 0 : index
    %1 = vector.load %arg2[%c0_1, %c0_2] : memref<8x256xbf16, #tpu.memory_space<vmem>>, vector<8x256xbf16>
    %cst = arith.constant dense<0.000000e+00> : vector<4x256xf32>
    %2 = tpu.matmul %0, %1, %cst {dimension_numbers = #tpu.dot_dimension_numbers<[1], [0], [0], [1], [0, 0, 1, 1], [], []>} : vector<4x8xbf16>, vector<8x256xbf16>, vector<4x256xf32> -> vector<4x256xf32>
    %c0_3 = arith.constant 0 : index
    %c0_4 = arith.constant 0 : index
    %3 = vector.load %arg3[%c0_3, %c0_4] : memref<4x256xf32, #tpu.memory_space<vmem>>, vector<4x256xf32>
    %4 = arith.addf %2, %3 : vector<4x256xf32>
    %c0_5 = arith.constant 0 : index
    %c0_6 = arith.constant 0 : index
    %5 = vector.load %arg4[%c0_5, %c0_6] : memref<4x256xf32, #tpu.memory_space<vmem>>, vector<4x256xf32>
    tpu.vector_store %arg4[%c0_5, %c0_6], %4 {strides = array<i32>} : memref<4x256xf32, #tpu.memory_space<vmem>>, vector<4x256xf32>,
    return
  }
  func.func @transform_0(%arg0: i32) -> (i32, i32) {
    %c0_i32 = arith.constant 0 : i32
    %c0_i32_0 = arith.constant 0 : i32
    %c0_i32_1 = arith.constant 0 : i32
    return %c0_i32, %c0_i32_0 : i32, i32
  }
  func.func @transform_1(%arg0: i32) -> (i32, i32) {
    %c0_i32 = arith.constant 0 : i32
    %c0_i32_0 = arith.constant 0 : i32
    return %c0_i32, %arg0 : i32, i32
  }
  func.func @transform_2(%arg0: i32) -> (i32, i32) {
    %c0_i32 = arith.constant 0 : i32
    %c0_i32_0 = arith.constant 0 : i32
    %c0_i32_1 = arith.constant 0 : i32
    return %c0_i32, %c0_i32_0 : i32, i32
  }
  func.func @transform_3(%arg0: i32) -> (i32, i32) {
    %c0_i32 = arith.constant 0 : i32
    %c0_i32_0 = arith.constant 0 : i32
    return %c0_i32, %arg0 : i32, i32
  }
}

</mosaic_0001>

<bundles_post_ra>
// kernel: unet_forward_nchw.13
= control target key start
LH: loop header
LB: loop body
LE: loop exit
PB: predicated region body
PF: predicated region fallthrough
CT: control target
= control target key end

     0   :  { %s922_s18 = smov 0   ;;  %s1109_s0 = inlined_call_operand.vmem [shape: bf16[8,36], index: 0, kind: input, shape index: {}]   ;;  %s1110_s1 = inlined_call_operand.vmem [shape: f32[1,768], index: 1, kind: input, shape index: {}]   ;;  %s1111_s2 = inlined_call_operand.vmem [shape: bf16[4,768], index: 2, kind: input, shape index: {}, may-alias: {2,3,4}]   ;;  %s1112_s3 = inlined_call_operand.vmem [shape: bf16[4,768], index: 3, kind: input, shape index: {}, may-alias: {2,3,4}]   ;;  %s1113_s4 = inlined_call_operand.vmem [shape: bf16[4,768], index: 4, kind: input, shape index: {}, may-alias: {2,3,4}]   ;;  %s1114_s5 = inlined_call_operand.vmem [shape: bf16[8,768], index: 5, kind: output, shape index: {}]  }
   0x1 LB: > { %s804_s19 = sadd.s32 4294967295, %s877_s18   ;;  %p810_p0 = scmp.ge.s32.totalorder %s877_s18, 1  ;;  %s877_s18 = sphi %s922_s18, %s15_s18  }
   0x2   : > { %p248_p1 = scmp.lt.s32.totalorder %s877_s18, 3 }
   0x4   : > { %p249_p2 = pnand %p810_p0, %p248_p1 }
   0x5   : > { %s296_s20 = smul.u32 (!%p249_p2), 3, %s804_s19  ;;  %v346_v0 = vlaneseq (!%p249_p2)  ;;  %v879_v1 = vmov (!%p249_p2), 1983009808   ;;  %s880_s30 = smov (!%p249_p2), 127   ;;  %vm371_vm0 = vcmask (!%p249_p2), 1039360   ;;  %vm468_vm1 = vcmask (!%p249_p2), 1041408  }
   0x6   : > { %252 = sbr.rel (%p249_p2) target bundleno = 552 (0x228), region = 40  ;;  %v344_v2 = vunpack.c.l.s4 (!%p249_p2), %v879_v1  ;;  %s881_s6 = smov (!%p249_p2), 126   ;;  %v889_v55 = vmov (!%p249_p2), 0.0   ;;  %vm481_vm2 = vcmask (!%p249_p2), 1043456   ;;  %vm464_vm3 = vcmask (!%p249_p2), 736256  }
   0x7   : > { %p297_p3 = scmp.lt.s32.totalorder (!%p249_p2), %s296_s20, 5  ;;  %v932_v3 = vshrl.u32 (!%p249_p2), %v346_v0, 7  ;;  %s811_s21 = sadd.s32 (!%p249_p2), 4294967295, %s296_s20  ;;  %839 = vmatprep.subr.bf16.mxu1 (!%p249_p2), %v889_v55  ;;  %vm387_vm4 = vcmask (!%p249_p2), 1031168   ;;  %vm490_vm5 = vcmask (!%p249_p2), 1045504   ;;  %vm403_vm6 = vcmask (!%p249_p2), 900096  }
   0x8   : > { %v345_v4 = vunpack.c.0.s8 (!%p249_p2), %v344_v2  ;;  %p303_p4 = scmp.gt.s32.totalorder (!%p249_p2), %s811_s21, 0  ;;  %p812_p5 = scmp.lt.s32.totalorder (!%p249_p2), %s811_s21, 5  ;;  %vm426_vm7 = vcmask (!%p249_p2), 883712   ;;  %vm439_vm8 = vcmask (!%p249_p2), 752640   ;;  %vm413_vm9 = vcmask (!%p249_p2), 891904  }
   0x9   : > { %s319_s7 = sadd.s32 (!%p249_p2), 1, %s804_s19  ;;  %s882_s9 = smov (!%p249_p2), 110   ;;  %vm452_vm10 = vcmask (!%p249_p2), 744448   ;;  %vm891_vm11 = vmmov (!%p249_p2), 0   ;;  %vm560_vm12 = vcmask (!%p249_p2), 154624   ;;  %vm576_vm13 = vcmask (!%p249_p2), 293888  }
   0xa   : > { %v348_v5 = vsub.s32 (!%p249_p2), %v345_v4, %v932_v3  ;;  %s320_s8 = smul.u32 (!%p249_p2), 3, %s319_s7  ;;  %s883_s10 = smov (!%p249_p2), 109   ;;  %845 = vmatprep.mubr.msk.bf16.mxu1 (!%p249_p2), %vm891_vm11, %v889_v55 }
   0xb   : > { %s884_s12 = smov (!%p249_p2), 108   ;;  %s885_s16 = smov (!%p249_p2), 92  }
   0xc   : > { %p321_p6 = scmp.lt.s32.totalorder (!%p249_p2), %s320_s8, 5  ;;  %s886_s17 = smov (!%p249_p2), 91  }
   0xd   : > { %s1116_s20 = smov (!%p297_p3, %s296_s20), 5  ;;  %s1118_s21 = smov (!%p303_p4, %s811_s21), 0 }
   0xe   : > { %s818_s22 = sshll.u32 %s1116_s20, 1  ;;  %s1120_s21 = smov (!%p812_p5, %s1118_s21), 5 }
   0xf   : > { %s317_s25 = scalar_lea.vmem %s1112_s3, %s818_s22  ;;  %s817_s26 = sshll.u32 %s1120_s21, 1 }
  0x10   : > { %v339_v6 = vld [vmem:[%s317_s25] sm:$0x3f]  ;;  %s308_s29 = scalar_lea.vmem %s1111_s2, %s817_s26  ;;  %s1122_s8 = smov (!%p321_p6, %s320_s8), 5 }
  0x11   : > { %v941_v7 = vrot.slane %v339_v6, %v348_v5  ;;  %v951_v10 = vld [vmem:[%s308_s29] sm:$0x3]  ;;  %v342_v13 = vcombine.high %v339_v6, %v339_v6  ;;  %s1124_s8 = smov (!%p321_p6, %s1122_s8), 5  ;;  %s887_s19 = smov 90  }
  0x12   : > { %v359_v12 = vrot.slane %v951_v10, 6  ;;  %v375_v14 = vrot.slane %v951_v10, 4  ;;  %v391_v22 = vrot.slane %v951_v10, 2  ;;  %s822_s11 = sshll.u32 %s1124_s8, 1  ;;  %s888_s21 = smov 19  }
  0x13   : > { %v360_v8 = vrot.slane %v941_v7, 6  ;;  %v946_v9 = vcombine.high %v941_v7, %v941_v7  ;;  %v376_v11 = vrot.slane %v941_v7, 4  ;;  %v958_v16 = vrot.slane %v342_v13, %v348_v5  ;;  %s326_s15 = scalar_lea.vmem %s1113_s4, %s822_s11  ;;  %s299_s26 = scalar_lea.vmem %s1110_s1, %s1116_s20 }
  0x14   : > { %v392_v19 = vrot.slane %v941_v7, 2  ;;  %v340_v23 = vld [vmem:[%s326_s15] sm:$0x3]  ;;  %s823_s27 = sshll.u32 %s1116_s20, 2 }
  0x15   : > { %365 = vrot.lane.b32.xlu0 %v360_v8, %s880_s30  ;;  %383 = vrot.lane.b32.xlu1 %v946_v9, %s881_s6  ;;  %v361_v15 = vrot.slane %v946_v9, 6  ;;  %v378_v17 = vrot.slane %v958_v16, 4  ;;  %v362_v18 = vrot.slane %v958_v16, 6  ;;  %v393_v20 = vrot.slane %v946_v9, 2 }
  0x16   : > { %v394_v21 = vrot.slane %v958_v16, 2  ;;  %v417_v24 = vrot.slane %v340_v23, 6  ;;  %v430_v25 = vrot.slane %v340_v23, 4  ;;  %v443_v26 = vrot.slane %v340_v23, 2 }
  0x19   : > { %381 = vrot.lane.b32.xlu0 %v376_v11, %s881_s6  ;;  %363 = vrot.lane.b32.xlu1 %v359_v12, %s880_s30 }
  0x1d   : > { %379 = vrot.lane.b32.xlu1 %v375_v14, %s881_s6  ;;  %367 = vrot.lane.b32.xlu0 %v361_v15, %s880_s30 }
  0x21   : > { %385 = vrot.lane.b32.xlu0 %v378_v17, %s881_s6  ;;  %369 = vrot.lane.b32.xlu1 %v362_v18, %s880_s30  ;;  %s335_s30 = scalar_lea.vmem %s1114_s5, %s823_s27 }
  0x25   : > { %397 = vrot.lane.b32.xlu0 %v392_v19, %s882_s9  ;;  %399 = vrot.lane.b32.xlu1 %v393_v20, %s882_s9 }
  0x29   : > { %401 = vrot.lane.b32.xlu0 %v394_v21, %s882_s9  ;;  %395 = vrot.lane.b32.xlu1 %v391_v22, %s882_s9 }
  0x2d   : > { %407 = vrot.lane.b32.xlu0 %v941_v7, %s883_s10  ;;  %409 = vrot.lane.b32.xlu1 %v946_v9, %s883_s10 }
  0x31   : > { %411 = vrot.lane.b32.xlu0 %v958_v16, %s883_s10  ;;  %418 = vrot.lane.b32.xlu1 %v360_v8, %s884_s12 }
  0x35   : > { %420 = vrot.lane.b32.xlu0 %v361_v15, %s884_s12  ;;  %422 = vrot.lane.b32.xlu1 %v362_v18, %s884_s12 }
  0x39   : > { %431 = vrot.lane.b32.xlu0 %v376_v11, %s885_s16  ;;  %433 = vrot.lane.b32.xlu1 %v946_v9, %s885_s16 }
  0x3d   : > { %435 = vrot.lane.b32.xlu0 %v378_v17, %s885_s16  ;;  %424 = vrot.lane.b32.xlu1 %v417_v24, %s884_s12 }
  0x41   : > { %444 = vrot.lane.b32.xlu0 %v392_v19, %s886_s17  ;;  %446 = vrot.lane.b32.xlu1 %v393_v20, %s886_s17 }
  0x45   : > { %448 = vrot.lane.b32.xlu0 %v394_v21, %s886_s17  ;;  %437 = vrot.lane.b32.xlu1 %v430_v25, %s885_s16  ;;  %v890_v25 = vmov 0  }
  0x46   : > { %621 = vmatprep.mubr.bf16.mxu0 %v890_v25 }
  0x49   : > { %450 = vrot.lane.b32.xlu0 %v443_v26, %s886_s17  ;;  %456 = vrot.lane.b32.xlu1 %v941_v7, %s887_s19 }
  0x4d   : > { %458 = vrot.lane.b32.xlu0 %v946_v9, %s887_s19  ;;  %460 = vrot.lane.b32.xlu1 %v958_v16, %s887_s19 }
  0x51   : > { %462 = vrot.lane.b32.xlu0 %v340_v23, %s887_s19 }
  0x87   : > { %v366_v27 = vpop.permute.xlu0 %365  ;;  %v384_v28 = vpop.permute.xlu1 %383 }
  0x8b   : > { %v382_v29 = vpop.permute.xlu0 %381  ;;  %v364_v30 = vpop.permute.xlu1 %363 }
  0x8c   : > { %v372_v57 = vsel %vm371_vm0, %v364_v30, %v366_v27 }
  0x8d   : > { %v471_v4 = vsel %vm468_vm1, %v951_v10, %v372_v57  ;;  %v389_v10 = vsel %vm387_vm4, %v382_v29, %v384_v28 }
  0x8f   : > { %v380_v31 = vpop.permute.xlu1 %379  ;;  %v368_v32 = vpop.permute.xlu0 %367 }
  0x90   : > { %v388_v59 = vsel %vm387_vm4, %v380_v31, %v382_v29  ;;  %v373_v60 = vsel %vm371_vm0, %v366_v27, %v368_v32 }
  0x91   : > { %v474_v5 = vsel %vm468_vm1, %v941_v7, %v373_v60  ;;  %v483_v8 = vsel %vm481_vm2, %v471_v4, %v388_v59 }
  0x93   : > { %v386_v33 = vpop.permute.xlu0 %385  ;;  %v370_v34 = vpop.permute.xlu1 %369 }
  0x94   : > { %v374_v63 = vsel %vm371_vm0, %v368_v32, %v370_v34  ;;  %v480_v0 = vsel %vm468_vm1, %v958_v16, %v370_v34  ;;  %v390_v6 = vsel %vm387_vm4, %v384_v28, %v386_v33 }
  0x95   : > { %v477_v11 = vsel %vm468_vm1, %v946_v9, %v374_v63  ;;  %v489_v14 = vsel %vm481_vm2, %v480_v0, %v386_v33  ;;  %v485_v9 = vsel %vm481_vm2, %v474_v5, %v389_v10 }
  0x96   : > { %v487_v18 = vsel %vm481_vm2, %v477_v11, %v390_v6  ;;  %v679_v6 = vld [vmem:[%s299_s26] sm:$0x7] }
  0x97   : > { %v398_v35 = vpop.permute.xlu0 %397  ;;  %v400_v36 = vpop.permute.xlu1 %399  ;;  %vm680_vm14 = vcmp.gt.f32.partialorder %v679_v6, 0.0 }
  0x98   : > { %v405_v12 = vsel %vm403_vm6, %v398_v35, %v400_v36  ;;  %v681_v11 = vsel %vm680_vm14, 1, %v890_v25 }
  0x99   : > { %v494_v17 = vsel %vm490_vm5, %v485_v9, %v405_v12 }
  0x9b   : > { %v402_v37 = vpop.permute.xlu0 %401  ;;  %v396_v38 = vpop.permute.xlu1 %395 }
  0x9c   : > { %v404_v1 = vsel %vm403_vm6, %v396_v38, %v398_v35  ;;  %v406_v15 = vsel %vm403_vm6, %v400_v36, %v402_v37  ;;  %v498_v7 = vsel %vm490_vm5, %v489_v14, %v402_v37 }
  0x9d   : > { %v492_v13 = vsel %vm490_vm5, %v483_v8, %v404_v1  ;;  %v496_v21 = vsel %vm490_vm5, %v487_v18, %v406_v15  ;;  %v527_v1 = vld [vmem:[%s1109_s0] sm:$0xf]  ;;  %v684_v8 = vsub.s32 0, %v932_v3 }
  0x9f   : > { %v978_v39 = vpop.permute.xlu0 %407  ;;  %v980_v40 = vpop.permute.xlu1 %409  ;;  %v685_v12 = vrot.slane %v681_v11, %v684_v8 }
  0xa0   : > { %v414_v22 = vsel %vm413_vm9, %v978_v39, %v980_v40 }
  0xa1   : > { %vm694_vm15 = vcmp.eq.s32.totalorder %v685_v12, 1 }
  0xa3   : > { %v982_v41 = vpop.permute.xlu0 %411  ;;  %v419_v42 = vpop.permute.xlu1 %418 }
  0xa4   : > { %v501_v56 = vsel %vm468_vm1, %v978_v39, %v419_v42  ;;  %v415_v26 = vsel %vm413_vm9, %v980_v40, %v982_v41 }
  0xa7   : > { %v421_v43 = vpop.permute.xlu0 %420  ;;  %v984_v44 = vpop.permute.xlu1 %422 }
  0xa8   : > { %v427_v16 = vsel %vm426_vm7, %v419_v42, %v421_v43  ;;  %v428_v19 = vsel %vm426_vm7, %v421_v43, %v984_v44 }
  0xa9   : > { %v504_v27 = vsel %vm468_vm1, %v414_v22, %v427_v16  ;;  %v507_v29 = vsel %vm468_vm1, %v415_v26, %v428_v19 }
  0xab   : > { %v432_v45 = vpop.permute.xlu0 %431  ;;  %v434_v46 = vpop.permute.xlu1 %433 }
  0xac   : > { %v512_v58 = vsel %vm481_vm2, %v501_v56, %v432_v45  ;;  %v440_v20 = vsel %vm439_vm8, %v432_v45, %v434_v46 }
  0xad   : > { %v514_v30 = vsel %vm481_vm2, %v504_v27, %v440_v20 }
  0xaf   : > { %v986_v47 = vpop.permute.xlu0 %435  ;;  %v988_v48 = vpop.permute.xlu1 %424 }
  0xb0   : > { %v441_v23 = vsel %vm439_vm8, %v434_v46, %v986_v47  ;;  %v429_v31 = vsel %vm426_vm7, %v984_v44, %v988_v48 }
  0xb1   : > { %v516_v33 = vsel %vm481_vm2, %v507_v29, %v441_v23  ;;  %v510_v38 = vsel %vm468_vm1, %v982_v41, %v429_v31 }
  0xb3   : > { %v445_v49 = vpop.permute.xlu0 %444  ;;  %v447_v50 = vpop.permute.xlu1 %446 }
  0xb4   : > { %v520_v62 = vsel %vm490_vm5, %v512_v58, %v445_v49  ;;  %v453_v24 = vsel %vm452_vm10, %v445_v49, %v447_v50 }
  0xb5   : > { %v522_v32 = vsel %vm490_vm5, %v514_v30, %v453_v24 }
  0xb7   : > { %v990_v51 = vpop.permute.xlu0 %448  ;;  %v992_v52 = vpop.permute.xlu1 %437 }
  0xb8   : > { %v454_v28 = vsel %vm452_vm10, %v447_v50, %v990_v51  ;;  %v442_v34 = vsel %vm439_vm8, %v986_v47, %v992_v52 }
  0xb9   : > { %v524_v36 = vsel %vm490_vm5, %v516_v33, %v454_v28  ;;  %v518_v40 = vsel %vm481_vm2, %v510_v38, %v442_v34 }
  0xbb   : > { %v994_v53 = vpop.permute.xlu0 %450  ;;  %v457_v54 = vpop.permute.xlu1 %456 }
  0xbc   : > { %552 = vrot.lane.b32.xlu1 %v457_v54, %s888_s21  ;;  %v455_v37 = vsel %vm452_vm10, %v990_v51, %v994_v53 }
  0xbd   : > { %v526_v43 = vsel %vm490_vm5, %v518_v40, %v455_v37 }
  0xbf   : > { %v459_v61 = vpop.permute.xlu0 %458  ;;  %v461_v35 = vpop.permute.xlu1 %460 }
  0xc0   : > { %544 = vrot.lane.b32.xlu1 %v520_v62, %s888_s21  ;;  %v465_v2 = vsel %vm464_vm3, %v457_v54, %v459_v61  ;;  %v466_v39 = vsel %vm464_vm3, %v459_v61, %v461_v35 }
  0xc1   : > { %554 = vrot.lane.b32.xlu0 %v465_v2, %s888_s21 }
  0xc3   : > { %v463_v42 = vpop.permute.xlu0 %462 }
  0xc4   : > { %536 = vrot.lane.b32.xlu1 %v492_v13, %s888_s21  ;;  %v467_v44 = vsel %vm464_vm3, %v461_v35, %v463_v42  ;;  %v692_v13 = vsub.s32 2, %v932_v3 }
  0xc5   : > { %542 = vrot.lane.b32.xlu0 %v498_v7, %s888_s21 }
  0xc6   : > { %v693_v15 = vrot.slane %v681_v11, %v692_v13 }
  0xc8   : > { %538 = vrot.lane.b32.xlu1 %v494_v17, %s888_s21  ;;  %vm696_vm3 = vcmp.eq.s32.totalorder %v693_v15, 1 }
  0xc9   : > { %540 = vrot.lane.b32.xlu0 %v496_v21, %s888_s21 }
  0xcc   : > { %546 = vrot.lane.b32.xlu1 %v522_v32, %s888_s21 }
  0xcd   : > { %548 = vrot.lane.b32.xlu0 %v524_v36, %s888_s21 }
  0xd0   : > { %556 = vrot.lane.b32.xlu1 %v466_v39, %s888_s21 }
  0xd1   : > { %550 = vrot.lane.b32.xlu0 %v526_v43, %s888_s21 }
  0xd5   : > { %558 = vrot.lane.b32.xlu0 %v467_v44, %s888_s21 }
 0x12e   : > { %v553_v45 = vpop.permute.xlu1 %552 }
 0x132   : > { %v545_v46 = vpop.permute.xlu1 %544 }
 0x133   : > { %v555_v47 = vpop.permute.xlu0 %554 }
 0x134   : > { %v567_v59 = vsel %vm560_vm12, %v553_v45, %v555_v47 }
 0x135   : > { %v581_v0 = vsel %vm468_vm1, %v567_v59, 0 }
 0x136   : > { %v537_v48 = vpop.permute.xlu1 %536 }
 0x137   : > { %v543_v41 = vpop.permute.xlu0 %542 }
 0x13a   : > { %v539_v49 = vpop.permute.xlu1 %538 }
 0x13b   : > { %v541_v50 = vpop.permute.xlu0 %540  ;;  %v561_v53 = vsel %vm560_vm12, %v537_v48, %v539_v49 }
 0x13c   : > { %v562_v51 = vsel %vm560_vm12, %v539_v49, %v541_v50  ;;  %v563_v52 = vsel %vm560_vm12, %v541_v50, %v543_v41 }
 0x13d   : > { %589 = vmatprep.subr.bf16.mxu0 %v562_v51  ;;  %840 = vmatpush3.bf16.msra.mxu1 %v563_v52 }
 0x13e   : > { %590 = vmatpush1.bf16.msra.mxu0 %v561_v53  ;;  %v547_v54 = vpop.permute.xlu1 %546  ;;  %841 = vmatprep.subr.bf16.mxu1 %v889_v55 }
 0x13f   : > { %v549_v56 = vpop.permute.xlu0 %548  ;;  %v564_v58 = vsel %vm560_vm12, %v545_v46, %v547_v54 }
 0x140   : > { %v565_v57 = vsel %vm560_vm12, %v547_v54, %v549_v56 }
 0x141   : > { %591 = vmatprep.subr.bf16.mxu0 %v565_v57 }
 0x142   : > { %592 = vmatpush1.bf16.msra.mxu0 %v564_v58  ;;  %v557_v60 = vpop.permute.xlu1 %556 }
 0x143   : > { %v568_v61 = vsel %vm560_vm12, %v555_v47, %v557_v60  ;;  %v551_v62 = vpop.permute.xlu0 %550 }
 0x144   : > { %824 = vmatprep.subr.msk.bf16.mxu0 %vm468_vm1, %v568_v61  ;;  %v566_v63 = vsel %vm560_vm12, %v549_v56, %v551_v62 }
 0x145   : > { %842 = vmatpush3.bf16.msra.mxu1 %v566_v63 }
 0x146   : > { %594 = vmatpush1.bf16.msra.mxu0 %v581_v0  ;;  %843 = vmatprep.subr.bf16.mxu1 %v889_v55  ;;  %v688_v55 = vsub.s32 1, %v932_v3 }
 0x147   : > { %v559_v2 = vpop.permute.xlu0 %558 }
 0x148   : > { %v569_v4 = vsel %vm560_vm12, %v557_v60, %v559_v2  ;;  %v689_v14 = vrot.slane %v681_v11, %v688_v55 }
 0x149   : > { %825 = vmatmul.mubr.msk.bf16.vlgmr.msra.gmra.mrb[0].mxu0 %vm576_vm13, %v527_v1  ;;  %v587_v5 = vsel %vm468_vm1, %v569_v4, 0 }
 0x14a   : > { %844 = vmatpush3.bf16.msra.mxu1 %v587_v5  ;;  %vm695_vm1 = vcmp.eq.s32.totalorder %v689_v14, 1 }
 0x14d   : > { %846 = vmatmul.mubr.msk.bf16.vlgmr.msra.gmra.mrb[0].mxu1 %vm576_vm13, %v527_v1 }
 0x21c   : > { %v623_v10 = vpop.f32.mrb[0].mxu0 }
 0x21d   : > { %vm670_vm0 = vcmp.gt.f32.partialorder %v623_v10, 0.0  ;;  %v673_v7 = vmul.f32 0.2, %v623_v10  ;;  %v625_v9 = vpop.f32.mrb[1].mxu0 }
 0x21e   : > { %vm671_vm2 = vcmp.gt.f32.partialorder %v625_v9, 0.0  ;;  %v674_v16 = vmul.f32 0.2, %v625_v9  ;;  %v627_v17 = vpop.f32.mrb[2].mxu0 }
 0x21f   : > { %v676_v18 = vsel %vm670_vm0, %v623_v10, %v673_v7  ;;  %v628_v19 = vpop.f32.mrb[3].mxu0 }
 0x220   : > { %v697_v20 = vsel %vm694_vm15, %v676_v18, 0.0  ;;  %v677_v21 = vsel %vm671_vm2, %v625_v9, %v674_v16  ;;  %v664_v22 = vpop.f32.mrb[0].mxu1 }
 0x221   : > { %v698_v3 = vsel %vm695_vm1, %v677_v21, 0.0  ;;  %vm672_vm4 = vcmp.gt.f32.partialorder %v664_v22, 0.0  ;;  %v675_v23 = vmul.f32 0.2, %v664_v22  ;;  %v847_v24 = vpop.f32.mrb[1].mxu1 }
 0x222   : > { %v833_v25 = vpack.c.bf16 %v698_v3, %v697_v20  ;;  %v667_v26 = vpop.f32.mrb[2].mxu1 }
 0x223   : > { %v678_v27 = vsel %vm672_vm4, %v664_v22, %v675_v23  ;;  %v848_v28 = vpop.f32.mrb[3].mxu1 }
 0x224   : > { %713 = vst [vmem:[%s335_s30] sm:$0xff] %v833_v25  ;;  %v699_v29 = vsel %vm696_vm3, %v678_v27, 0.0 }
 0x225   : > { %v834_v30 = vpack.c.bf16 %v699_v29, %v699_v29 }
 0x227   : > { %714 = vst [vmem:[%s335_s30 + $0x8] sm:$0xf] %v834_v30 }
 0x228 PF: > { %s15_s18 = sadd.s32 1, %s877_s18  }
 0x229   : > { %p12_p7 = scmp.ge.s32.totalorder %s15_s18, 4  }
 0x22b   :  { %14 = sbr.rel (!%p12_p7) target bundleno = 1 (0x1), region = 79 }

// kernel: unet_forward_nchw.14
= control target key start
LH: loop header
LB: loop body
LE: loop exit
PB: predicated region body
PF: predicated region fallthrough
CT: control target
= control target key end

     0   :  { %s939_s18 = smov 0   ;;  %s1098_s0 = inlined_call_operand.vmem [shape: bf16[8,72], index: 0, kind: input, shape index: {}]   ;;  %s1099_s1 = inlined_call_operand.vmem [shape: f32[1,768], index: 1, kind: input, shape index: {}]   ;;  %s1100_s2 = inlined_call_operand.vmem [shape: bf16[8,768], index: 2, kind: input, shape index: {}, may-alias: {2,3,4}]   ;;  %s1101_s3 = inlined_call_operand.vmem [shape: bf16[8,768], index: 3, kind: input, shape index: {}, may-alias: {2,3,4}]   ;;  %s1102_s4 = inlined_call_operand.vmem [shape: bf16[8,768], index: 4, kind: input, shape index: {}, may-alias: {2,3,4}]   ;;  %s1103_s5 = inlined_call_operand.vmem [shape: bf16[8,768], index: 5, kind: output, shape index: {}]  }
   0x1 LB: > { %s812_s19 = sadd.s32 4294967295, %s895_s18   ;;  %p818_p0 = scmp.ge.s32.totalorder %s895_s18, 1  ;;  %s895_s18 = sphi %s939_s18, %s15_s18  }
   0x2   : > { %p248_p1 = scmp.lt.s32.totalorder %s895_s18, 3 }
   0x4   : > { %p249_p2 = pnand %p818_p0, %p248_p1 }
   0x5   : > { %s296_s20 = smul.u32 (!%p249_p2), 3, %s812_s19  ;;  %s897_s26 = smov (!%p249_p2), 127   ;;  %vm450_vm0 = vcmask (!%p249_p2), 1043456   ;;  %v906_v15 = vmov (!%p249_p2), 0.0   ;;  %vm363_vm1 = vcmask (!%p249_p2), 1039360   ;;  %vm387_vm2 = vcmask (!%p249_p2), 900096  }
   0x6   : > { %252 = sbr.rel (%p249_p2) target bundleno = 542 (0x21e), region = 40  ;;  %s898_s6 = smov (!%p249_p2), 126   ;;  %852 = vmatprep.subr.bf16.mxu1 (!%p249_p2), %v906_v15  ;;  %vm375_vm3 = vcmask (!%p249_p2), 1031168   ;;  %vm410_vm4 = vcmask (!%p249_p2), 883712   ;;  %vm397_vm5 = vcmask (!%p249_p2), 891904   ;;  %vm422_vm6 = vcmask (!%p249_p2), 752640  }
   0x7   : > { %p297_p3 = scmp.lt.s32.totalorder (!%p249_p2), %s296_s20, 5  ;;  %s819_s21 = sadd.s32 (!%p249_p2), 4294967295, %s296_s20  ;;  %vm434_vm7 = vcmask (!%p249_p2), 744448   ;;  %vm446_vm8 = vcmask (!%p249_p2), 736256   ;;  %vm908_vm9 = vmmov (!%p249_p2), 0   ;;  %vm556_vm10 = vcmask (!%p249_p2), 154624  }
   0x8   : > { %p303_p4 = scmp.gt.s32.totalorder (!%p249_p2), %s819_s21, 0  ;;  %p820_p5 = scmp.lt.s32.totalorder (!%p249_p2), %s819_s21, 5  ;;  %862 = vmatprep.mubr.msk.bf16.mxu1 (!%p249_p2), %vm908_vm9, %v906_v15  ;;  %vm584_vm11 = vcmask (!%p249_p2), 588800  }
   0x9   : > { %s319_s7 = sadd.s32 (!%p249_p2), 1, %s812_s19  ;;  %s899_s8 = smov (!%p249_p2), 110  }
   0xa   : > { %s320_s9 = smul.u32 (!%p249_p2), 3, %s319_s7  ;;  %s900_s10 = smov (!%p249_p2), 109  }
   0xb   : > { %s901_s15 = smov (!%p249_p2), 108   ;;  %s902_s16 = smov (!%p249_p2), 92  }
   0xc   : > { %p321_p6 = scmp.lt.s32.totalorder (!%p249_p2), %s320_s9, 5  ;;  %s903_s17 = smov (!%p249_p2), 91  }
   0xd   : > { %s1105_s20 = smov (!%p297_p3, %s296_s20), 5  ;;  %s1107_s21 = smov (!%p303_p4, %s819_s21), 0 }
   0xe   : > { %s826_s22 = sshll.u32 %s1105_s20, 2  ;;  %s1109_s21 = smov (!%p820_p5, %s1107_s21), 5 }
   0xf   : > { %s317_s25 = scalar_lea.vmem %s1101_s3, %s826_s22  ;;  %s825_s27 = sshll.u32 %s1109_s21, 2 }
  0x10   : > { %v886_v0 = vld [vmem:[%s317_s25 + $0x8] ss:$0 sps:$4 sm:$0xff]   ;;  %v339_v1 = vld [vmem:[%s317_s25] sm:$0xff]  ;;  %s308_s30 = scalar_lea.vmem %s1100_s2, %s825_s27  ;;  %s1111_s9 = smov (!%p321_p6, %s320_s9), 5 }
  0x11   : > { %v955_v2 = vcombine.low %v339_v1, %v339_v1  ;;  %361 = vrot.lane.b32.xlu1 %v886_v0, %s897_s26  ;;  %v957_v3 = vcombine.high %v339_v1, %v339_v1  ;;  %v965_v4 = vld [vmem:[%s308_s30] sm:$0xf]  ;;  %s1113_s9 = smov (!%p321_p6, %s1111_s9), 5  ;;  %s904_s19 = smov 90  }
  0x12   : > { %v351_v5 = vrot.slane %v965_v4, 4  ;;  %s830_s11 = sshll.u32 %s1113_s9, 2  ;;  %s905_s21 = smov 19  }
  0x13   : > { %357 = vrot.lane.b32.xlu0 %v955_v2, %s897_s26  ;;  %s326_s14 = scalar_lea.vmem %s1102_s4, %s830_s11  ;;  %s299_s27 = scalar_lea.vmem %s1099_s1, %s1105_s20 }
  0x14   : > { %v341_v6 = vld [vmem:[%s326_s14] sm:$0xf]  ;;  %s335_s30 = scalar_lea.vmem %s1103_s5, %s826_s22 }
  0x15   : > { %371 = vrot.lane.b32.xlu1 %v957_v3, %s898_s6  ;;  %v401_v7 = vrot.slane %v341_v6, 4 }
  0x17   : > { %359 = vrot.lane.b32.xlu0 %v957_v3, %s897_s26 }
  0x19   : > { %381 = vrot.lane.b32.xlu1 %v955_v2, %s899_s8 }
  0x1b   : > { %369 = vrot.lane.b32.xlu0 %v955_v2, %s898_s6 }
  0x1d   : > { %355 = vrot.lane.b32.xlu1 %v351_v5, %s897_s26 }
  0x1f   : > { %373 = vrot.lane.b32.xlu0 %v886_v0, %s898_s6 }
  0x21   : > { %385 = vrot.lane.b32.xlu1 %v886_v0, %s899_s8 }
  0x23   : > { %383 = vrot.lane.b32.xlu0 %v957_v3, %s899_s8 }
  0x25   : > { %379 = vrot.lane.b32.xlu1 %v351_v5, %s899_s8 }
  0x27   : > { %367 = vrot.lane.b32.xlu0 %v965_v4, %s898_s6 }
  0x29   : > { %393 = vrot.lane.b32.xlu1 %v957_v3, %s900_s10 }
  0x2b   : > { %391 = vrot.lane.b32.xlu0 %v955_v2, %s900_s10 }
  0x2d   : > { %402 = vrot.lane.b32.xlu1 %v955_v2, %s901_s15 }
  0x2f   : > { %395 = vrot.lane.b32.xlu0 %v886_v0, %s900_s10 }
  0x31   : > { %406 = vrot.lane.b32.xlu1 %v886_v0, %s901_s15 }
  0x33   : > { %404 = vrot.lane.b32.xlu0 %v957_v3, %s901_s15 }
  0x35   : > { %414 = vrot.lane.b32.xlu1 %v955_v2, %s902_s16 }
  0x37   : > { %408 = vrot.lane.b32.xlu0 %v401_v7, %s901_s15 }
  0x39   : > { %418 = vrot.lane.b32.xlu1 %v886_v0, %s902_s16 }
  0x3b   : > { %416 = vrot.lane.b32.xlu0 %v957_v3, %s902_s16 }
  0x3d   : > { %428 = vrot.lane.b32.xlu1 %v957_v3, %s903_s17 }
  0x3f   : > { %426 = vrot.lane.b32.xlu0 %v955_v2, %s903_s17 }
  0x41   : > { %420 = vrot.lane.b32.xlu1 %v341_v6, %s902_s16 }
  0x43   : > { %430 = vrot.lane.b32.xlu0 %v886_v0, %s903_s17 }
  0x45   : > { %438 = vrot.lane.b32.xlu1 %v955_v2, %s904_s19 }
  0x47   : > { %432 = vrot.lane.b32.xlu0 %v401_v7, %s903_s17  ;;  %v907_v7 = vmov 0  }
  0x48   : > { %629 = vmatprep.mubr.bf16.mxu0 %v907_v7 }
  0x49   : > { %442 = vrot.lane.b32.xlu1 %v886_v0, %s904_s19 }
  0x4b   : > { %440 = vrot.lane.b32.xlu0 %v957_v3, %s904_s19 }
  0x4f   : > { %444 = vrot.lane.b32.xlu0 %v341_v6, %s904_s19 }
  0x83   : > { %v362_v8 = vpop.permute.xlu1 %361 }
  0x84   : > { %v462_v10 = vsel %vm450_vm0, %v886_v0, %v362_v8 }
  0x85   : > { %v985_v9 = vpop.permute.xlu0 %357  ;;  %522 = vrot.lane.b32.xlu0 %v462_v10, %s905_s21 }
  0x87   : > { %v372_v11 = vpop.permute.xlu1 %371 }
  0x89   : > { %v360_v12 = vpop.permute.xlu0 %359 }
  0x8a   : > { %v366_v21 = vsel %vm363_vm1, %v360_v12, %v362_v8  ;;  %v365_v33 = vsel %vm363_vm1, %v985_v9, %v360_v12 }
  0x8b   : > { %v989_v13 = vpop.permute.xlu1 %381  ;;  %v459_v24 = vsel %vm450_vm0, %v957_v3, %v366_v21  ;;  %v456_v36 = vsel %vm450_vm0, %v955_v2, %v365_v33 }
  0x8d   : > { %v991_v14 = vpop.permute.xlu0 %369 }
  0x8e   : > { %v377_v41 = vsel %vm375_vm3, %v991_v14, %v372_v11 }
  0x8f   : > { %v356_v16 = vpop.permute.xlu1 %355 }
  0x90   : > { %v364_v55 = vsel %vm363_vm1, %v356_v16, %v985_v9 }
  0x91   : > { %v374_v17 = vpop.permute.xlu0 %373  ;;  %v453_v60 = vsel %vm450_vm0, %v965_v4, %v364_v55  ;;  %v690_v55 = vlaneseq }
  0x92   : > { %v378_v26 = vsel %vm375_vm3, %v372_v11, %v374_v17 }
  0x93   : > { %v386_v18 = vpop.permute.xlu1 %385 }
  0x94   : > { %v474_v20 = vsel %vm450_vm0, %v374_v17, %v386_v18 }
  0x95   : > { %v384_v19 = vpop.permute.xlu0 %383  ;;  %530 = vrot.lane.b32.xlu0 %v474_v20, %s905_s21 }
  0x96   : > { %v390_v25 = vsel %vm387_vm2, %v384_v19, %v386_v18  ;;  %v389_v37 = vsel %vm387_vm2, %v989_v13, %v384_v19 }
  0x97   : > { %v380_v22 = vpop.permute.xlu1 %379  ;;  %v471_v29 = vsel %vm450_vm0, %v378_v26, %v390_v25  ;;  %v468_v44 = vsel %vm450_vm0, %v377_v41, %v389_v37 }
  0x98   : > { %v388_v62 = vsel %vm387_vm2, %v380_v22, %v989_v13 }
  0x99   : > { %v368_v23 = vpop.permute.xlu0 %367  ;;  %520 = vrot.lane.b32.xlu0 %v459_v24, %s905_s21 }
  0x9a   : > { %v376_v63 = vsel %vm375_vm3, %v368_v23, %v991_v14 }
  0x9b   : > { %v394_v27 = vpop.permute.xlu1 %393  ;;  %v465_v1 = vsel %vm450_vm0, %v376_v63, %v388_v62 }
  0x9d   : > { %v392_v28 = vpop.permute.xlu0 %391  ;;  %528 = vrot.lane.b32.xlu0 %v471_v29, %s905_s21 }
  0x9e   : > { %v398_v46 = vsel %vm397_vm5, %v392_v28, %v394_v27 }
  0x9f   : > { %v403_v30 = vpop.permute.xlu1 %402 }
  0xa0   : > { %v477_v32 = vsel %vm450_vm0, %v392_v28, %v403_v30 }
  0xa1   : > { %v396_v31 = vpop.permute.xlu0 %395  ;;  %532 = vrot.lane.b32.xlu1 %v477_v32, %s905_s21 }
  0xa2   : > { %v399_v38 = vsel %vm397_vm5, %v394_v27, %v396_v31 }
  0xa3   : > { %v407_v34 = vpop.permute.xlu1 %406 }
  0xa5   : > { %v405_v35 = vpop.permute.xlu0 %404  ;;  %518 = vrot.lane.b32.xlu1 %v456_v36, %s905_s21 }
  0xa6   : > { %v412_v39 = vsel %vm410_vm4, %v405_v35, %v407_v34  ;;  %v411_v45 = vsel %vm410_vm4, %v403_v30, %v405_v35 }
  0xa7   : > { %v483_v40 = vsel %vm450_vm0, %v399_v38, %v412_v39  ;;  %v415_v42 = vpop.permute.xlu1 %414  ;;  %v480_v49 = vsel %vm450_vm0, %v398_v46, %v411_v45 }
  0xa8   : > { %536 = vrot.lane.b32.xlu0 %v483_v40, %s905_s21 }
  0xa9   : > { %v409_v43 = vpop.permute.xlu0 %408  ;;  %526 = vrot.lane.b32.xlu1 %v468_v44, %s905_s21 }
  0xaa   : > { %v413_v5 = vsel %vm410_vm4, %v407_v34, %v409_v43 }
  0xab   : > { %v419_v47 = vpop.permute.xlu1 %418  ;;  %v486_v8 = vsel %vm450_vm0, %v396_v31, %v413_v5 }
  0xad   : > { %v417_v48 = vpop.permute.xlu0 %416  ;;  %534 = vrot.lane.b32.xlu1 %v480_v49, %s905_s21 }
  0xae   : > { %v423_v52 = vsel %vm422_vm6, %v415_v42, %v417_v48  ;;  %v424_v57 = vsel %vm422_vm6, %v417_v48, %v419_v47 }
  0xaf   : > { %v429_v50 = vpop.permute.xlu1 %428 }
  0xb1   : > { %v427_v51 = vpop.permute.xlu0 %426 }
  0xb2   : > { %v435_v53 = vsel %vm434_vm7, %v427_v51, %v429_v50  ;;  %v489_v6 = vsel %vm450_vm0, %v415_v42, %v427_v51 }
  0xb3   : > { %v492_v54 = vsel %vm450_vm0, %v423_v52, %v435_v53  ;;  %v421_v59 = vpop.permute.xlu1 %420  ;;  %v499_v52 = vld [vmem:[%s1098_s0] sm:$0xf] }
  0xb4   : > { %542 = vrot.lane.b32.xlu1 %v492_v54, %s905_s21  ;;  %v425_v11 = vsel %vm422_vm6, %v419_v47, %v421_v59 }
  0xb5   : > { %v431_v56 = vpop.permute.xlu0 %430 }
  0xb6   : > { %v436_v58 = vsel %vm434_vm7, %v429_v50, %v431_v56 }
  0xb7   : > { %v495_v61 = vsel %vm450_vm0, %v424_v57, %v436_v58  ;;  %v439_v2 = vpop.permute.xlu1 %438 }
  0xb8   : > { %516 = vrot.lane.b32.xlu1 %v453_v60, %s905_s21  ;;  %544 = vrot.lane.b32.xlu0 %v495_v61, %s905_s21 }
  0xb9   : > { %v433_v0 = vpop.permute.xlu0 %432 }
  0xba   : > { %v437_v9 = vsel %vm434_vm7, %v431_v56, %v433_v0  ;;  %v691_v56 = vshrl.u32 %v690_v55, 7 }
  0xbb   : > { %v443_v10 = vpop.permute.xlu1 %442  ;;  %v498_v13 = vsel %vm450_vm0, %v425_v11, %v437_v9 }
  0xbc   : > { %524 = vrot.lane.b32.xlu1 %v465_v1, %s905_s21  ;;  %v692_v57 = vsub.s32 0, %v691_v56  ;;  %v696_v59 = vsub.s32 1, %v691_v56  ;;  %v700_v60 = vsub.s32 2, %v691_v56 }
  0xbd   : > { %v441_v3 = vpop.permute.xlu0 %440 }
  0xbe   : > { %v447_v4 = vsel %vm446_vm8, %v439_v2, %v441_v3  ;;  %v448_v14 = vsel %vm446_vm8, %v441_v3, %v443_v10 }
  0xbf   : > { %550 = vrot.lane.b32.xlu0 %v447_v4, %s905_s21 }
  0xc0   : > { %540 = vrot.lane.b32.xlu1 %v489_v6, %s905_s21 }
  0xc1   : > { %v445_v12 = vpop.permute.xlu0 %444 }
  0xc2   : > { %v449_v16 = vsel %vm446_vm8, %v443_v10, %v445_v12 }
  0xc3   : > { %538 = vrot.lane.b32.xlu0 %v486_v8, %s905_s21 }
  0xc4   : > { %548 = vrot.lane.b32.xlu1 %v439_v2, %s905_s21 }
  0xc7   : > { %546 = vrot.lane.b32.xlu0 %v498_v13, %s905_s21 }
  0xc8   : > { %552 = vrot.lane.b32.xlu1 %v448_v14, %s905_s21 }
  0xcb   : > { %554 = vrot.lane.b32.xlu0 %v449_v16, %s905_s21 }
  0xf7   : > { %v523_v17 = vpop.permute.xlu0 %522 }
 0x107   : > { %v531_v18 = vpop.permute.xlu0 %530 }
 0x10b   : > { %v521_v19 = vpop.permute.xlu0 %520 }
 0x10c   : > { %v559_v20 = vsel %vm556_vm10, %v521_v19, %v523_v17 }
 0x10d   : > { %853 = vmatpush3.bf16.msra.mxu1 %v559_v20 }
 0x10e   : > { %854 = vmatprep.subr.bf16.mxu1 %v906_v15 }
 0x10f   : > { %v529_v21 = vpop.permute.xlu0 %528 }
 0x110   : > { %v562_v22 = vsel %vm556_vm10, %v529_v21, %v531_v18 }
 0x111   : > { %855 = vmatpush3.bf16.msra.mxu1 %v562_v22 }
 0x112   : > { %856 = vmatprep.subr.bf16.mxu1 %v906_v15 }
 0x113   : > { %v533_v23 = vpop.permute.xlu1 %532 }
 0x117   : > { %v519_v24 = vpop.permute.xlu1 %518 }
 0x118   : > { %v558_v25 = vsel %vm556_vm10, %v519_v24, %v521_v19 }
 0x119   : > { %597 = vmatprep.subr.bf16.mxu0 %v558_v25 }
 0x11a   : > { %v537_v29 = vpop.permute.xlu0 %536 }
 0x11b   : > { %v527_v26 = vpop.permute.xlu1 %526 }
 0x11c   : > { %v561_v32 = vsel %vm556_vm10, %v527_v26, %v529_v21 }
 0x11f   : > { %v535_v27 = vpop.permute.xlu1 %534 }
 0x120   : > { %v564_v36 = vsel %vm556_vm10, %v535_v27, %v537_v29  ;;  %v563_v39 = vsel %vm556_vm10, %v533_v23, %v535_v27 }
 0x126   : > { %v543_v28 = vpop.permute.xlu1 %542 }
 0x12a   : > { %v517_v30 = vpop.permute.xlu1 %516  ;;  %v545_v33 = vpop.permute.xlu0 %544 }
 0x12b   : > { %v557_v31 = vsel %vm556_vm10, %v517_v30, %v519_v24  ;;  %v567_v40 = vsel %vm556_vm10, %v543_v28, %v545_v33 }
 0x12c   : > { %598 = vmatpush1.bf16.msra.mxu0 %v557_v31 }
 0x12d   : > { %599 = vmatprep.subr.bf16.mxu0 %v561_v32 }
 0x12e   : > { %v525_v34 = vpop.permute.xlu1 %524 }
 0x12f   : > { %v560_v35 = vsel %vm556_vm10, %v525_v34, %v527_v26 }
 0x130   : > { %600 = vmatpush1.bf16.msra.mxu0 %v560_v35 }
 0x131   : > { %601 = vmatprep.subr.bf16.mxu0 %v564_v36  ;;  %v551_v37 = vpop.permute.xlu0 %550 }
 0x132   : > { %v541_v38 = vpop.permute.xlu1 %540 }
 0x133   : > { %v566_v44 = vsel %vm556_vm10, %v541_v38, %v543_v28 }
 0x134   : > { %602 = vmatpush1.bf16.msra.mxu0 %v563_v39 }
 0x135   : > { %603 = vmatprep.subr.bf16.mxu0 %v567_v40  ;;  %v539_v41 = vpop.permute.xlu0 %538 }
 0x136   : > { %v549_v42 = vpop.permute.xlu1 %548  ;;  %v565_v43 = vsel %vm556_vm10, %v537_v29, %v539_v41 }
 0x137   : > { %857 = vmatpush3.bf16.msra.mxu1 %v565_v43  ;;  %v569_v45 = vsel %vm556_vm10, %v549_v42, %v551_v37 }
 0x138   : > { %604 = vmatpush1.bf16.msra.mxu0 %v566_v44  ;;  %858 = vmatprep.subr.bf16.mxu1 %v906_v15  ;;  %v589_v50 = vsel %vm450_vm0, %v569_v45, 0 }
 0x139   : > { %v547_v46 = vpop.permute.xlu0 %546 }
 0x13a   : > { %v553_v47 = vpop.permute.xlu1 %552  ;;  %v568_v48 = vsel %vm556_vm10, %v545_v33, %v547_v46 }
 0x13b   : > { %v570_v49 = vsel %vm556_vm10, %v551_v37, %v553_v47  ;;  %859 = vmatpush3.bf16.msra.mxu1 %v568_v48 }
 0x13c   : > { %835 = vmatprep.subr.msk.bf16.mxu0 %vm450_vm0, %v570_v49  ;;  %860 = vmatprep.subr.bf16.mxu1 %v906_v15  ;;  %v687_v15 = vld [vmem:[%s299_s27] sm:$0x7] }
 0x13d   : > { %606 = vmatpush1.bf16.msra.mxu0 %v589_v50  ;;  %v555_v51 = vpop.permute.xlu0 %554  ;;  %vm688_vm12 = vcmp.gt.f32.partialorder %v687_v15, 0.0 }
 0x13e   : > { %v571_v53 = vsel %vm556_vm10, %v553_v47, %v555_v51  ;;  %v689_v58 = vsel %vm688_vm12, 1, %v907_v7 }
 0x13f   : > { %v595_v54 = vsel %vm450_vm0, %v571_v53, 0  ;;  %v693_v61 = vrot.slane %v689_v58, %v692_v57  ;;  %v697_v62 = vrot.slane %v689_v58, %v696_v59  ;;  %v701_v63 = vrot.slane %v689_v58, %v700_v60 }
 0x140   : > { %836 = vmatmul.mubr.msk.bf16.vlgmr.msra.gmra.mrb[0].mxu0 %vm584_vm11, %v499_v52  ;;  %861 = vmatpush3.bf16.msra.mxu1 %v595_v54 }
 0x141   : > { %vm702_vm13 = vcmp.eq.s32.totalorder %v693_v61, 1  ;;  %vm703_vm15 = vcmp.eq.s32.totalorder %v697_v62, 1  ;;  %vm704_vm1 = vcmp.eq.s32.totalorder %v701_v63, 1 }
 0x143   : > { %863 = vmatmul.mubr.msk.bf16.vlgmr.msra.gmra.mrb[0].mxu1 %vm584_vm11, %v499_v52 }
 0x213   : > { %v631_v0 = vpop.f32.mrb[0].mxu0 }
 0x214   : > { %vm678_vm14 = vcmp.gt.f32.partialorder %v631_v0, 0.0  ;;  %v681_v1 = vmul.f32 0.2, %v631_v0  ;;  %v633_v2 = vpop.f32.mrb[1].mxu0 }
 0x215   : > { %vm679_vm0 = vcmp.gt.f32.partialorder %v633_v2, 0.0  ;;  %v682_v3 = vmul.f32 0.2, %v633_v2  ;;  %v635_v4 = vpop.f32.mrb[2].mxu0 }
 0x216   : > { %v684_v5 = vsel %vm678_vm14, %v631_v0, %v681_v1  ;;  %v636_v6 = vpop.f32.mrb[3].mxu0  ;;  %v672_v8 = vpop.f32.mrb[0].mxu1 }
 0x217   : > { %v705_v7 = vsel %vm702_vm13, %v684_v5, 0.0  ;;  %v685_v9 = vsel %vm679_vm0, %v633_v2, %v682_v3  ;;  %vm680_vm2 = vcmp.gt.f32.partialorder %v672_v8, 0.0  ;;  %v683_v10 = vmul.f32 0.2, %v672_v8  ;;  %v864_v11 = vpop.f32.mrb[1].mxu1 }
 0x218   : > { %v706_v12 = vsel %vm703_vm15, %v685_v9, 0.0  ;;  %v675_v13 = vpop.f32.mrb[2].mxu1 }
 0x219   : > { %v844_v14 = vpack.c.bf16 %v706_v12, %v705_v7  ;;  %v686_v16 = vsel %vm680_vm2, %v672_v8, %v683_v10  ;;  %v865_v17 = vpop.f32.mrb[3].mxu1 }
 0x21a   : > { %v707_v18 = vsel %vm704_vm1, %v686_v16, 0.0 }
 0x21b   : > { %721 = vst [vmem:[%s335_s30] sm:$0xff] %v844_v14  ;;  %v845_v19 = vpack.c.bf16 %v707_v18, %v707_v18 }
 0x21d   : > { %722 = vst [vmem:[%s335_s30 + $0x8] sm:$0xf] %v845_v19 }
 0x21e PF: > { %s15_s18 = sadd.s32 1, %s895_s18  }
 0x21f   : > { %p12_p7 = scmp.ge.s32.totalorder %s15_s18, 4  }
 0x221   :  { %14 = sbr.rel (!%p12_p7) target bundleno = 1 (0x1), region = 79 }

// kernel: unet_forward_nchw.15
= control target key start
LH: loop header
LB: loop body
LE: loop exit
PB: predicated region body
PF: predicated region fallthrough
CT: control target
= control target key end

     0   :  { %s798_s18 = smov 0   ;;  %s800_s19 = smov 0   ;;  %s897_s0 = inlined_call_operand.vmem [shape: bf16[16,72], index: 0, kind: input, shape index: {}]   ;;  %s898_s1 = inlined_call_operand.vmem [shape: f32[1,256], index: 1, kind: input, shape index: {}]   ;;  %s899_s2 = inlined_call_operand.vmem [shape: bf16[8,256], index: 2, kind: input, shape index: {}, may-alias: {2,3,4}]   ;;  %s900_s3 = inlined_call_operand.vmem [shape: bf16[8,256], index: 3, kind: input, shape index: {}, may-alias: {2,3,4}]   ;;  %s901_s4 = inlined_call_operand.vmem [shape: bf16[8,256], index: 4, kind: input, shape index: {}, may-alias: {2,3,4}]   ;;  %s902_s5 = inlined_call_operand.vmem [shape: bf16[16,256], index: 5, kind: output, shape index: {}]  }
   0x1   :  { %s802_s20 = smov 0  }
   0x2 LB: > { %s811_s21 = sadd.s32 4294967295, %s754_s20   ;;  %s813_s22 = sadd.s32 1, %s754_s20   ;;  %s754_s20 = sphi %s802_s20, %s906_s20   ;;  %s750_s19 = sphi %s800_s19, %s905_s19   ;;  %s746_s18 = sphi %s798_s18, %s904_s18  }
   0x3   : > { %s156_s23 = ssub.s32 %s754_s20, %s813_s22  ;;  %s159_s24 = sadd.s32 1, %s750_s19 }
   0x4   : > { %p157_p0 = scmp.eq.s32.totalorder %s156_s23, 0  ;;  %p169_p1 = scmp.ne.s32.totalorder %s750_s19, %s746_s18 }
   0x5   : > { %p170_p2 = scmp.eq.s32.totalorder %s811_s21, 1  ;;  %p644_p3 = scmp.ge.s32.totalorder %s754_s20, 1 }
   0x6   : > { %s821_s25 = scalar_select %p157_p0, %s750_s19, %s159_s24  }
   0x7   : > { %p823_p4 = por %p170_p2, %p169_p1  ;;  %p236_p5 = scmp.lt.s32.totalorder %s754_s20, 3 }
   0x9   : > { %p237_p6 = pnand %p644_p3, %p236_p5 }
   0xa   : > { %p279_p7 = scmp.lt.s32.totalorder (!%p237_p6), %s811_s21, 1  ;;  %s646_s28 = sadd.s32 (!%p237_p6), 4294967295, %s811_s21  ;;  %vm360_vm0 = vcmask (!%p237_p6), 1043456   ;;  %v764_v7 = vmov (!%p237_p6), 0.0   ;;  %vm318_vm1 = vcmask (!%p237_p6), 1039360   ;;  %vm324_vm2 = vcmask (!%p237_p6), 1031168  }
   0xb   : > { %240 = sbr.rel (%p237_p6) target bundleno = 519 (0x207), region = 40  ;;  %p283_p8 = scmp.gt.s32.totalorder (!%p237_p6), %s646_s28, 0  ;;  %681 = vmatprep.subr.bf16.mxu0 (!%p237_p6), %v764_v7  ;;  %vm330_vm3 = vcmask (!%p237_p6), 965632   ;;  %vm340_vm4 = vcmask (!%p237_p6), 949248   ;;  %vm766_vm5 = vmmov (!%p237_p6), 0   ;;  %vm346_vm6 = vcmask (!%p237_p6), 883712  }
   0xc   : > { %p647_p9 = scmp.lt.s32.totalorder (!%p237_p6), %s646_s28, 1  ;;  %s756_s8 = smov (!%p237_p6), 126   ;;  %691 = vmatprep.mubr.msk.bf16.mxu0 (!%p237_p6), %vm766_vm5, %v764_v7  ;;  %vm352_vm7 = vcmask (!%p237_p6), 875520   ;;  %vm358_vm8 = vcmask (!%p237_p6), 867328   ;;  %vm419_vm9 = vcmask (!%p237_p6), 89088   ;;  %v731_v53 = vld [vmem:[%s897_s0] sm:$0xff] (!%p237_p6)   ;;  %v486_v54 = vlaneseq (!%p237_p6) }
   0xd   : > { %s296_s9 = sadd.s32 (!%p237_p6), 1, %s811_s21  ;;  %s757_s10 = smov (!%p237_p6), 127   ;;  %vm429_vm10 = vcmask (!%p237_p6), 588800   ;;  %v767_v58 = vmov (!%p237_p6), 0  }
   0xe   : > { %p297_p10 = scmp.lt.s32.totalorder (!%p237_p6), %s296_s9, 1  ;;  %s758_s12 = smov (!%p237_p6), 118   ;;  %v487_v56 = vshrl.u32 (!%p237_p6), %v486_v54, 7 }
   0xf   : > { %s759_s16 = smov (!%p237_p6), 116   ;;  %s762_s30 = smov (!%p237_p6), 107  }
  0x10   : > { %s763_s6 = smov (!%p237_p6), 106   ;;  %v488_v57 = vsub.s32 (!%p237_p6), 0, %v487_v56  ;;  %s276_s13 = sand.u32 (!%p237_p6), 1, %s746_s18  }
  0x11   : > { %s645_s14 = sshll.u32 (!%p237_p6), %s276_s13, 3 }
  0x12   : > { %s829_s27 = scalar_select %p279_p7, %s811_s21, 1 }
  0x13   : > { %s908_s28 = smov (!%p283_p8, %s646_s28), 0  ;;  %s912_s9 = smov (!%p297_p10, %s296_s9), 1 }
  0x14   : > { %s653_s29 = sshll.u32 %s829_s27, 2  ;;  %s910_s28 = smov (!%p647_p9, %s908_s28), 1 }
  0x15   : > { %s295_s7 = scalar_lea.vmem %s900_s3, %s653_s29  ;;  %s652_s11 = sshll.u32 %s910_s28, 2 }
  0x16   : > { %v308_v0 = vld [vmem:[%s295_s7] sm:$0xf]  ;;  %s288_s15 = scalar_lea.vmem %s899_s2, %s652_s11  ;;  %s914_s9 = smov (!%p297_p10, %s912_s9), 1 }
  0x17   : > { %322 = vrot.lane.b32.xlu1 %v308_v0, %s756_s8  ;;  %v313_v1 = vrot.slane %v308_v0, 4  ;;  %v307_v2 = vld [vmem:[%s288_s15] sm:$0xf]  ;;  %s657_s17 = sshll.u32 %s914_s9, 2  ;;  %s760_s28 = smov 108  }
  0x18   : > { %v312_v3 = vrot.slane %v307_v2, 4  ;;  %s302_s24 = scalar_lea.vmem %s901_s4, %s657_s17  ;;  %s761_s29 = smov 117  }
  0x19   : > { %316 = vrot.lane.b32.xlu0 %v313_v1, %s757_s10  ;;  %v309_v4 = vld [vmem:[%s302_s24] sm:$0xf]  ;;  %s765_s7 = smov 11   ;;  %s663_s18 = sshll.u32 (%p823_p4), %s811_s21, 2 }
  0x1a   : > { %v335_v5 = vrot.slane %v309_v4, 4  ;;  %s511_s17 = scalar_lea.vmem (%p823_p4), %s902_s5, %s663_s18 }
  0x1b   : > { %328 = vrot.lane.b32.xlu1 %v313_v1, %s758_s12 }
  0x1d   : > { %336 = vrot.lane.b32.xlu0 %v313_v1, %s759_s16 }
  0x1f   : > { %320 = vrot.lane.b32.xlu1 %v307_v2, %s756_s8 }
  0x21   : > { %314 = vrot.lane.b32.xlu0 %v312_v3, %s757_s10 }
  0x23   : > { %338 = vrot.lane.b32.xlu1 %v335_v5, %s759_s16 }
  0x25   : > { %326 = vrot.lane.b32.xlu0 %v312_v3, %s758_s12  ;;  %s281_s12 = scalar_lea.vmem %s898_s1, %s829_s27  ;;  %s278_s27 = scalar_lea.vmem [#allocation2], %s645_s14 }
  0x26   : > { %v483_v55 = vld [vmem:[%s281_s12] sm:$0x1] }
  0x27   : > { %342 = vrot.lane.b32.xlu1 %v308_v0, %s760_s28  ;;  %vm484_vm11 = vcmp.gt.f32.partialorder %v483_v55, 0.0 }
  0x28   : > { %v485_v59 = vsel %vm484_vm11, 1, %v767_v58 }
  0x29   : > { %332 = vrot.lane.b32.xlu0 %v308_v0, %s761_s29  ;;  %v489_v60 = vrot.slane %v485_v59, %v488_v57 }
  0x2b   : > { %348 = vrot.lane.b32.xlu1 %v313_v1, %s762_s30  ;;  %vm490_vm13 = vcmp.eq.s32.totalorder %v489_v60, 1 }
  0x2d   : > { %344 = vrot.lane.b32.xlu0 %v309_v4, %s760_s28 }
  0x2f   : > { %354 = vrot.lane.b32.xlu1 %v308_v0, %s763_s6 }
  0x31   : > { %350 = vrot.lane.b32.xlu0 %v335_v5, %s762_s30 }
  0x35   : > { %356 = vrot.lane.b32.xlu0 %v309_v4, %s763_s6 }
  0x89   : > { %v323_v6 = vpop.permute.xlu1 %322 }
  0x8b   : > { %v317_v8 = vpop.permute.xlu0 %316 }
  0x8c   : > { %v366_v9 = vsel %vm360_vm0, %v308_v0, %v317_v8 }
  0x8d   : > { %v329_v10 = vpop.permute.xlu1 %328  ;;  %401 = vrot.lane.b32.xlu0 %v366_v9, %s765_s7 }
  0x8e   : > { %v372_v11 = vsel %vm360_vm0, %v323_v6, %v329_v10 }
  0x8f   : > { %v337_v12 = vpop.permute.xlu0 %336 }
  0x91   : > { %v321_v13 = vpop.permute.xlu1 %320  ;;  %405 = vrot.lane.b32.xlu0 %v372_v11, %s765_s7 }
  0x92   : > { %v325_v19 = vsel %vm324_vm2, %v321_v13, %v323_v6 }
  0x93   : > { %v315_v14 = vpop.permute.xlu0 %314 }
  0x94   : > { %v319_v15 = vsel %vm318_vm1, %v315_v14, %v317_v8 }
  0x95   : > { %v363_v16 = vsel %vm360_vm0, %v307_v2, %v319_v15  ;;  %v339_v17 = vpop.permute.xlu1 %338 }
  0x96   : > { %399 = vrot.lane.b32.xlu1 %v363_v16, %s765_s7  ;;  %v341_v22 = vsel %vm340_vm4, %v337_v12, %v339_v17 }
  0x97   : > { %v327_v18 = vpop.permute.xlu0 %326 }
  0x98   : > { %v331_v20 = vsel %vm330_vm3, %v327_v18, %v329_v10 }
  0x99   : > { %v369_v21 = vsel %vm360_vm0, %v325_v19, %v331_v20  ;;  %v343_v23 = vpop.permute.xlu1 %342 }
  0x9a   : > { %403 = vrot.lane.b32.xlu1 %v369_v21, %s765_s7 }
  0x9b   : > { %v333_v24 = vpop.permute.xlu0 %332 }
  0x9c   : > { %v377_v25 = vsel %vm360_vm0, %v333_v24, %v341_v22  ;;  %v375_v26 = vsel %vm360_vm0, %v333_v24, %v337_v12 }
  0x9d   : > { %409 = vrot.lane.b32.xlu0 %v377_v25, %s765_s7  ;;  %v349_v27 = vpop.permute.xlu1 %348 }
  0x9e   : > { %407 = vrot.lane.b32.xlu1 %v375_v26, %s765_s7  ;;  %v380_v29 = vsel %vm360_vm0, %v343_v23, %v349_v27 }
  0x9f   : > { %v345_v28 = vpop.permute.xlu0 %344 }
  0xa0   : > { %v347_v32 = vsel %vm346_vm6, %v343_v23, %v345_v28 }
  0xa1   : > { %v355_v31 = vpop.permute.xlu1 %354 }
  0xa2   : > { %411 = vrot.lane.b32.xlu1 %v380_v29, %s765_s7 }
  0xa3   : > { %v351_v30 = vpop.permute.xlu0 %350 }
  0xa4   : > { %v353_v33 = vsel %vm352_vm7, %v349_v27, %v351_v30 }
  0xa5   : > { %v383_v34 = vsel %vm360_vm0, %v347_v32, %v353_v33 }
  0xa6   : > { %413 = vrot.lane.b32.xlu0 %v383_v34, %s765_s7  ;;  %415 = vrot.lane.b32.xlu1 %v355_v31, %s765_s7 }
  0xa7   : > { %v357_v35 = vpop.permute.xlu0 %356 }
  0xa8   : > { %v359_v36 = vsel %vm358_vm8, %v355_v31, %v357_v35 }
  0xaa   : > { %417 = vrot.lane.b32.xlu0 %v359_v36, %s765_s7 }
  0xff   : > { %v402_v37 = vpop.permute.xlu0 %401 }
 0x103   : > { %v406_v40 = vpop.permute.xlu0 %405 }
 0x108   : > { %v400_v38 = vpop.permute.xlu1 %399 }
 0x109   : > { %v420_v39 = vsel %vm419_vm9, %v400_v38, %v402_v37 }
 0x10a   : > { %682 = vmatpush3.bf16.msra.mxu0 %v420_v39 }
 0x10b   : > { %683 = vmatprep.subr.bf16.mxu0 %v764_v7 }
 0x10c   : > { %v404_v41 = vpop.permute.xlu1 %403 }
 0x10d   : > { %v421_v42 = vsel %vm419_vm9, %v404_v41, %v406_v40 }
 0x10e   : > { %684 = vmatpush3.bf16.msra.mxu0 %v421_v42 }
 0x10f   : > { %v410_v43 = vpop.permute.xlu0 %409  ;;  %685 = vmatprep.subr.bf16.mxu0 %v764_v7 }
 0x110   : > { %v408_v44 = vpop.permute.xlu1 %407 }
 0x111   : > { %v422_v45 = vsel %vm419_vm9, %v408_v44, %v410_v43 }
 0x112   : > { %686 = vmatpush3.bf16.msra.mxu0 %v422_v45 }
 0x113   : > { %687 = vmatprep.subr.bf16.mxu0 %v764_v7 }
 0x114   : > { %v412_v46 = vpop.permute.xlu1 %411 }
 0x118   : > { %v414_v47 = vpop.permute.xlu0 %413  ;;  %v416_v49 = vpop.permute.xlu1 %415 }
 0x119   : > { %v423_v48 = vsel %vm419_vm9, %v412_v46, %v414_v47 }
 0x11a   : > { %688 = vmatpush3.bf16.msra.mxu0 %v423_v48 }
 0x11b   : > { %689 = vmatprep.subr.bf16.mxu0 %v764_v7 }
 0x11c   : > { %v418_v50 = vpop.permute.xlu0 %417 }
 0x11d   : > { %v424_v51 = vsel %vm419_vm9, %v416_v49, %v418_v50 }
 0x11e   : > { %v434_v52 = vsel %vm360_vm0, %v424_v51, 0 }
 0x11f   : > { %690 = vmatpush3.bf16.msra.mxu0 %v434_v52 }
 0x122   : > { %692 = vmatmul.mubr.msk.bf16.vlgmr.msra.gmra.mrb[0].mxu0 %vm429_vm10, %v731_v53 }
 0x1f5   : > { %v470_v61 = vpop.f32.mrb[0].mxu0 }
 0x1f6   : > { %vm477_vm12 = vcmp.gt.f32.partialorder %v470_v61, 0.0  ;;  %v479_v62 = vmul.f32 0.2, %v470_v61  ;;  %v693_v63 = vpop.f32.mrb[1].mxu0 }
 0x1f7   : > { %v473_v0 = vpop.f32.mrb[2].mxu0 }
 0x1f8   : > { %v481_v1 = vsel %vm477_vm12, %v470_v61, %v479_v62  ;;  %vm478_vm14 = vcmp.gt.f32.partialorder %v473_v0, 0.0  ;;  %v480_v2 = vmul.f32 0.2, %v473_v0  ;;  %v694_v3 = vpop.f32.mrb[3].mxu0  ;;  %509 = sbr.rel (!%p823_p4) target bundleno = 519 (0x207), region = 44 }
 0x1f9   : > { %v491_v5 = vsel %vm490_vm13, %v481_v1, 0.0 }
 0x1fa   : > { %v482_v4 = vsel %vm478_vm14, %v473_v0, %v480_v2 }
 0x1fb   : > { %v492_v6 = vsel %vm490_vm13, %v482_v4, 0.0 }
 0x1fc   : > { %v673_v7 = vpack.c.bf16 %v492_v6, %v491_v5 }
 0x1fe   : > { %674 = vst [vmem:[%s278_s27] sm:$0xff] %v673_v7  }
 0x205   : > { %v527_v8 = vld [vmem:[%s278_s27] sm:$0xf]  ;;  %v529_v9 = vld [vmem:[%s278_s27 + $0x4] sm:$0xf] }
 0x206   : > { %528 = vst [vmem:[%s511_s17] sm:$0xf] %v527_v8  ;;  %530 = vst [vmem:[%s511_s17 + $0x8] sm:$0xf] %v529_v9 }
 0x207 PF: > { %p12_p11 = scmp.ge.s32.totalorder %s813_s22, 4   ;;  %s904_s18 = smov %s750_s19 }
 0x208   : > { %s905_s19 = smov %s821_s25  ;;  %s906_s20 = smov %s813_s22 }
 0x209   :  { %14 = sbr.rel (!%p12_p11) target bundleno = 2 (0x2), region = 120 }

// kernel: unet_forward_nchw.16
= control target key start
LH: loop header
LB: loop body
LE: loop exit
PB: predicated region body
PF: predicated region fallthrough
CT: control target
= control target key end

     0   :  { %s990_s18 = smov 0   ;;  %s992_s19 = smov 0   ;;  %s1198_s0 = inlined_call_operand.vmem [shape: bf16[16,144], index: 0, kind: input, shape index: {}]   ;;  %s1199_s1 = inlined_call_operand.vmem [shape: f32[1,256], index: 1, kind: input, shape index: {}]   ;;  %s1200_s2 = inlined_call_operand.vmem [shape: bf16[16,256], index: 2, kind: input, shape index: {}, may-alias: {2,3,4}]   ;;  %s1201_s3 = inlined_call_operand.vmem [shape: bf16[16,256], index: 3, kind: input, shape index: {}, may-alias: {2,3,4}]   ;;  %s1202_s4 = inlined_call_operand.vmem [shape: bf16[16,256], index: 4, kind: input, shape index: {}, may-alias: {2,3,4}]   ;;  %s1203_s5 = inlined_call_operand.vmem [shape: bf16[16,256], index: 5, kind: output, shape index: {}]  }
   0x1   :  { %s994_s20 = smov 0   ;;  %s996_s21 = smov 0  }
   0x2   :  { %s998_s22 = smov 0   ;;  %s1000_s23 = smov 0  }
   0x3   :  { %s1002_s24 = smov 0  }
   0x4 LB: > { %1205 = sst [smem:[#allocation6_spill]] %s944_s23  ;;  %s1026_s25 = sadd.s32 4294967295, %s948_s24   ;;  %s948_s24 = sphi %s1002_s24, %s1219_s24   ;;  %s944_s23 = sphi %s1000_s23, %s1214_s23   ;;  %s940_s22 = sphi %s998_s22, %s1213_s22   ;;  %s936_s21 = sphi %s996_s21, %s1218_s21   ;;  %s932_s20 = sphi %s994_s20, %s1217_s20   ;;  %s928_s19 = sphi %s992_s19, %s1216_s19   ;;  %s924_s18 = sphi %s990_s18, %s1215_s18  }
   0x5   : > { %s1029_s26 = sadd.s32 1, %s948_s24   ;;  %p67_p0 = scmp.gt.s32.totalorder %s1026_s25, 0 }
   0x6   : > { %s788_s27 = sadd.s32 4294967295, %s1029_s26  ;;  %s75_s28 = sadd.s32 1, %s944_s23 }
   0x7   : > { %p70_p1 = scmp.gt.s32.totalorder %s788_s27, 0  ;;  %p82_p2 = scmp.ne.s32.totalorder %s944_s23, %s940_s22 }
   0x8   : > { %s1035_s29 = scalar_select %p67_p0, %s1026_s25, 0 }
   0x9   : > { %s1221_s27 = smov (!%p70_p1, %s788_s27), 0  ;;  %p83_p3 = scmp.eq.s32.totalorder %s948_s24, 0 }
   0xa   : > { %s72_s30 = ssub.s32 %s1035_s29, %s1221_s27  ;;  %s98_s6 = ssub.s32 %s948_s24, %s1029_s26 }
   0xb   : > { %p73_p4 = scmp.eq.s32.totalorder %s72_s30, 0  ;;  %p1045_p5 = por %p83_p3, %p82_p2 }
   0xc   : > { %p99_p6 = scmp.eq.s32.totalorder %s98_s6, 0  ;;  %s101_s8 = sadd.s32 1, %s936_s21 }
   0xd   : > { %s1051_s9 = scalar_select %p73_p4, %s944_s23, %s75_s28  }
   0xe   : > { %s1054_s10 = scalar_select %p99_p6, %s936_s21, %s101_s8  }
   0xf   : > { %1207 = sst [smem:[#allocation7_spill]] %s1051_s9  ;;  %p108_p7 = scmp.ne.s32.totalorder %s936_s21, %s932_s20 }
  0x10   : > { %1208 = sst [smem:[#allocation8_spill]] %s1054_s10  ;;  %p125_p8 = scmp.lt.s32.totalorder %s1029_s26, 1 }
  0x11   : > { %s127_s11 = sadd.s32 1, %s1029_s26  ;;  %p1065_p9 = por %p108_p7, %p83_p3 }
  0x12   : > { %p128_p10 = scmp.lt.s32.totalorder %s127_s11, 1  ;;  %p140_p11 = scmp.ne.s32.totalorder %s928_s19, %s924_s18 }
  0x13   : > { %s1070_s13 = scalar_select %p125_p8, %s1029_s26, 1 }
  0x14   : > { %s1223_s11 = smov (!%p128_p10, %s127_s11), 1  ;;  %p170_p12 = scmp.eq.s32.totalorder %s1026_s25, 1 }
  0x15   : > { %s130_s14 = ssub.s32 %s1070_s13, %s1223_s11  ;;  %s133_s15 = sadd.s32 1, %s928_s19 }
  0x16   : > { %p131_p13 = scmp.eq.s32.totalorder %s130_s14, 0  ;;  %p1079_p0 = por %p140_p11, %p83_p3 }
  0x17   : > { %p1086_p1 = por %p170_p12, %p108_p7  ;;  %p790_p2 = scmp.ge.s32.totalorder %s948_s24, 2 }
  0x18   : > { %s1091_s27 = scalar_select %p131_p13, %s928_s19, %s133_s15  }
  0x19   : > { %195 = sbr.rel (%p790_p2) target bundleno = 53 (0x35), region = 20 }
  0x20   : > { %204 = sbr.rel (!%p1045_p5) target bundleno = 39 (0x27), region = 28  ;;  %s206_s28 = sand.u32 (%p1045_p5), 1, %s944_s23  }
  0x21   : > { %s793_s30 = sshll.u32 (%p1045_p5), %s1035_s29, 2  ;;  %s791_s6 = sshll.u32 (%p1045_p5), %s206_s28, 3 }
  0x22   : > { %s213_s14 = scalar_lea.vmem (%p1045_p5), %s1200_s2, %s793_s30  ;;  %s208_s9 = scalar_lea.vmem (%p1045_p5), [#allocation2], %s791_s6 }
  0x23   : > { %v229_v0 = vld [vmem:[%s213_s14] sm:$0xf] (%p1045_p5)  ;;  %v231_v1 = vld [vmem:[%s213_s14 + $0x8] sm:$0xf] (%p1045_p5) }
  0x24   : > { %230 = vst [vmem:[%s208_s9] sm:$0xf] (%p1045_p5), %v229_v0  ;;  %232 = vst [vmem:[%s208_s9 + $0x4] sm:$0xf] (%p1045_p5), %v231_v1 }
  0x27 PF: > { %259 = sbr.rel (!%p1065_p9) target bundleno = 46 (0x2e), region = 69  ;;  %s261_s7 = sand.u32 (%p1065_p9), 1, %s936_s21  }
  0x28   : > { %s795_s15 = sshll.u32 (%p1065_p9), %s948_s24, 2  ;;  %s794_s23 = sshll.u32 (%p1065_p9), %s261_s7, 3 }
  0x29   : > { %s265_s10 = scalar_lea.vmem (%p1065_p9), %s1201_s3, %s795_s15  ;;  %s263_s30 = scalar_lea.vmem (%p1065_p9), [#allocation3], %s794_s23 }
  0x2a   : > { %v281_v2 = vld [vmem:[%s265_s10] sm:$0xf] (%p1065_p9)  ;;  %v283_v3 = vld [vmem:[%s265_s10 + $0x8] sm:$0xf] (%p1065_p9) }
  0x2b   : > { %282 = vst [vmem:[%s263_s30] sm:$0xf] (%p1065_p9), %v281_v2  ;;  %284 = vst [vmem:[%s263_s30 + $0x4] sm:$0xf] (%p1065_p9), %v283_v3 }
  0x2e PF: > { %311 = sbr.rel (!%p1079_p0) target bundleno = 53 (0x35), region = 110  ;;  %s313_s9 = sand.u32 (%p1079_p0), 1, %s928_s19  }
  0x2f   : > { %s797_s12 = sshll.u32 (%p1079_p0), %s1070_s13, 2  ;;  %s796_s6 = sshll.u32 (%p1079_p0), %s313_s9, 3 }
  0x30   : > { %s320_s14 = scalar_lea.vmem (%p1079_p0), %s1202_s4, %s797_s12  ;;  %s315_s7 = scalar_lea.vmem (%p1079_p0), [#allocation4], %s796_s6 }
  0x31   : > { %v336_v4 = vld [vmem:[%s320_s14] sm:$0xf] (%p1079_p0)  ;;  %v338_v5 = vld [vmem:[%s320_s14 + $0x8] sm:$0xf] (%p1079_p0) }
  0x32   : > { %337 = vst [vmem:[%s315_s7] sm:$0xf] (%p1079_p0), %v336_v4  ;;  %339 = vst [vmem:[%s315_s7 + $0x4] sm:$0xf] (%p1079_p0), %v338_v5 }
  0x35 PF: > { %p798_p3 = scmp.ge.s32.totalorder %s948_s24, 1  ;;  %p365_p4 = scmp.lt.s32.totalorder %s948_s24, 3 }
  0x37   : > { %p366_p5 = pnand %p798_p3, %p365_p4 }
  0x38   : > { %s372_s23 = sand.u32 (!%p366_p5), 1, %s940_s22   ;;  %s379_s13 = sand.u32 (!%p366_p5), 1, %s932_s20   ;;  %v957_v9 = vmov (!%p366_p5), 0   ;;  %vm458_vm0 = vcmask (!%p366_p5), 1039360   ;;  %vm464_vm1 = vcmask (!%p366_p5), 1031168   ;;  %vm470_vm2 = vcmask (!%p366_p5), 965632  }
  0x39   : > { %369 = sbr.rel (%p366_p5) target bundleno = 556 (0x22c), region = 151  ;;  %s799_s10 = sshll.u32 (!%p366_p5), %s372_s23, 3  ;;  %565 = vmatprep.subr.bf16.mxu0 (!%p366_p5), %v957_v9  ;;  %vm478_vm3 = vcmask (!%p366_p5), 949248   ;;  %vm484_vm4 = vcmask (!%p366_p5), 883712   ;;  %v893_v26 = vld [vmem:[%s1198_s0 + $0x4] ss:$8 sps:$4 sm:$0xff] (!%p366_p5)   ;;  %v615_v59 = vlaneseq (!%p366_p5) }
  0x3a   : > { %s374_s16 = scalar_lea.vmem (!%p366_p5), [#allocation2], %s799_s10  ;;  %s1119_s15 = sshll.u32 (!%p366_p5), %s379_s13, 3  ;;  %vm561_vm5 = vcmask (!%p366_p5), 130048   ;;  %vm490_vm6 = vcmask (!%p366_p5), 875520   ;;  %vm496_vm7 = vcmask (!%p366_p5), 867328   ;;  %vm543_vm8 = vcmask (!%p366_p5), 89088  }
  0x3b   : > { %v888_v6 = vld [vmem:[%s374_s16] sm:$0xff] (!%p366_p5)   ;;  %s950_s29 = smov (!%p366_p5), 126   ;;  %s951_s28 = smov (!%p366_p5), 127   ;;  %808 = vmatprep.mubr.msk.bf16.mxu0 (!%p366_p5), %vm561_vm5, %v893_v26  ;;  %v616_v61 = vshrl.u32 (!%p366_p5), %v615_v59, 7 }
  0x3c   : > { %460 = vrot.lane.b32.xlu1 (!%p366_p5), %v888_v6, %s950_s29  ;;  %454 = vrot.lane.b32.xlu0 (!%p366_p5), %v888_v6, %s951_s28  ;;  %s381_s30 = scalar_lea.vmem (!%p366_p5), [#allocation3], %s1119_s15  ;;  %s386_s24 = sand.u32 (!%p366_p5), 1, %s924_s18   ;;  %v891_v58 = vld [vmem:[%s1198_s0] ss:$8 sps:$4 sm:$0xff] (!%p366_p5)  }
  0x3d   : > { %v889_v7 = vld [vmem:[%s381_s30] sm:$0xff] (!%p366_p5)   ;;  %s801_s9 = sshll.u32 (!%p366_p5), %s386_s24, 3  ;;  %s952_s6 = smov (!%p366_p5), 118   ;;  %v617_v62 = vsub.s32 (!%p366_p5), 0, %v616_v61 }
  0x3e   : > { %s388_s12 = scalar_lea.vmem (!%p366_p5), [#allocation4], %s801_s9  ;;  %s953_s20 = smov (!%p366_p5), 117  }
  0x3f   : > { %s954_s22 = smov (!%p366_p5), 116   ;;  %v890_v8 = vld [vmem:[%s388_s12] sm:$0xff] (!%p366_p5)   ;;  %s955_s8 = smov (!%p366_p5), 108  }
  0x40   : > { %462 = vrot.lane.b32.xlu1 %v889_v7, %s950_s29  ;;  %456 = vrot.lane.b32.xlu0 %v889_v7, %s951_s28  ;;  %s956_s11 = smov 107   ;;  %s958_s18 = smov 106  }
  0x41   : > { %s959_s14 = smov 11   ;;  %p423_p6 = scmp.lt.s32.totalorder %s1026_s25, 1 }
  0x42   : > { %s422_s24 = scalar_lea.vmem [#allocation5], %s1119_s15  ;;  %s812_s9 = sshll.u32 (%p1086_p1), %s1026_s25, 2 }
  0x43   : > { %s424_s16 = scalar_select %p423_p6, %s1026_s25, 1 }
  0x44   : > { %468 = vrot.lane.b32.xlu1 %v889_v7, %s952_s6  ;;  %466 = vrot.lane.b32.xlu0 %v888_v6, %s952_s6 }
  0x45   : > { %s425_s30 = scalar_lea.vmem %s1199_s1, %s424_s16 }
  0x46   : > { %v612_v60 = vld [vmem:[%s425_s30] sm:$0x1] }
  0x47   : > { %vm613_vm9 = vcmp.gt.f32.partialorder %v612_v60, 0.0 }
  0x48   : > { %472 = vrot.lane.b32.xlu0 %v889_v7, %s953_s20  ;;  %474 = vrot.lane.b32.xlu1 %v889_v7, %s954_s22  ;;  %v614_v63 = vsel %vm613_vm9, 1, %v957_v9  ;;  %s640_s20 = scalar_lea.vmem (%p1086_p1), %s1203_s5, %s812_s9 }
  0x49   : > { %v618_v0 = vrot.slane %v614_v63, %v617_v62 }
  0x4b   : > { %vm619_vm11 = vcmp.eq.s32.totalorder %v618_v0, 1 }
  0x4c   : > { %476 = vrot.lane.b32.xlu0 %v890_v8, %s954_s22  ;;  %480 = vrot.lane.b32.xlu1 %v889_v7, %s955_s8 }
  0x50   : > { %482 = vrot.lane.b32.xlu0 %v890_v8, %s955_s8  ;;  %486 = vrot.lane.b32.xlu1 %v889_v7, %s956_s11 }
  0x54   : > { %488 = vrot.lane.b32.xlu0 %v890_v8, %s956_s11  ;;  %492 = vrot.lane.b32.xlu1 %v889_v7, %s958_s18 }
  0x58   : > { %494 = vrot.lane.b32.xlu0 %v890_v8, %s958_s18  ;;  %509 = vrot.lane.b32.xlu1 %v888_v6, %s959_s14 }
  0x5c   : > { %511 = vrot.lane.b32.xlu0 %v889_v7, %s959_s14 }
  0xae   : > { %v461_v10 = vpop.permute.xlu1 %460  ;;  %v455_v11 = vpop.permute.xlu0 %454 }
  0xb2   : > { %v463_v12 = vpop.permute.xlu1 %462  ;;  %v457_v13 = vpop.permute.xlu0 %456 }
  0xb3   : > { %515 = vrot.lane.b32.xlu0 %v457_v13, %s959_s14  ;;  %v459_v14 = vsel %vm458_vm0, %v455_v11, %v457_v13  ;;  %v465_v17 = vsel %vm464_vm1, %v461_v10, %v463_v12 }
  0xb4   : > { %513 = vrot.lane.b32.xlu1 %v459_v14, %s959_s14 }
  0xb6   : > { %v469_v15 = vpop.permute.xlu1 %468  ;;  %v467_v16 = vpop.permute.xlu0 %466 }
  0xb7   : > { %519 = vrot.lane.b32.xlu0 %v463_v12, %s959_s14  ;;  %v471_v18 = vsel %vm470_vm2, %v467_v16, %v469_v15 }
  0xb8   : > { %517 = vrot.lane.b32.xlu1 %v465_v17, %s959_s14 }
  0xba   : > { %v473_v19 = vpop.permute.xlu0 %472  ;;  %v475_v20 = vpop.permute.xlu1 %474 }
  0xbb   : > { %523 = vrot.lane.b32.xlu0 %v469_v15, %s959_s14 }
  0xbc   : > { %521 = vrot.lane.b32.xlu1 %v471_v18, %s959_s14 }
  0xbe   : > { %v477_v21 = vpop.permute.xlu0 %476  ;;  %v481_v22 = vpop.permute.xlu1 %480 }
  0xbf   : > { %527 = vrot.lane.b32.xlu0 %v475_v20, %s959_s14  ;;  %v479_v23 = vsel %vm478_vm3, %v475_v20, %v477_v21 }
  0xc0   : > { %525 = vrot.lane.b32.xlu1 %v473_v19, %s959_s14 }
  0xc2   : > { %v483_v24 = vpop.permute.xlu0 %482  ;;  %v487_v25 = vpop.permute.xlu1 %486 }
  0xc3   : > { %531 = vrot.lane.b32.xlu0 %v481_v22, %s959_s14  ;;  %v485_v27 = vsel %vm484_vm4, %v481_v22, %v483_v24 }
  0xc4   : > { %529 = vrot.lane.b32.xlu1 %v479_v23, %s959_s14 }
  0xc6   : > { %v489_v28 = vpop.permute.xlu0 %488  ;;  %v493_v29 = vpop.permute.xlu1 %492 }
  0xc7   : > { %535 = vrot.lane.b32.xlu0 %v487_v25, %s959_s14  ;;  %v491_v30 = vsel %vm490_vm6, %v487_v25, %v489_v28 }
  0xc8   : > { %533 = vrot.lane.b32.xlu1 %v485_v27, %s959_s14 }
  0xca   : > { %v495_v31 = vpop.permute.xlu0 %494  ;;  %v510_v32 = vpop.permute.xlu1 %509 }
  0xcb   : > { %539 = vrot.lane.b32.xlu0 %v493_v29, %s959_s14  ;;  %v497_v33 = vsel %vm496_vm7, %v493_v29, %v495_v31 }
  0xcc   : > { %537 = vrot.lane.b32.xlu1 %v491_v30, %s959_s14 }
  0xce   : > { %v512_v34 = vpop.permute.xlu0 %511 }
  0xcf   : > { %v544_v35 = vsel %vm543_vm8, %v510_v32, %v512_v34 }
  0xd0   : > { %541 = vrot.lane.b32.xlu1 %v497_v33, %s959_s14  ;;  %566 = vmatpush1.bf16.msra.mxu0 %v544_v35 }
  0xd1   : > { %567 = vmatprep.subr.bf16.mxu0 %v957_v9 }
 0x125   : > { %v516_v36 = vpop.permute.xlu0 %515 }
 0x126   : > { %v514_v37 = vpop.permute.xlu1 %513 }
 0x127   : > { %v545_v38 = vsel %vm543_vm8, %v514_v37, %v516_v36 }
 0x128   : > { %568 = vmatpush1.bf16.msra.mxu0 %v545_v38 }
 0x129   : > { %v520_v39 = vpop.permute.xlu0 %519  ;;  %569 = vmatprep.subr.bf16.mxu0 %v957_v9 }
 0x12a   : > { %v518_v40 = vpop.permute.xlu1 %517 }
 0x12b   : > { %v546_v41 = vsel %vm543_vm8, %v518_v40, %v520_v39 }
 0x12c   : > { %570 = vmatpush1.bf16.msra.mxu0 %v546_v41 }
 0x12d   : > { %v524_v42 = vpop.permute.xlu0 %523  ;;  %571 = vmatprep.subr.bf16.mxu0 %v957_v9 }
 0x12e   : > { %v522_v43 = vpop.permute.xlu1 %521 }
 0x12f   : > { %v547_v44 = vsel %vm543_vm8, %v522_v43, %v524_v42 }
 0x130   : > { %572 = vmatpush1.bf16.msra.mxu0 %v547_v44 }
 0x131   : > { %573 = vmatprep.subr.bf16.mxu0 %v957_v9  ;;  %v528_v45 = vpop.permute.xlu0 %527 }
 0x132   : > { %v526_v46 = vpop.permute.xlu1 %525 }
 0x134   : > { %574 = vmatpush1.bf16.msra.mxu0 %v526_v46 }
 0x135   : > { %575 = vmatprep.subr.bf16.mxu0 %v957_v9  ;;  %v532_v47 = vpop.permute.xlu0 %531 }
 0x136   : > { %v530_v48 = vpop.permute.xlu1 %529 }
 0x137   : > { %v548_v49 = vsel %vm543_vm8, %v528_v45, %v530_v48 }
 0x138   : > { %576 = vmatpush1.bf16.msra.mxu0 %v548_v49 }
 0x139   : > { %577 = vmatprep.subr.bf16.mxu0 %v957_v9  ;;  %v536_v51 = vpop.permute.xlu0 %535 }
 0x13a   : > { %v534_v50 = vpop.permute.xlu1 %533 }
 0x13b   : > { %v549_v52 = vsel %vm543_vm8, %v532_v47, %v534_v50 }
 0x13c   : > { %578 = vmatpush1.bf16.msra.mxu0 %v549_v52 }
 0x13d   : > { %579 = vmatprep.subr.bf16.mxu0 %v957_v9  ;;  %v540_v55 = vpop.permute.xlu0 %539 }
 0x13e   : > { %v538_v53 = vpop.permute.xlu1 %537 }
 0x13f   : > { %v550_v54 = vsel %vm543_vm8, %v536_v51, %v538_v53 }
 0x140   : > { %580 = vmatpush1.bf16.msra.mxu0 %v550_v54 }
 0x141   : > { %581 = vmatprep.subr.bf16.mxu0 %v957_v9 }
 0x142   : > { %v542_v56 = vpop.permute.xlu1 %541 }
 0x143   : > { %v551_v57 = vsel %vm543_vm8, %v540_v55, %v542_v56 }
 0x144   : > { %582 = vmatpush1.bf16.msra.mxu0 %v551_v57 }
 0x147   : > { %598 = vmatmul.mubr.bf16.vlgmr.msra.gmra.mrb[0].mxu0 %v891_v58 }
 0x21a   : > { %v599_v1 = vpop.f32.mrb[0].mxu0 }
 0x21b   : > { %vm606_vm10 = vcmp.gt.f32.partialorder %v599_v1, 0.0  ;;  %v608_v2 = vmul.f32 0.2, %v599_v1  ;;  %v601_v3 = vpop.f32.mrb[1].mxu0 }
 0x21c   : > { %v602_v4 = vpop.f32.mrb[2].mxu0 }
 0x21d   : > { %v610_v5 = vsel %vm606_vm10, %v599_v1, %v608_v2  ;;  %vm607_vm12 = vcmp.gt.f32.partialorder %v602_v4, 0.0  ;;  %v609_v6 = vmul.f32 0.2, %v602_v4  ;;  %v604_v7 = vpop.f32.mrb[3].mxu0  ;;  %638 = sbr.rel (!%p1086_p1) target bundleno = 556 (0x22c), region = 167 }
 0x21e   : > { %v620_v10 = vsel %vm619_vm11, %v610_v5, 0.0 }
 0x21f   : > { %v611_v8 = vsel %vm607_vm12, %v602_v4, %v609_v6 }
 0x220   : > { %v621_v11 = vsel %vm619_vm11, %v611_v8, 0.0 }
 0x221   : > { %v820_v12 = vpack.c.bf16 %v621_v11, %v620_v10 }
 0x223   : > { %821 = vst [vmem:[%s422_s24] sm:$0xff] %v820_v12  }
 0x22a   : > { %v656_v9 = vld [vmem:[%s422_s24] sm:$0xf]  ;;  %v658_v13 = vld [vmem:[%s422_s24 + $0x4] sm:$0xf] }
 0x22b   : > { %657 = vst [vmem:[%s640_s20] sm:$0xf] %v656_v9  ;;  %659 = vst [vmem:[%s640_s20 + $0x8] sm:$0xf] %v658_v13 }
 0x22c PF: > { %s1212_s15 = sld [smem:[#allocation8_spill]]  ;;  %s1213_s22 = sld [smem:[#allocation6_spill]] }
 0x22d   : > { %s1214_s23 = sld [smem:[#allocation7_spill]]  ;;  %p12_p7 = scmp.ge.s32.totalorder %s1029_s26, 4  }
 0x22e   : > { %s1215_s18 = smov %s928_s19  ;;  %s1216_s19 = smov %s1091_s27 }
 0x22f   : > { %s1217_s20 = smov %s936_s21  ;;  %s1219_s24 = smov %s1029_s26 }
 0x230   :  { %14 = sbr.rel (!%p12_p7) target bundleno = 4 (0x4), region = 258 }
 0x232   : > { %s1218_s21 = smov %s1212_s15 }

// kernel: unet_forward_nchw.17
= control target key start
LH: loop header
LB: loop body
LE: loop exit
PB: predicated region body
PF: predicated region fallthrough
CT: control target
= control target key end

     0   :  { %s395_s22 = smov 126   ;;  %s396_s23 = smov 127   ;;  %v402_v3 = vmov 0   ;;  %vm100_vm0 = vcmask 1039360   ;;  %vm106_vm1 = vcmask 1031168   ;;  %vm112_vm2 = vcmask 998400   ;;  %s509_s2 = inlined_call_operand.vmem [shape: bf16[16,128], index: 2, kind: input, shape index: {}, may-alias: {2,3,4}]   ;;  %s510_s3 = inlined_call_operand.vmem [shape: bf16[16,128], index: 3, kind: input, shape index: {}, may-alias: {2,3,4}]   ;;  %s511_s4 = inlined_call_operand.vmem [shape: bf16[16,128], index: 4, kind: input, shape index: {}, may-alias: {2,3,4}]   ;;  %s512_s0 = inlined_call_operand.vmem [shape: bf16[32,144], index: 0, kind: input, shape index: {}]   ;;  %s513_s1 = inlined_call_operand.vmem [shape: f32[1,128], index: 1, kind: input, shape index: {}]   ;;  %s514_s5 = inlined_call_operand.vmem [shape: bf16[32,128], index: 5, kind: output, shape index: {}]  }
   0x1   :  { %v386_v0 = vld [vmem:[%s509_s2] sm:$0xff]   ;;  %s397_s24 = smov 122   ;;  %s398_s25 = smov 121   ;;  %221 = vmatprep.subr.bf16.mxu0 %v402_v3  ;;  %358 = vmatprep.subr.bf16.mxu1 %v402_v3  ;;  %vm120_vm3 = vcmask 982016   ;;  %vm126_vm4 = vcmask 949248   ;;  %vm214_vm5 = vcmask 130048   ;;  %v285_v55 = vlaneseq }
   0x2   :  { %v387_v1 = vld [vmem:[%s510_s3] sm:$0xff]   ;;  %102 = vrot.lane.b32.xlu1 %v386_v0, %s395_s22  ;;  %96 = vrot.lane.b32.xlu0 %v386_v0, %s396_s23  ;;  %s399_s26 = smov 120   ;;  %s400_s2 = smov 116   ;;  %vm132_vm6 = vcmask 941056   ;;  %v394_v23 = vld [vmem:[%s512_s0 + $0x14] ss:$8 sps:$4 sm:$0xff]  }
   0x3   :  { %v388_v2 = vld [vmem:[%s511_s4] sm:$0xff]   ;;  %s401_s3 = smov 115   ;;  %s403_s29 = smov 114   ;;  %338 = vmatprep.mubr.msk.bf16.mxu1 %vm214_vm5, %v394_v23  ;;  %vm138_vm7 = vcmask 932864   ;;  %vm196_vm8 = vcmask 56320   ;;  %v286_v57 = vshrl.u32 %v285_v55, 7 }
   0x4   :  { %s404_s30 = smov 7   ;;  %v391_v21 = vld [vmem:[%s512_s0 + $0x4] ss:$8 sps:$4 sm:$0xff]   ;;  %v389_v53 = vld [vmem:[%s512_s0] ss:$8 sps:$4 sm:$0xff]  }
   0x5   :  { %337 = vmatprep.mubr.msk.bf16.mxu0 %vm214_vm5, %v391_v21  ;;  %v392_v54 = vld [vmem:[%s512_s0 + $0x10] ss:$8 sps:$4 sm:$0xff]   ;;  %v282_v56 = vld [vmem:[%s513_s1] sm:$0x1]  ;;  %v287_v58 = vsub.s32 0, %v286_v57 }
   0x6   :  { %104 = vrot.lane.b32.xlu1 %v387_v1, %s395_s22  ;;  %98 = vrot.lane.b32.xlu0 %v387_v1, %s396_s23  ;;  %vm283_vm9 = vcmp.gt.f32.partialorder %v282_v56, 0.0 }
   0x7   :  { %v284_v59 = vsel %vm283_vm9, 1, %v402_v3 }
   0x8   :  { %v288_v61 = vrot.slane %v284_v59, %v287_v58 }
   0xa   :  { %110 = vrot.lane.b32.xlu1 %v387_v1, %s397_s24  ;;  %108 = vrot.lane.b32.xlu0 %v386_v0, %s397_s24  ;;  %vm289_vm12 = vcmp.eq.s32.totalorder %v288_v61, 1 }
   0xe   :  { %114 = vrot.lane.b32.xlu0 %v387_v1, %s398_s25  ;;  %116 = vrot.lane.b32.xlu1 %v387_v1, %s399_s26 }
  0x12   :  { %118 = vrot.lane.b32.xlu0 %v388_v2, %s399_s26  ;;  %122 = vrot.lane.b32.xlu1 %v387_v1, %s400_s2 }
  0x16   :  { %124 = vrot.lane.b32.xlu0 %v388_v2, %s400_s2  ;;  %128 = vrot.lane.b32.xlu1 %v387_v1, %s401_s3 }
  0x1a   :  { %130 = vrot.lane.b32.xlu0 %v388_v2, %s401_s3  ;;  %134 = vrot.lane.b32.xlu1 %v387_v1, %s403_s29 }
  0x1e   :  { %136 = vrot.lane.b32.xlu0 %v388_v2, %s403_s29  ;;  %162 = vrot.lane.b32.xlu1 %v386_v0, %s404_s30 }
  0x22   :  { %164 = vrot.lane.b32.xlu0 %v387_v1, %s404_s30 }
  0x74   :  { %v103_v4 = vpop.permute.xlu1 %102  ;;  %v97_v5 = vpop.permute.xlu0 %96 }
  0x78   :  { %v105_v6 = vpop.permute.xlu1 %104  ;;  %v99_v7 = vpop.permute.xlu0 %98 }
  0x79   :  { %168 = vrot.lane.b32.xlu0 %v99_v7, %s404_s30  ;;  %v101_v8 = vsel %vm100_vm0, %v97_v5, %v99_v7  ;;  %v107_v11 = vsel %vm106_vm1, %v103_v4, %v105_v6 }
  0x7a   :  { %166 = vrot.lane.b32.xlu1 %v101_v8, %s404_s30 }
  0x7c   :  { %v111_v9 = vpop.permute.xlu1 %110  ;;  %v109_v10 = vpop.permute.xlu0 %108 }
  0x7d   :  { %172 = vrot.lane.b32.xlu0 %v105_v6, %s404_s30  ;;  %v113_v12 = vsel %vm112_vm2, %v109_v10, %v111_v9 }
  0x7e   :  { %170 = vrot.lane.b32.xlu1 %v107_v11, %s404_s30 }
  0x80   :  { %v115_v13 = vpop.permute.xlu0 %114  ;;  %v117_v14 = vpop.permute.xlu1 %116 }
  0x81   :  { %176 = vrot.lane.b32.xlu0 %v111_v9, %s404_s30 }
  0x82   :  { %174 = vrot.lane.b32.xlu1 %v113_v12, %s404_s30 }
  0x84   :  { %v119_v15 = vpop.permute.xlu0 %118  ;;  %v123_v16 = vpop.permute.xlu1 %122 }
  0x85   :  { %180 = vrot.lane.b32.xlu0 %v117_v14, %s404_s30  ;;  %v121_v17 = vsel %vm120_vm3, %v117_v14, %v119_v15 }
  0x86   :  { %178 = vrot.lane.b32.xlu1 %v115_v13, %s404_s30 }
  0x88   :  { %v125_v18 = vpop.permute.xlu0 %124  ;;  %v129_v19 = vpop.permute.xlu1 %128 }
  0x89   :  { %184 = vrot.lane.b32.xlu0 %v123_v16, %s404_s30  ;;  %v127_v20 = vsel %vm126_vm4, %v123_v16, %v125_v18 }
  0x8a   :  { %182 = vrot.lane.b32.xlu1 %v121_v17, %s404_s30 }
  0x8c   :  { %v131_v22 = vpop.permute.xlu0 %130  ;;  %v135_v24 = vpop.permute.xlu1 %134 }
  0x8d   :  { %188 = vrot.lane.b32.xlu0 %v129_v19, %s404_s30  ;;  %v133_v25 = vsel %vm132_vm6, %v129_v19, %v131_v22 }
  0x8e   :  { %186 = vrot.lane.b32.xlu1 %v127_v20, %s404_s30 }
  0x90   :  { %v137_v26 = vpop.permute.xlu0 %136  ;;  %v163_v27 = vpop.permute.xlu1 %162 }
  0x91   :  { %192 = vrot.lane.b32.xlu0 %v135_v24, %s404_s30  ;;  %v139_v28 = vsel %vm138_vm7, %v135_v24, %v137_v26 }
  0x92   :  { %190 = vrot.lane.b32.xlu1 %v133_v25, %s404_s30 }
  0x94   :  { %v165_v29 = vpop.permute.xlu0 %164 }
  0x95   :  { %v197_v30 = vsel %vm196_vm8, %v163_v27, %v165_v29 }
  0x96   :  { %194 = vrot.lane.b32.xlu1 %v139_v28, %s404_s30  ;;  %222 = vmatpush1.bf16.msra.mxu0 %v197_v30 }
  0x97   :  { %367 = vmatpush1.bf16.msra.mxu1 %v197_v30  ;;  %223 = vmatprep.subr.bf16.mxu0 %v402_v3 }
  0x98   :  { %359 = vmatprep.subr.bf16.mxu1 %v402_v3 }
  0xeb   :  { %v169_v31 = vpop.permute.xlu0 %168 }
  0xec   :  { %v167_v32 = vpop.permute.xlu1 %166 }
  0xed   :  { %v198_v33 = vsel %vm196_vm8, %v167_v32, %v169_v31 }
  0xee   :  { %224 = vmatpush1.bf16.msra.mxu0 %v198_v33  ;;  %368 = vmatpush1.bf16.msra.mxu1 %v198_v33 }
  0xef   :  { %v173_v34 = vpop.permute.xlu0 %172  ;;  %225 = vmatprep.subr.bf16.mxu0 %v402_v3  ;;  %360 = vmatprep.subr.bf16.mxu1 %v402_v3 }
  0xf0   :  { %v171_v35 = vpop.permute.xlu1 %170 }
  0xf1   :  { %v199_v36 = vsel %vm196_vm8, %v171_v35, %v173_v34 }
  0xf2   :  { %226 = vmatpush1.bf16.msra.mxu0 %v199_v36  ;;  %369 = vmatpush1.bf16.msra.mxu1 %v199_v36 }
  0xf3   :  { %v177_v37 = vpop.permute.xlu0 %176  ;;  %227 = vmatprep.subr.bf16.mxu0 %v402_v3  ;;  %361 = vmatprep.subr.bf16.mxu1 %v402_v3 }
  0xf4   :  { %v175_v38 = vpop.permute.xlu1 %174 }
  0xf5   :  { %v200_v39 = vsel %vm196_vm8, %v175_v38, %v177_v37 }
  0xf6   :  { %228 = vmatpush1.bf16.msra.mxu0 %v200_v39  ;;  %370 = vmatpush1.bf16.msra.mxu1 %v200_v39 }
  0xf7   :  { %229 = vmatprep.subr.bf16.mxu0 %v402_v3  ;;  %362 = vmatprep.subr.bf16.mxu1 %v402_v3  ;;  %v181_v40 = vpop.permute.xlu0 %180 }
  0xf8   :  { %v179_v41 = vpop.permute.xlu1 %178 }
  0xfa   :  { %230 = vmatpush1.bf16.msra.mxu0 %v179_v41  ;;  %371 = vmatpush1.bf16.msra.mxu1 %v179_v41 }
  0xfb   :  { %231 = vmatprep.subr.bf16.mxu0 %v402_v3  ;;  %363 = vmatprep.subr.bf16.mxu1 %v402_v3  ;;  %v185_v42 = vpop.permute.xlu0 %184 }
  0xfc   :  { %v183_v43 = vpop.permute.xlu1 %182 }
  0xfd   :  { %v201_v44 = vsel %vm196_vm8, %v181_v40, %v183_v43 }
  0xfe   :  { %232 = vmatpush1.bf16.msra.mxu0 %v201_v44  ;;  %372 = vmatpush1.bf16.msra.mxu1 %v201_v44 }
  0xff   :  { %233 = vmatprep.subr.bf16.mxu0 %v402_v3  ;;  %364 = vmatprep.subr.bf16.mxu1 %v402_v3  ;;  %v189_v46 = vpop.permute.xlu0 %188 }
 0x100   :  { %v187_v45 = vpop.permute.xlu1 %186 }
 0x101   :  { %v202_v47 = vsel %vm196_vm8, %v185_v42, %v187_v45 }
 0x102   :  { %234 = vmatpush1.bf16.msra.mxu0 %v202_v47  ;;  %373 = vmatpush1.bf16.msra.mxu1 %v202_v47 }
 0x103   :  { %235 = vmatprep.subr.bf16.mxu0 %v402_v3  ;;  %365 = vmatprep.subr.bf16.mxu1 %v402_v3  ;;  %v193_v50 = vpop.permute.xlu0 %192 }
 0x104   :  { %v191_v48 = vpop.permute.xlu1 %190 }
 0x105   :  { %v203_v49 = vsel %vm196_vm8, %v189_v46, %v191_v48 }
 0x106   :  { %236 = vmatpush1.bf16.msra.mxu0 %v203_v49  ;;  %374 = vmatpush1.bf16.msra.mxu1 %v203_v49 }
 0x107   :  { %237 = vmatprep.subr.bf16.mxu0 %v402_v3  ;;  %366 = vmatprep.subr.bf16.mxu1 %v402_v3 }
 0x108   :  { %v195_v51 = vpop.permute.xlu1 %194 }
 0x109   :  { %v204_v52 = vsel %vm196_vm8, %v193_v50, %v195_v51 }
 0x10a   :  { %238 = vmatpush1.bf16.msra.mxu0 %v204_v52  ;;  %375 = vmatpush1.bf16.msra.mxu1 %v204_v52 }
 0x10d   :  { %254 = vmatmul.mubr.bf16.vlgmr.msra.gmra.mrb[0].mxu0 %v389_v53  ;;  %262 = vmatmul.mubr.bf16.vlgmr.msra.gmra.mrb[0].mxu1 %v392_v54 }
 0x1e0   :  { %v255_v60 = vpop.f32.mrb[0].mxu0  ;;  %v263_v62 = vpop.f32.mrb[0].mxu1 }
 0x1e1   :  { %vm270_vm10 = vcmp.gt.f32.partialorder %v255_v60, 0.0  ;;  %v274_v63 = vmul.f32 0.2, %v255_v60  ;;  %v276_v0 = vmul.f32 0.2, %v263_v62  ;;  %vm272_vm11 = vcmp.gt.f32.partialorder %v263_v62, 0.0 }
 0x1e2   :  { %v257_v1 = vpop.f32.mrb[1].mxu0  ;;  %v265_v2 = vpop.f32.mrb[1].mxu1 }
 0x1e3   :  { %v258_v4 = vpop.f32.mrb[2].mxu0  ;;  %v266_v5 = vpop.f32.mrb[2].mxu1  ;;  %v278_v6 = vsel %vm270_vm10, %v255_v60, %v274_v63  ;;  %v280_v9 = vsel %vm272_vm11, %v263_v62, %v276_v0 }
 0x1e4   :  { %vm271_vm13 = vcmp.gt.f32.partialorder %v258_v4, 0.0  ;;  %v275_v7 = vmul.f32 0.2, %v258_v4  ;;  %v260_v8 = vpop.f32.mrb[3].mxu0  ;;  %vm273_vm14 = vcmp.gt.f32.partialorder %v266_v5, 0.0  ;;  %v268_v3 = vpop.f32.mrb[3].mxu1 }
 0x1e5   :  { %v277_v10 = vmul.f32 0.2, %v266_v5  ;;  %v290_v12 = vsel %vm289_vm12, %v278_v6, 0.0  ;;  %v292_v15 = vsel %vm289_vm12, %v280_v9, 0.0 }
 0x1e6   :  { %v279_v11 = vsel %vm271_vm13, %v258_v4, %v275_v7 }
 0x1e7   :  { %v291_v13 = vsel %vm289_vm12, %v279_v11, 0.0  ;;  %v281_v14 = vsel %vm273_vm14, %v266_v5, %v277_v10 }
 0x1e8   :  { %v350_v16 = vpack.c.bf16 %v291_v13, %v290_v12  ;;  %v293_v17 = vsel %vm289_vm12, %v281_v14, 0.0 }
 0x1e9   :  { %v355_v18 = vpack.c.bf16 %v293_v17, %v292_v15 }
 0x1ea   :  { %351 = vst [vmem:[%s514_s5] sm:$0xff] %v350_v16  }
 0x1eb   :  { %357 = vst [vmem:[%s514_s5 + $0x8] sm:$0xff] %v355_v18  }

// kernel: unet_forward_nchw.18
= control target key start
LH: loop header
LB: loop body
LE: loop exit
PB: predicated region body
PF: predicated region fallthrough
CT: control target
= control target key end

     0   :  { %s601_s22 = smov 120   ;;  %s602_s23 = smov 121   ;;  %vm162_vm0 = vcmask 982016   ;;  %vm125_vm1 = vcmask 1039360   ;;  %vm173_vm2 = vcmask 949248   ;;  %vm136_vm3 = vcmask 1031168   ;;  %s738_s3 = inlined_call_operand.vmem [shape: bf16[32,128], index: 3, kind: input, shape index: {}, may-alias: {2,3,4}]   ;;  %s739_s4 = inlined_call_operand.vmem [shape: bf16[32,128], index: 4, kind: input, shape index: {}, may-alias: {2,3,4}]   ;;  %s740_s2 = inlined_call_operand.vmem [shape: bf16[32,128], index: 2, kind: input, shape index: {}, may-alias: {2,3,4}]   ;;  %s741_s0 = inlined_call_operand.vmem [shape: bf16[32,288], index: 0, kind: input, shape index: {}]   ;;  %s742_s1 = inlined_call_operand.vmem [shape: f32[1,128], index: 1, kind: input, shape index: {}]   ;;  %s743_s5 = inlined_call_operand.vmem [shape: bf16[32,128], index: 5, kind: output, shape index: {}]  }
   0x1   :  { %v587_v0 = vld [vmem:[%s738_s3] sm:$0xff]   ;;  %v589_v2 = vld [vmem:[%s738_s3 + $0x8] sm:$0xff]   ;;  %s603_s28 = smov 127   ;;  %s604_s3 = smov 116   ;;  %vm184_vm4 = vcmask 941056   ;;  %vm147_vm5 = vcmask 998400  }
   0x2   :  { %v588_v1 = vld [vmem:[%s739_s4] sm:$0xff]   ;;  %154 = vrot.lane.b32.xlu1 %v587_v0, %s601_s22  ;;  %150 = vrot.lane.b32.xlu0 %v587_v0, %s602_s23  ;;  %v591_v4 = vld [vmem:[%s739_s4 + $0x8] sm:$0xff]   ;;  %s605_s8 = smov 126   ;;  %s606_s9 = smov 115   ;;  %vm195_vm6 = vcmask 932864   ;;  %vm339_vm7 = vcmask 261120  }
   0x3   :  { %v590_v3 = vld [vmem:[%s740_s2] sm:$0xff]   ;;  %v592_v5 = vld [vmem:[%s740_s2 + $0x8] sm:$0xff]   ;;  %s607_s4 = smov 122   ;;  %s608_s2 = smov 114   ;;  %vm304_vm8 = vcmask 56320  }
   0x4   :  { %s609_s10 = smov 7   ;;  %v595_v37 = vld [vmem:[%s741_s0 + $0x4] ss:$12 sps:$4 sm:$0xff]   ;;  %v599_v47 = vld [vmem:[%s741_s0 + $0x8] ss:$12 sps:$4 sm:$0xff]  }
   0x5   :  { %378 = vmatprep.mubr.bf16.mxu0 %v595_v37  ;;  %573 = vmatprep.mubr.msk.bf16.mxu1 %vm339_vm7, %v599_v47  ;;  %v456_v47 = vld [vmem:[%s742_s1] sm:$0x1] }
   0x6   :  { %156 = vrot.lane.b32.xlu1 %v588_v1, %s601_s22  ;;  %152 = vrot.lane.b32.xlu0 %v589_v2, %s602_s23  ;;  %vm457_vm9 = vcmp.gt.f32.partialorder %v456_v47, 0.0 }
   0xa   :  { %119 = vrot.lane.b32.xlu1 %v587_v0, %s603_s28  ;;  %117 = vrot.lane.b32.xlu0 %v590_v3, %s603_s28 }
   0xe   :  { %160 = vrot.lane.b32.xlu1 %v591_v4, %s601_s22  ;;  %158 = vrot.lane.b32.xlu0 %v589_v2, %s601_s22 }
  0x12   :  { %123 = vrot.lane.b32.xlu1 %v589_v2, %s603_s28  ;;  %121 = vrot.lane.b32.xlu0 %v592_v5, %s603_s28 }
  0x16   :  { %167 = vrot.lane.b32.xlu1 %v588_v1, %s604_s3  ;;  %165 = vrot.lane.b32.xlu0 %v587_v0, %s604_s3 }
  0x1a   :  { %130 = vrot.lane.b32.xlu1 %v587_v0, %s605_s8  ;;  %128 = vrot.lane.b32.xlu0 %v590_v3, %s605_s8 }
  0x1e   :  { %171 = vrot.lane.b32.xlu1 %v591_v4, %s604_s3  ;;  %169 = vrot.lane.b32.xlu0 %v589_v2, %s604_s3 }
  0x22   :  { %134 = vrot.lane.b32.xlu1 %v589_v2, %s605_s8  ;;  %132 = vrot.lane.b32.xlu0 %v592_v5, %s605_s8 }
  0x26   :  { %178 = vrot.lane.b32.xlu1 %v588_v1, %s606_s9  ;;  %176 = vrot.lane.b32.xlu0 %v587_v0, %s606_s9 }
  0x2a   :  { %141 = vrot.lane.b32.xlu1 %v587_v0, %s607_s4  ;;  %139 = vrot.lane.b32.xlu0 %v590_v3, %s607_s4 }
  0x2e   :  { %182 = vrot.lane.b32.xlu1 %v591_v4, %s606_s9  ;;  %180 = vrot.lane.b32.xlu0 %v589_v2, %s606_s9 }
  0x32   :  { %145 = vrot.lane.b32.xlu1 %v589_v2, %s607_s4  ;;  %143 = vrot.lane.b32.xlu0 %v592_v5, %s607_s4 }
  0x36   :  { %189 = vrot.lane.b32.xlu1 %v588_v1, %s608_s2  ;;  %187 = vrot.lane.b32.xlu0 %v587_v0, %s608_s2 }
  0x3a   :  { %193 = vrot.lane.b32.xlu1 %v591_v4, %s608_s2  ;;  %191 = vrot.lane.b32.xlu0 %v589_v2, %s608_s2 }
  0x3e   :  { %236 = vrot.lane.b32.xlu0 %v590_v3, %s609_s10  ;;  %238 = vrot.lane.b32.xlu1 %v587_v0, %s609_s10 }
  0x42   :  { %242 = vrot.lane.b32.xlu0 %v589_v2, %s609_s10  ;;  %240 = vrot.lane.b32.xlu1 %v592_v5, %s609_s10 }
  0x74   :  { %v155_v6 = vpop.permute.xlu1 %154  ;;  %v151_v7 = vpop.permute.xlu0 %150 }
  0x75   :  { %268 = vrot.lane.b32.xlu0 %v151_v7, %s609_s10 }
  0x78   :  { %v157_v8 = vpop.permute.xlu1 %156  ;;  %v153_v9 = vpop.permute.xlu0 %152 }
  0x79   :  { %270 = vrot.lane.b32.xlu1 %v153_v9, %s609_s10  ;;  %272 = vrot.lane.b32.xlu0 %v155_v6, %s609_s10  ;;  %v163_v29 = vsel %vm162_vm0, %v155_v6, %v157_v8 }
  0x7c   :  { %v120_v10 = vpop.permute.xlu1 %119  ;;  %v118_v11 = vpop.permute.xlu0 %117 }
  0x7d   :  { %246 = vrot.lane.b32.xlu1 %v120_v10, %s609_s10  ;;  %v126_v31 = vsel %vm125_vm1, %v118_v11, %v120_v10 }
  0x80   :  { %v161_v12 = vpop.permute.xlu1 %160  ;;  %v159_v13 = vpop.permute.xlu0 %158 }
  0x81   :  { %276 = vrot.lane.b32.xlu0 %v159_v13, %s609_s10  ;;  %v164_v30 = vsel %vm162_vm0, %v159_v13, %v161_v12 }
  0x84   :  { %v124_v14 = vpop.permute.xlu1 %123  ;;  %v122_v15 = vpop.permute.xlu0 %121 }
  0x85   :  { %250 = vrot.lane.b32.xlu1 %v124_v14, %s609_s10  ;;  %v127_v33 = vsel %vm125_vm1, %v122_v15, %v124_v14 }
  0x88   :  { %v168_v16 = vpop.permute.xlu1 %167  ;;  %v166_v17 = vpop.permute.xlu0 %165 }
  0x89   :  { %280 = vrot.lane.b32.xlu0 %v166_v17, %s609_s10  ;;  %v174_v32 = vsel %vm173_vm2, %v166_v17, %v168_v16 }
  0x8c   :  { %v131_v18 = vpop.permute.xlu1 %130  ;;  %v129_v19 = vpop.permute.xlu0 %128 }
  0x8d   :  { %254 = vrot.lane.b32.xlu1 %v131_v18, %s609_s10  ;;  %v137_v36 = vsel %vm136_vm3, %v129_v19, %v131_v18 }
  0x90   :  { %v172_v20 = vpop.permute.xlu1 %171  ;;  %v170_v21 = vpop.permute.xlu0 %169 }
  0x91   :  { %284 = vrot.lane.b32.xlu0 %v170_v21, %s609_s10  ;;  %v175_v35 = vsel %vm173_vm2, %v170_v21, %v172_v20 }
  0x94   :  { %v135_v22 = vpop.permute.xlu1 %134  ;;  %v133_v23 = vpop.permute.xlu0 %132 }
  0x95   :  { %258 = vrot.lane.b32.xlu1 %v135_v22, %s609_s10  ;;  %v138_v41 = vsel %vm136_vm3, %v133_v23, %v135_v22 }
  0x98   :  { %v179_v24 = vpop.permute.xlu1 %178  ;;  %v177_v25 = vpop.permute.xlu0 %176 }
  0x99   :  { %288 = vrot.lane.b32.xlu0 %v177_v25, %s609_s10  ;;  %v185_v40 = vsel %vm184_vm4, %v177_v25, %v179_v24 }
  0x9c   :  { %v142_v26 = vpop.permute.xlu1 %141  ;;  %v140_v27 = vpop.permute.xlu0 %139 }
  0x9d   :  { %262 = vrot.lane.b32.xlu1 %v142_v26, %s609_s10  ;;  %v148_v43 = vsel %vm147_vm5, %v140_v27, %v142_v26 }
  0xa0   :  { %v181_v28 = vpop.permute.xlu0 %180  ;;  %v183_v34 = vpop.permute.xlu1 %182 }
  0xa1   :  { %274 = vrot.lane.b32.xlu1 %v163_v29, %s609_s10  ;;  %292 = vrot.lane.b32.xlu0 %v181_v28, %s609_s10  ;;  %v186_v42 = vsel %vm184_vm4, %v181_v28, %v183_v34 }
  0xa4   :  { %v146_v38 = vpop.permute.xlu1 %145  ;;  %v144_v39 = vpop.permute.xlu0 %143 }
  0xa5   :  { %278 = vrot.lane.b32.xlu1 %v164_v30, %s609_s10  ;;  %244 = vrot.lane.b32.xlu0 %v126_v31, %s609_s10  ;;  %v149_v46 = vsel %vm147_vm5, %v144_v39, %v146_v38 }
  0xa8   :  { %v190_v44 = vpop.permute.xlu1 %189  ;;  %v188_v45 = vpop.permute.xlu0 %187 }
  0xa9   :  { %282 = vrot.lane.b32.xlu1 %v174_v32, %s609_s10  ;;  %248 = vrot.lane.b32.xlu0 %v127_v33, %s609_s10  ;;  %v196_v48 = vsel %vm195_vm6, %v188_v45, %v190_v44  ;;  %v593_v32 = vld [vmem:[%s741_s0] ss:$12 sps:$4 sm:$0xff]   ;;  %v596_v33 = vld [vmem:[%s741_s0 + $0x1c] ss:$12 sps:$4 sm:$0xff]  }
  0xac   :  { %v194_v49 = vpop.permute.xlu1 %193  ;;  %v192_v50 = vpop.permute.xlu0 %191 }
  0xad   :  { %286 = vrot.lane.b32.xlu1 %v175_v35, %s609_s10  ;;  %252 = vrot.lane.b32.xlu0 %v137_v36, %s609_s10  ;;  %v197_v51 = vsel %vm195_vm6, %v192_v50, %v194_v49 }
  0xb0   :  { %v237_v52 = vpop.permute.xlu0 %236  ;;  %v239_v53 = vpop.permute.xlu1 %238 }
  0xb1   :  { %290 = vrot.lane.b32.xlu1 %v185_v40, %s609_s10  ;;  %256 = vrot.lane.b32.xlu0 %v138_v41, %s609_s10  ;;  %v305_v56 = vsel %vm304_vm8, %v237_v52, %v239_v53  ;;  %v598_v40 = vld [vmem:[%s741_s0 + $0x18] ss:$12 sps:$4 sm:$0xff]   ;;  %v600_v41 = vld [vmem:[%s741_s0 + $0x20] ss:$12 sps:$4 sm:$0xff]   ;;  %v610_v53 = vmov 0  }
  0xb4   :  { %v243_v54 = vpop.permute.xlu0 %242  ;;  %v241_v55 = vpop.permute.xlu1 %240 }
  0xb5   :  { %294 = vrot.lane.b32.xlu1 %v186_v42, %s609_s10  ;;  %260 = vrot.lane.b32.xlu0 %v148_v43, %s609_s10  ;;  %v306_v58 = vsel %vm304_vm8, %v241_v55, %v243_v54  ;;  %v459_v42 = vlaneseq  ;;  %v458_v54 = vsel %vm457_vm9, 1, %v610_v53 }
  0xb7   :  { %v460_v49 = vshrl.u32 %v459_v42, 7 }
  0xb9   :  { %266 = vrot.lane.b32.xlu1 %v146_v38, %s609_s10  ;;  %264 = vrot.lane.b32.xlu0 %v149_v46, %s609_s10 }
  0xbd   :  { %298 = vrot.lane.b32.xlu1 %v196_v48, %s609_s10  ;;  %296 = vrot.lane.b32.xlu0 %v188_v45, %s609_s10 }
  0xc1   :  { %302 = vrot.lane.b32.xlu1 %v197_v51, %s609_s10  ;;  %300 = vrot.lane.b32.xlu0 %v192_v50, %s609_s10  ;;  %v461_v51 = vsub.s32 0, %v460_v49 }
  0xe7   :  { %v269_v57 = vpop.permute.xlu0 %268 }
  0xe8   :  { %537 = vmatprep.subr.bf16.mxu0 %v269_v57 }
  0xe9   :  { %538 = vmatpush3.bf16.msra.mxu0 %v305_v56 }
  0xeb   :  { %v271_v59 = vpop.permute.xlu1 %270  ;;  %v273_v60 = vpop.permute.xlu0 %272 }
  0xec   :  { %539 = vmatprep.subr.bf16.mxu0 %v271_v59 }
  0xed   :  { %540 = vmatpush3.bf16.msra.mxu0 %v306_v58 }
  0xef   :  { %v247_v61 = vpop.permute.xlu1 %246 }
  0xf3   :  { %v277_v62 = vpop.permute.xlu0 %276 }
  0xf7   :  { %v251_v63 = vpop.permute.xlu1 %250 }
  0xfb   :  { %v281_v0 = vpop.permute.xlu0 %280 }
  0xff   :  { %v255_v1 = vpop.permute.xlu1 %254 }
 0x103   :  { %v285_v2 = vpop.permute.xlu0 %284 }
 0x107   :  { %v259_v3 = vpop.permute.xlu1 %258 }
 0x10b   :  { %v289_v4 = vpop.permute.xlu0 %288 }
 0x10f   :  { %v263_v5 = vpop.permute.xlu1 %262 }
 0x113   :  { %v275_v6 = vpop.permute.xlu1 %274  ;;  %v293_v7 = vpop.permute.xlu0 %292 }
 0x114   :  { %v313_v8 = vsel %vm304_vm8, %v273_v60, %v275_v6  ;;  %v462_v60 = vrot.slane %v458_v54, %v461_v51 }
 0x115   :  { %541 = vmatprep.subr.bf16.mxu0 %v313_v8 }
 0x116   :  { %vm463_vm12 = vcmp.eq.s32.totalorder %v462_v60, 1 }
 0x117   :  { %v279_v9 = vpop.permute.xlu1 %278  ;;  %v245_v10 = vpop.permute.xlu0 %244 }
 0x118   :  { %v307_v11 = vsel %vm304_vm8, %v245_v10, %v247_v61  ;;  %v314_v12 = vsel %vm304_vm8, %v277_v62, %v279_v9 }
 0x119   :  { %542 = vmatpush3.bf16.msra.mxu0 %v307_v11 }
 0x11a   :  { %543 = vmatprep.subr.bf16.mxu0 %v314_v12 }
 0x11b   :  { %v283_v13 = vpop.permute.xlu1 %282  ;;  %v249_v14 = vpop.permute.xlu0 %248 }
 0x11c   :  { %v308_v15 = vsel %vm304_vm8, %v249_v14, %v251_v63  ;;  %v315_v16 = vsel %vm304_vm8, %v281_v0, %v283_v13 }
 0x11d   :  { %544 = vmatpush3.bf16.msra.mxu0 %v308_v15 }
 0x11e   :  { %545 = vmatprep.subr.bf16.mxu0 %v315_v16 }
 0x11f   :  { %v287_v17 = vpop.permute.xlu1 %286  ;;  %v253_v18 = vpop.permute.xlu0 %252 }
 0x120   :  { %v309_v19 = vsel %vm304_vm8, %v253_v18, %v255_v1  ;;  %v316_v20 = vsel %vm304_vm8, %v285_v2, %v287_v17 }
 0x121   :  { %546 = vmatpush3.bf16.msra.mxu0 %v309_v19 }
 0x122   :  { %547 = vmatprep.subr.bf16.mxu0 %v316_v20 }
 0x123   :  { %v291_v21 = vpop.permute.xlu1 %290  ;;  %v257_v22 = vpop.permute.xlu0 %256 }
 0x124   :  { %v310_v23 = vsel %vm304_vm8, %v257_v22, %v259_v3  ;;  %v317_v24 = vsel %vm304_vm8, %v289_v4, %v291_v21 }
 0x125   :  { %548 = vmatpush3.bf16.msra.mxu0 %v310_v23 }
 0x126   :  { %549 = vmatprep.subr.bf16.mxu0 %v317_v24 }
 0x127   :  { %v295_v25 = vpop.permute.xlu1 %294  ;;  %v261_v26 = vpop.permute.xlu0 %260 }
 0x128   :  { %v311_v27 = vsel %vm304_vm8, %v261_v26, %v263_v5  ;;  %v318_v28 = vsel %vm304_vm8, %v293_v7, %v295_v25 }
 0x129   :  { %550 = vmatpush3.bf16.msra.mxu0 %v311_v27 }
 0x12a   :  { %551 = vmatprep.subr.bf16.mxu0 %v318_v28 }
 0x12b   :  { %v267_v29 = vpop.permute.xlu1 %266  ;;  %v265_v30 = vpop.permute.xlu0 %264 }
 0x12c   :  { %v312_v31 = vsel %vm304_vm8, %v265_v30, %v267_v29 }
 0x12d   :  { %552 = vmatpush3.bf16.msra.mxu0 %v312_v31 }
 0x12f   :  { %v299_v34 = vpop.permute.xlu1 %298  ;;  %v297_v35 = vpop.permute.xlu0 %296 }
 0x130   :  { %379 = vmatmul.mubr.bf16.vlgmr.msra.gmra.mrb[0].mxu0 %v593_v32  ;;  %v319_v36 = vsel %vm304_vm8, %v297_v35, %v299_v34 }
 0x131   :  { %569 = vmatprep.subr.bf16.mxu1 %v319_v36  ;;  %386 = vmatprep.mubr.bf16.mxu0 %v596_v33 }
 0x132   :  { %570 = vmatpush3.bf16.msra.mxu1 %v319_v36 }
 0x133   :  { %v303_v37 = vpop.permute.xlu1 %302  ;;  %v301_v38 = vpop.permute.xlu0 %300 }
 0x134   :  { %v320_v39 = vsel %vm304_vm8, %v301_v38, %v303_v37 }
 0x135   :  { %571 = vmatprep.subr.bf16.mxu1 %v320_v39 }
 0x136   :  { %572 = vmatpush3.bf16.msra.mxu1 %v320_v39 }
 0x138   :  { %387 = vmatmul.mubr.bf16.gmra.mrb[4].mxu0 %v598_v40 }
 0x139   :  { %574 = vmatmul.mubr.msk.bf16.vlgmr.msra.gmra.mrb[0].mxu1 %vm339_vm7, %v600_v41 }
 0x203   :  { %v553_v43 = vpop.f32.mrb[0].mxu0 }
 0x204   :  { %v554_v44 = vpop.f32.mrb[1].mxu0 }
 0x205   :  { %v555_v45 = vadd.f32 %v554_v44, %v553_v43  ;;  %v556_v46 = vpop.f32.mrb[2].mxu0 }
 0x206   :  { %v557_v48 = vpop.f32.mrb[3].mxu0 }
 0x207   :  { %v558_v50 = vadd.f32 %v557_v48, %v556_v46 }
 0x20b   :  { %v559_v52 = vpop.f32.mrb[4].mxu0 }
 0x20c   :  { %v560_v55 = vpop.f32.mrb[5].mxu0  ;;  %v575_v56 = vpop.f32.mrb[0].mxu1 }
 0x20d   :  { %v561_v57 = vadd.f32 %v560_v55, %v559_v52  ;;  %v562_v58 = vpop.f32.mrb[6].mxu0  ;;  %v429_v59 = vpop.f32.mrb[1].mxu1 }
 0x20e   :  { %v430_v61 = vadd.f32 %v555_v45, %v429_v59  ;;  %v563_v62 = vpop.f32.mrb[7].mxu0  ;;  %v576_v63 = vpop.f32.mrb[2].mxu1 }
 0x20f   :  { %v438_v0 = vadd.f32 %v575_v56, %v561_v57  ;;  %v564_v1 = vadd.f32 %v563_v62, %v562_v58  ;;  %v432_v2 = vpop.f32.mrb[3].mxu1 }
 0x210   :  { %vm444_vm10 = vcmp.gt.f32.partialorder %v430_v61, 0.0  ;;  %v448_v3 = vmul.f32 0.2, %v430_v61  ;;  %v433_v4 = vadd.f32 %v558_v50, %v432_v2 }
 0x211   :  { %vm446_vm11 = vcmp.gt.f32.partialorder %v438_v0, 0.0  ;;  %v450_v5 = vmul.f32 0.2, %v438_v0  ;;  %v441_v6 = vadd.f32 %v576_v63, %v564_v1 }
 0x212   :  { %v452_v7 = vsel %vm444_vm10, %v430_v61, %v448_v3  ;;  %vm445_vm13 = vcmp.gt.f32.partialorder %v433_v4, 0.0  ;;  %v449_v8 = vmul.f32 0.2, %v433_v4 }
 0x213   :  { %v454_v9 = vsel %vm446_vm11, %v438_v0, %v450_v5  ;;  %vm447_vm14 = vcmp.gt.f32.partialorder %v441_v6, 0.0  ;;  %v451_v10 = vmul.f32 0.2, %v441_v6  ;;  %v464_v12 = vsel %vm463_vm12, %v452_v7, 0.0 }
 0x214   :  { %v453_v11 = vsel %vm445_vm13, %v433_v4, %v449_v8  ;;  %v466_v15 = vsel %vm463_vm12, %v454_v9, 0.0 }
 0x215   :  { %v455_v13 = vsel %vm447_vm14, %v441_v6, %v451_v10  ;;  %v465_v14 = vsel %vm463_vm12, %v453_v11, 0.0 }
 0x216   :  { %v467_v16 = vsel %vm463_vm12, %v455_v13, 0.0  ;;  %v529_v17 = vpack.c.bf16 %v465_v14, %v464_v12 }
 0x217   :  { %v534_v18 = vpack.c.bf16 %v467_v16, %v466_v15 }
 0x218   :  { %530 = vst [vmem:[%s743_s5] sm:$0xff] %v529_v17  }
 0x219   :  { %536 = vst [vmem:[%s743_s5 + $0x8] sm:$0xff] %v534_v18  }

// kernel: unet_forward_nchw.19
= control target key start
LH: loop header
LB: loop body
LE: loop exit
PB: predicated region body
PF: predicated region fallthrough
CT: control target
= control target key end

     0   :  { %vm56_vm0 = vcmask 261120   ;;  %s324_s1 = inlined_call_operand.vmem [shape: bf16[32,128], index: 1, kind: input, shape index: {}]   ;;  %s325_s0 = inlined_call_operand.vmem [shape: bf16[64,32], index: 0, kind: input, shape index: {}]   ;;  %s326_s2 = inlined_call_operand.vmem [shape: bf16[64,128], index: 2, kind: output, shape index: {}]  }
   0x1   :  { %v273_v0 = vld [vmem:[%s324_s1] sm:$0xff]   ;;  %v274_v1 = vld [vmem:[%s324_s1 + $0x8] sm:$0xff]   ;;  %v276_v3 = vld [vmem:[%s325_s0 + $0x10] sm:$0xff]  }
   0x2   :  { %257 = vmatprep.subr.bf16.mxu0 %v273_v0  ;;  %269 = vmatprep.subr.bf16.mxu1 %v273_v0  ;;  %v275_v2 = vld [vmem:[%s325_s0] sm:$0xff]   ;;  %v277_v4 = vld [vmem:[%s325_s0 + $0x8] sm:$0xff]   ;;  %v278_v5 = vld [vmem:[%s325_s0 + $0x18] sm:$0xff]  }
   0x3   :  { %258 = vmatpush3.bf16.msra.mxu0 %v273_v0  ;;  %271 = vmatpush3.bf16.msra.mxu1 %v273_v0 }
   0x4   :  { %259 = vmatprep.subr.bf16.mxu0 %v274_v1  ;;  %270 = vmatprep.subr.bf16.mxu1 %v274_v1 }
   0x5   :  { %261 = vmatprep.mubr.msk.bf16.mxu0 %vm56_vm0, %v275_v2  ;;  %265 = vmatprep.mubr.msk.bf16.mxu1 %vm56_vm0, %v276_v3 }
   0x7   :  { %260 = vmatpush3.bf16.msra.mxu0 %v274_v1  ;;  %272 = vmatpush3.bf16.msra.mxu1 %v274_v1 }
   0xa   :  { %262 = vmatmul.mubr.msk.bf16.vlgmr.msra.gmra.mrb[0].mxu0 %vm56_vm0, %v277_v4  ;;  %266 = vmatmul.mubr.msk.bf16.vlgmr.msra.gmra.mrb[0].mxu1 %vm56_vm0, %v278_v5 }
  0xdd   :  { %v263_v6 = vpop.f32.mrb[0].mxu0  ;;  %v267_v7 = vpop.f32.mrb[0].mxu1 }
  0xde   :  { %vm136_vm1 = vcmp.gt.f32.partialorder %v263_v6, 0.0  ;;  %v144_v8 = vmul.f32 0.2, %v263_v6  ;;  %v148_v9 = vmul.f32 0.2, %v267_v7  ;;  %vm140_vm2 = vcmp.gt.f32.partialorder %v267_v7, 0.0 }
  0xdf   :  { %v103_v10 = vpop.f32.mrb[1].mxu0  ;;  %v119_v11 = vpop.f32.mrb[1].mxu1 }
  0xe0   :  { %v142_v12 = vmul.f32 0.2, %v103_v10  ;;  %v264_v13 = vpop.f32.mrb[2].mxu0  ;;  %v268_v14 = vpop.f32.mrb[2].mxu1  ;;  %v152_v15 = vsel %vm136_vm1, %v263_v6, %v144_v8  ;;  %v146_v16 = vmul.f32 0.2, %v119_v11  ;;  %v156_v18 = vsel %vm140_vm2, %v267_v7, %v148_v9 }
  0xe1   :  { %vm137_vm3 = vcmp.gt.f32.partialorder %v264_v13, 0.0  ;;  %v145_v17 = vmul.f32 0.2, %v264_v13  ;;  %vm134_vm4 = vcmp.gt.f32.partialorder %v103_v10, 0.0  ;;  %vm141_vm5 = vcmp.gt.f32.partialorder %v268_v14, 0.0  ;;  %v106_v20 = vpop.f32.mrb[3].mxu0 }
  0xe2   :  { %v149_v19 = vmul.f32 0.2, %v268_v14  ;;  %v122_v21 = vpop.f32.mrb[3].mxu1  ;;  %vm138_vm6 = vcmp.gt.f32.partialorder %v119_v11, 0.0  ;;  %vm135_vm7 = vcmp.gt.f32.partialorder %v106_v20, 0.0  ;;  %v150_v27 = vsel %vm134_vm4, %v103_v10, %v142_v12 }
  0xe3   :  { %v153_v22 = vsel %vm137_vm3, %v264_v13, %v145_v17  ;;  %v143_v23 = vmul.f32 0.2, %v106_v20  ;;  %vm139_vm8 = vcmp.gt.f32.partialorder %v122_v21, 0.0  ;;  %v147_v26 = vmul.f32 0.2, %v122_v21 }
  0xe4   :  { %v236_v24 = vpack.c.bf16 %v153_v22, %v152_v15  ;;  %v157_v25 = vsel %vm141_vm5, %v268_v14, %v149_v19  ;;  %v154_v30 = vsel %vm138_vm6, %v119_v11, %v146_v16 }
  0xe5   :  { %v246_v28 = vpack.c.bf16 %v157_v25, %v156_v18  ;;  %v151_v29 = vsel %vm135_vm7, %v106_v20, %v143_v23  ;;  %v155_v32 = vsel %vm139_vm8, %v122_v21, %v147_v26 }
  0xe6   :  { %248 = vst [vmem:[%s326_s2 + $0x8] sm:$0xff] %v236_v24   ;;  %v231_v31 = vpack.c.bf16 %v151_v29, %v150_v27  ;;  %v241_v33 = vpack.c.bf16 %v155_v32, %v154_v30 }
  0xe7   :  { %250 = vst [vmem:[%s326_s2 + $0x18] sm:$0xff] %v246_v28  }
  0xe8   :  { %232 = vst [vmem:[%s326_s2] sm:$0xff] %v231_v31   ;;  %249 = vst [vmem:[%s326_s2 + $0x10] sm:$0xff] %v241_v33  }

// kernel: unet_forward_nchw.22
= control target key start
LH: loop header
LB: loop body
LE: loop exit
PB: predicated region body
PF: predicated region fallthrough
CT: control target
= control target key end

     0   :  { %vm34_vm0 = vcmask 130048   ;;  %s192_s1 = inlined_call_operand.vmem [shape: bf16[16,128], index: 1, kind: input, shape index: {}]   ;;  %s193_s0 = inlined_call_operand.vmem [shape: bf16[32,16], index: 0, kind: input, shape index: {}]   ;;  %s194_s2 = inlined_call_operand.vmem [shape: bf16[32,128], index: 2, kind: output, shape index: {}]  }
   0x1   :  { %v159_v0 = vld [vmem:[%s192_s1] sm:$0xff]   ;;  %v161_v2 = vld [vmem:[%s193_s0 + $0x8] sm:$0xff]  }
   0x2   :  { %v160_v1 = vld [vmem:[%s193_s0] sm:$0xff]   ;;  %153 = vmatprep.subr.bf16.mxu0 %v159_v0 }
   0x3   :  { %154 = vmatpush3.bf16.msra.mxu0 %v159_v0  ;;  %155 = vmatprep.mubr.msk.bf16.mxu0 %vm34_vm0, %v160_v1 }
   0x6   :  { %156 = vmatmul.mubr.msk.bf16.vlgmr.msra.gmra.mrb[0].mxu0 %vm34_vm0, %v161_v2 }
  0xd9   :  { %v157_v3 = vpop.f32.mrb[0].mxu0 }
  0xda   :  { %v96_v4 = vmul.f32 0.2, %v157_v3  ;;  %v75_v5 = vpop.f32.mrb[1].mxu0  ;;  %vm92_vm1 = vcmp.gt.f32.partialorder %v157_v3, 0.0 }
  0xdb   :  { %v94_v6 = vmul.f32 0.2, %v75_v5  ;;  %v158_v7 = vpop.f32.mrb[2].mxu0  ;;  %vm90_vm2 = vcmp.gt.f32.partialorder %v75_v5, 0.0 }
  0xdc   :  { %vm93_vm3 = vcmp.gt.f32.partialorder %v158_v7, 0.0  ;;  %v97_v8 = vmul.f32 0.2, %v158_v7  ;;  %v78_v9 = vpop.f32.mrb[3].mxu0  ;;  %v100_v11 = vsel %vm92_vm1, %v157_v3, %v96_v4 }
  0xdd   :  { %vm91_vm4 = vcmp.gt.f32.partialorder %v78_v9, 0.0  ;;  %v95_v10 = vmul.f32 0.2, %v78_v9  ;;  %v98_v13 = vsel %vm90_vm2, %v75_v5, %v94_v6 }
  0xde   :  { %v101_v12 = vsel %vm93_vm3, %v158_v7, %v97_v8 }
  0xdf   :  { %v147_v14 = vpack.c.bf16 %v101_v12, %v100_v11  ;;  %v99_v15 = vsel %vm91_vm4, %v78_v9, %v95_v10 }
  0xe0   :  { %v142_v16 = vpack.c.bf16 %v99_v15, %v98_v13 }
  0xe1   :  { %149 = vst [vmem:[%s194_s2 + $0x8] sm:$0xff] %v147_v14  }
  0xe2   :  { %143 = vst [vmem:[%s194_s2] sm:$0xff] %v142_v16  }

// kernel: unet_forward_nchw.20
= control target key start
LH: loop header
LB: loop body
LE: loop exit
PB: predicated region body
PF: predicated region fallthrough
CT: control target
= control target key end

     0   :  { %s1846_s0 = inlined_call_operand.vmem [shape: bf16[16,288], index: 0, kind: input, shape index: {}]   ;;  %s1847_s1 = inlined_call_operand.vmem [shape: f32[1,256], index: 1, kind: input, shape index: {}]   ;;  %s1848_s2 = inlined_call_operand.vmem [shape: bf16[16,256], index: 2, kind: input, shape index: {}, may-alias: {2,3,4}]   ;;  %s1849_s3 = inlined_call_operand.vmem [shape: bf16[16,256], index: 3, kind: input, shape index: {}, may-alias: {2,3,4}]   ;;  %s1850_s4 = inlined_call_operand.vmem [shape: bf16[16,256], index: 4, kind: input, shape index: {}, may-alias: {2,3,4}]   ;;  %s1851_s5 = inlined_call_operand.vmem [shape: bf16[16,256], index: 5, kind: input, shape index: {}, may-alias: {5,6,7}]   ;;  %s1852_s6 = inlined_call_operand.vmem [shape: bf16[16,256], index: 6, kind: input, shape index: {}, may-alias: {5,6,7}]   ;;  %s1853_s7 = inlined_call_operand.vmem [shape: bf16[16,256], index: 7, kind: input, shape index: {}, may-alias: {5,6,7}]   ;;  %s1854_s8 = inlined_call_operand.vmem [shape: bf16[16,256], index: 8, kind: output, shape index: {}]  }
   0x1   :  { %1860 = sst [smem:[#allocation15_spill]] %s1847_s1 }
   0x2   :  { %1861 = sst [smem:[#allocation16_spill]] %s1854_s8 }
   0x3   :  { %s1577_s27 = smov 0   ;;  %s1579_s28 = smov 0  }
   0x4   :  { %s1581_s29 = smov 0   ;;  %s1583_s30 = smov 0  }
   0x5   :  { %s1585_s9 = smov 0   ;;  %s1587_s10 = smov 0  }
   0x6   :  { %s1589_s11 = smov 0  }
   0x7 LB: > { %s1613_s12 = sadd.s32 4294967295, %s1518_s11   ;;  %s1616_s13 = sadd.s32 1, %s1518_s11   ;;  %s1518_s11 = sphi %s1589_s11, %s1877_s11   ;;  %s1514_s10 = sphi %s1587_s10, %s1886_s10   ;;  %s1510_s9 = sphi %s1585_s9, %s1885_s9   ;;  %s1506_s30 = sphi %s1583_s30, %s1884_s30   ;;  %s1502_s29 = sphi %s1581_s29, %s1883_s29   ;;  %s1498_s28 = sphi %s1579_s28, %s1882_s28   ;;  %s1494_s27 = sphi %s1577_s27, %s1881_s27  }
   0x8   : > { %1862 = sst [smem:[#allocation9_spill]] %s1613_s12  ;;  %p70_p0 = scmp.gt.s32.totalorder %s1613_s12, 0 }
   0x9   : > { %1863 = sst [smem:[#allocation10_spill]] %s1616_s13  ;;  %s1303_s14 = sadd.s32 4294967295, %s1616_s13 }
   0xa   : > { %p73_p1 = scmp.gt.s32.totalorder %s1303_s14, 0  ;;  %s78_s15 = sadd.s32 1, %s1514_s10 }
   0xb   : > { %s1622_s16 = scalar_select %p70_p0, %s1613_s12, 0 }
   0xc   : > { %s1888_s14 = smov (!%p73_p1, %s1303_s14), 0  ;;  %p85_p2 = scmp.ne.s32.totalorder %s1514_s10, %s1510_s9 }
   0xd   : > { %p86_p3 = scmp.eq.s32.totalorder %s1518_s11, 0  ;;  %s75_s17 = ssub.s32 %s1622_s16, %s1888_s14 }
   0xe   : > { %s101_s18 = ssub.s32 %s1518_s11, %s1616_s13  ;;  %p76_p4 = scmp.eq.s32.totalorder %s75_s17, 0 }
   0xf   : > { %p1632_p5 = por %p86_p3, %p85_p2  ;;  %p102_p6 = scmp.eq.s32.totalorder %s101_s18, 0 }
  0x10   : > { %s104_s20 = sadd.s32 1, %s1506_s30  ;;  %p111_p7 = scmp.ne.s32.totalorder %s1506_s30, %s1502_s29 }
  0x11   : > { %s1638_s21 = scalar_select %p76_p4, %s1514_s10, %s78_s15  }
  0x12   : > { %s1641_s22 = scalar_select %p102_p6, %s1506_s30, %s104_s20  }
  0x13   : > { %1865 = sst [smem:[#allocation11_spill]] %s1638_s21  ;;  %p128_p8 = scmp.lt.s32.totalorder %s1616_s13, 1 }
  0x14   : > { %1866 = sst [smem:[#allocation12_spill]] %s1641_s22  ;;  %s130_s23 = sadd.s32 1, %s1616_s13 }
  0x15   : > { %p1652_p9 = por %p111_p7, %p86_p3  ;;  %p131_p10 = scmp.lt.s32.totalorder %s130_s23, 1 }
  0x16   : > { %s1657_s25 = scalar_select %p128_p8, %s1616_s13, 1 }
  0x17   : > { %s1890_s23 = smov (!%p131_p10, %s130_s23), 1  ;;  %p143_p11 = scmp.ne.s32.totalorder %s1498_s28, %s1494_s27 }
  0x18   : > { %p263_p12 = scmp.eq.s32.totalorder %s1613_s12, 1  ;;  %s133_s26 = ssub.s32 %s1657_s25, %s1890_s23 }
  0x19   : > { %s136_s14 = sadd.s32 1, %s1498_s28  ;;  %p134_p13 = scmp.eq.s32.totalorder %s133_s26, 0 }
  0x1a   : > { %p1666_p0 = por %p143_p11, %p86_p3  ;;  %p1673_p1 = por %p263_p12, %p111_p7 }
  0x1b   : > { %s1678_s18 = scalar_select %p134_p13, %s1498_s28, %s136_s14  }
  0x1c   : > { %s1869_s17 = scalar_select %p1673_p1, 1, 0 }
  0x1d   : > { %1871 = sst [smem:[#allocation14_spill]] %s1678_s18  ;;  %p1307_p2 = scmp.ge.s32.totalorder %s1518_s11, 2 }
  0x1e   : > { %1870 = sst [smem:[#allocation13_spill]] %s1869_s17 }
  0x1f   : > { %288 = sbr.rel (%p1307_p2) target bundleno = 80 (0x50), region = 20 }
  0x26   : > { %297 = sbr.rel (!%p1632_p5) target bundleno = 45 (0x2d), region = 28  ;;  %s299_s20 = sand.u32 (%p1632_p5), 1, %s1514_s10  }
  0x27   : > { %s1310_s23 = sshll.u32 (%p1632_p5), %s1622_s16, 2  ;;  %s1308_s26 = sshll.u32 (%p1632_p5), %s299_s20, 3 }
  0x28   : > { %s306_s13 = scalar_lea.vmem (%p1632_p5), %s1848_s2, %s1310_s23  ;;  %s301_s8 = scalar_lea.vmem (%p1632_p5), [#allocation2], %s1308_s26 }
  0x29   : > { %v322_v0 = vld [vmem:[%s306_s13] sm:$0xf] (%p1632_p5)  ;;  %v324_v1 = vld [vmem:[%s306_s13 + $0x8] sm:$0xf] (%p1632_p5) }
  0x2a   : > { %323 = vst [vmem:[%s301_s8] sm:$0xf] (%p1632_p5), %v322_v0  ;;  %325 = vst [vmem:[%s301_s8 + $0x4] sm:$0xf] (%p1632_p5), %v324_v1 }
  0x2d PF: > { %352 = sbr.rel (!%p1652_p9) target bundleno = 52 (0x34), region = 69  ;;  %s354_s14 = sand.u32 (%p1652_p9), 1, %s1506_s30  }
  0x2e   : > { %s1312_s18 = sshll.u32 (%p1652_p9), %s1518_s11, 2  ;;  %s1311_s17 = sshll.u32 (%p1652_p9), %s354_s14, 3 }
  0x2f   : > { %s358_s12 = scalar_lea.vmem (%p1652_p9), %s1849_s3, %s1312_s18  ;;  %s356_s21 = scalar_lea.vmem (%p1652_p9), [#allocation3], %s1311_s17 }
  0x30   : > { %v374_v2 = vld [vmem:[%s358_s12] sm:$0xf] (%p1652_p9)  ;;  %v376_v3 = vld [vmem:[%s358_s12 + $0x8] sm:$0xf] (%p1652_p9) }
  0x31   : > { %375 = vst [vmem:[%s356_s21] sm:$0xf] (%p1652_p9), %v374_v2  ;;  %377 = vst [vmem:[%s356_s21 + $0x4] sm:$0xf] (%p1652_p9), %v376_v3 }
  0x34 PF: > { %404 = sbr.rel (!%p1666_p0) target bundleno = 59 (0x3b), region = 110  ;;  %s406_s8 = sand.u32 (%p1666_p0), 1, %s1498_s28  }
  0x35   : > { %s1314_s13 = sshll.u32 (%p1666_p0), %s1657_s25, 2  ;;  %s1313_s22 = sshll.u32 (%p1666_p0), %s406_s8, 3 }
  0x36   : > { %s413_s14 = scalar_lea.vmem (%p1666_p0), %s1850_s4, %s1314_s13  ;;  %s408_s1 = scalar_lea.vmem (%p1666_p0), [#allocation4], %s1313_s22 }
  0x37   : > { %v429_v4 = vld [vmem:[%s413_s14] sm:$0xf] (%p1666_p0)  ;;  %v431_v5 = vld [vmem:[%s413_s14 + $0x8] sm:$0xf] (%p1666_p0) }
  0x38   : > { %430 = vst [vmem:[%s408_s1] sm:$0xf] (%p1666_p0), %v429_v4  ;;  %432 = vst [vmem:[%s408_s1 + $0x4] sm:$0xf] (%p1666_p0), %v431_v5 }
  0x3b PF: > { %459 = sbr.rel (!%p1632_p5) target bundleno = 66 (0x42), region = 151  ;;  %s461_s12 = sand.u32 (%p1632_p5), 1, %s1514_s10  }
  0x3c   : > { %s1317_s17 = sshll.u32 (%p1632_p5), %s1622_s16, 2  ;;  %s1315_s18 = sshll.u32 (%p1632_p5), %s461_s12, 3 }
  0x3d   : > { %s468_s8 = scalar_lea.vmem (%p1632_p5), %s1851_s5, %s1317_s17  ;;  %s463_s13 = scalar_lea.vmem (%p1632_p5), [#allocation5], %s1315_s18 }
  0x3e   : > { %v484_v6 = vld [vmem:[%s468_s8] sm:$0xf] (%p1632_p5)  ;;  %v486_v7 = vld [vmem:[%s468_s8 + $0x8] sm:$0xf] (%p1632_p5) }
  0x3f   : > { %485 = vst [vmem:[%s463_s13] sm:$0xf] (%p1632_p5), %v484_v6  ;;  %487 = vst [vmem:[%s463_s13 + $0x4] sm:$0xf] (%p1632_p5), %v486_v7 }
  0x42 PF: > { %514 = sbr.rel (!%p1652_p9) target bundleno = 73 (0x49), region = 192  ;;  %s516_s19 = sand.u32 (%p1652_p9), 1, %s1506_s30  }
  0x43   : > { %s1319_s22 = sshll.u32 (%p1652_p9), %s1518_s11, 2  ;;  %s1318_s23 = sshll.u32 (%p1652_p9), %s516_s19, 3 }
  0x44   : > { %s520_s14 = scalar_lea.vmem (%p1652_p9), %s1852_s6, %s1319_s22  ;;  %s518_s1 = scalar_lea.vmem (%p1652_p9), [#allocation6], %s1318_s23 }
  0x45   : > { %v536_v8 = vld [vmem:[%s520_s14] sm:$0xf] (%p1652_p9)  ;;  %v538_v9 = vld [vmem:[%s520_s14 + $0x8] sm:$0xf] (%p1652_p9) }
  0x46   : > { %537 = vst [vmem:[%s518_s1] sm:$0xf] (%p1652_p9), %v536_v8  ;;  %539 = vst [vmem:[%s518_s1 + $0x4] sm:$0xf] (%p1652_p9), %v538_v9 }
  0x49 PF: > { %566 = sbr.rel (!%p1666_p0) target bundleno = 80 (0x50), region = 233  ;;  %s568_s24 = sand.u32 (%p1666_p0), 1, %s1498_s28  }
  0x4a   : > { %s1321_s12 = sshll.u32 (%p1666_p0), %s1657_s25, 2  ;;  %s1320_s17 = sshll.u32 (%p1666_p0), %s568_s24, 3 }
  0x4b   : > { %s575_s21 = scalar_lea.vmem (%p1666_p0), %s1853_s7, %s1321_s12  ;;  %s570_s8 = scalar_lea.vmem (%p1666_p0), [#allocation7], %s1320_s17 }
  0x4c   : > { %v591_v10 = vld [vmem:[%s575_s21] sm:$0xf] (%p1666_p0)  ;;  %v593_v11 = vld [vmem:[%s575_s21 + $0x8] sm:$0xf] (%p1666_p0) }
  0x4d   : > { %592 = vst [vmem:[%s570_s8] sm:$0xf] (%p1666_p0), %v591_v10  ;;  %594 = vst [vmem:[%s570_s8 + $0x4] sm:$0xf] (%p1666_p0), %v593_v11 }
  0x50 PF: > { %p1322_p3 = scmp.ge.s32.totalorder %s1518_s11, 1  ;;  %p620_p4 = scmp.lt.s32.totalorder %s1518_s11, 3 }
  0x52   : > { %p621_p5 = pnand %p1322_p3, %p620_p4 }
  0x53   : > { %s634_s25 = sand.u32 (!%p621_p5), 1, %s1502_s29   ;;  %s641_s19 = sand.u32 (!%p621_p5), 1, %s1494_s27   ;;  %vm779_vm0 = vcmask (!%p621_p5), 1039360   ;;  %vm817_vm1 = vcmask (!%p621_p5), 867328   ;;  %vm799_vm2 = vcmask (!%p621_p5), 949248   ;;  %vm805_vm3 = vcmask (!%p621_p5), 883712  }
  0x54   : > { %624 = sbr.rel (%p621_p5) target bundleno = 673 (0x2a1), region = 274  ;;  %s1726_s15 = sshll.u32 (!%p621_p5), %s634_s25, 3  ;;  %vm785_vm4 = vcmask (!%p621_p5), 1031168   ;;  %vm811_vm5 = vcmask (!%p621_p5), 875520   ;;  %vm791_vm6 = vcmask (!%p621_p5), 965632   ;;  %v1529_v60 = vmov (!%p621_p5), 0.0  }
  0x55   : > { %s657_s13 = scalar_lea.vmem (!%p621_p5), [#allocation6], %s1726_s15  ;;  %s636_s22 = scalar_lea.vmem (!%p621_p5), [#allocation3], %s1726_s15  ;;  %1378 = vmatprep.subr.bf16.mxu1 (!%p621_p5), %v1529_v60  ;;  %v1462_v61 = vld [vmem:[%s1846_s0 + $0x4] ss:$12 sps:$4 sm:$0xff] (!%p621_p5)   ;;  %vm1530_vm7 = vmmov (!%p621_p5), 0   ;;  %vm946_vm8 = vcmask (!%p621_p5), 89088  }
  0x56   : > { %v1729_v12 = vld [vmem:[%s657_s13] sm:$0xff] (!%p621_p5)   ;;  %v1455_v13 = vld [vmem:[%s636_s22] sm:$0xff] (!%p621_p5)   ;;  %s1325_s23 = sshll.u32 (!%p621_p5), %s641_s19, 3  ;;  %s1520_s16 = smov (!%p621_p5), 127   ;;  %1017 = vmatprep.mubr.bf16.mxu0 (!%p621_p5), %v1462_v61  ;;  %1382 = vmatprep.mubr.msk.bf16.mxu1 (!%p621_p5), %vm1530_vm7, %v1529_v60  ;;  %vm981_vm9 = vcmask (!%p621_p5), 261120  }
  0x57   : > { %821 = vrot.lane.b32.xlu0 (!%p621_p5), %v1729_v12, %s1520_s16  ;;  %s1521_s11 = smov (!%p621_p5), 106   ;;  %s664_s26 = scalar_lea.vmem (!%p621_p5), [#allocation7], %s1325_s23 }
  0x58   : > { %813 = vrot.lane.b32.xlu1 (!%p621_p5), %v1455_v13, %s1521_s11  ;;  %v1456_v14 = vld [vmem:[%s664_s26] sm:$0xff] (!%p621_p5)   ;;  %s627_s14 = sand.u32 (!%p621_p5), 1, %s1510_s9   ;;  %s643_s29 = scalar_lea.vmem (!%p621_p5), [#allocation4], %s1325_s23 }
  0x59   : > { %v1457_v15 = vld [vmem:[%s643_s29] sm:$0xff] (!%p621_p5)   ;;  %s1323_s1 = sshll.u32 (!%p621_p5), %s627_s14, 3  ;;  %s1522_s27 = smov (!%p621_p5), 126  }
  0x5a   : > { %s629_s24 = scalar_lea.vmem (!%p621_p5), [#allocation2], %s1323_s1  ;;  %s650_s12 = scalar_lea.vmem (!%p621_p5), [#allocation5], %s1323_s1 }
  0x5b   : > { %846 = vrot.lane.b32.xlu0 %v1456_v14, %s1520_s16  ;;  %v1458_v16 = vld [vmem:[%s629_s24] sm:$0xff]   ;;  %v1459_v17 = vld [vmem:[%s650_s12] sm:$0xff]   ;;  %s1523_s17 = smov 118   ;;  %s1524_s9 = smov 117  }
  0x5c   : > { %815 = vrot.lane.b32.xlu1 %v1457_v15, %s1521_s11  ;;  %s1525_s18 = smov 116   ;;  %s1526_s20 = smov 108  }
  0x5d   : > { %s1527_s21 = smov 107   ;;  %s1528_s8 = smov 11  }
  0x5e   : > { %s1872_s23 = sld [smem:[#allocation9_spill]]  ;;  %s1873_s29 = sld [smem:[#allocation15_spill]] }
  0x5f   : > { %775 = vrot.lane.b32.xlu0 %v1458_v16, %s1520_s16  ;;  %s716_s24 = scalar_lea.vmem [#allocation8], %s1726_s15 }
  0x60   : > { %777 = vrot.lane.b32.xlu1 %v1455_v13, %s1520_s16 }
  0x63   : > { %819 = vrot.lane.b32.xlu0 %v1459_v17, %s1520_s16 }
  0x64   : > { %781 = vrot.lane.b32.xlu1 %v1458_v16, %s1522_s27  ;;  %p717_p6 = scmp.lt.s32.totalorder %s1872_s23, 1 }
  0x66   : > { %s1892_s23 = smov (!%p717_p6, %s1872_s23), 1 }
  0x67   : > { %783 = vrot.lane.b32.xlu0 %v1455_v13, %s1522_s27  ;;  %s719_s1 = scalar_lea.vmem %s1873_s29, %s1892_s23 }
  0x68   : > { %824 = vrot.lane.b32.xlu1 %v1459_v17, %s1522_s27  ;;  %v1073_v61 = vld [vmem:[%s719_s1] sm:$0x1] }
  0x69   : > { %vm1074_vm10 = vcmp.gt.f32.partialorder %v1073_v61, 0.0 }
  0x6b   : > { %826 = vrot.lane.b32.xlu0 %v1729_v12, %s1522_s27  ;;  %s1875_s27 = sld [smem:[#allocation9_spill]] (%p1673_p1) }
  0x6c   : > { %787 = vrot.lane.b32.xlu1 %v1458_v16, %s1523_s17 }
  0x6f   : > { %789 = vrot.lane.b32.xlu0 %v1455_v13, %s1523_s17 }
  0x70   : > { %829 = vrot.lane.b32.xlu1 %v1459_v17, %s1523_s17 }
  0x73   : > { %831 = vrot.lane.b32.xlu0 %v1729_v12, %s1523_s17  ;;  %s1343_s17 = sshll.u32 (%p1673_p1), %s1875_s27, 2 }
  0x74   : > { %793 = vrot.lane.b32.xlu1 %v1455_v13, %s1524_s9 }
  0x77   : > { %795 = vrot.lane.b32.xlu0 %v1455_v13, %s1525_s18 }
  0x78   : > { %797 = vrot.lane.b32.xlu1 %v1457_v15, %s1525_s18 }
  0x7b   : > { %834 = vrot.lane.b32.xlu0 %v1729_v12, %s1524_s9 }
  0x7c   : > { %836 = vrot.lane.b32.xlu1 %v1729_v12, %s1525_s18 }
  0x7f   : > { %838 = vrot.lane.b32.xlu0 %v1456_v14, %s1525_s18 }
  0x80   : > { %801 = vrot.lane.b32.xlu1 %v1455_v13, %s1526_s20 }
  0x83   : > { %803 = vrot.lane.b32.xlu0 %v1457_v15, %s1526_s20 }
  0x84   : > { %841 = vrot.lane.b32.xlu1 %v1729_v12, %s1526_s20 }
  0x87   : > { %843 = vrot.lane.b32.xlu0 %v1456_v14, %s1526_s20  ;;  %s1876_s20 = sld [smem:[#allocation16_spill]] (%p1673_p1) }
  0x88   : > { %849 = vrot.lane.b32.xlu1 %v1729_v12, %s1527_s21 }
  0x8b   : > { %851 = vrot.lane.b32.xlu0 %v1456_v14, %s1527_s21 }
  0x8c   : > { %807 = vrot.lane.b32.xlu1 %v1455_v13, %s1527_s21 }
  0x8f   : > { %809 = vrot.lane.b32.xlu0 %v1457_v15, %s1527_s21 }
  0x90   : > { %878 = vrot.lane.b32.xlu1 %v1458_v16, %s1528_s8 }
  0x93   : > { %880 = vrot.lane.b32.xlu0 %v1455_v13, %s1528_s8 }
  0xc9   : > { %v822_v18 = vpop.permute.xlu0 %821 }
  0xca   : > { %v814_v19 = vpop.permute.xlu1 %813 }
  0xcb   : > { %908 = vrot.lane.b32.xlu1 %v814_v19, %s1528_s8 }
  0xcd   : > { %v847_v20 = vpop.permute.xlu0 %846 }
  0xce   : > { %v816_v21 = vpop.permute.xlu1 %815  ;;  %855 = vrot.lane.b32.xlu0 %v847_v20, %s1527_s21  ;;  %v848_v22 = vsel %vm779_vm0, %v822_v18, %v847_v20 }
  0xcf   : > { %853 = vrot.lane.b32.xlu1 %v848_v22, %s1527_s21  ;;  %v818_v37 = vsel %vm817_vm1, %v814_v19, %v816_v21  ;;  %s1101_s21 = scalar_lea.vmem (%p1673_p1), %s1876_s20, %s1343_s17 }
  0xd1   : > { %v776_v23 = vpop.permute.xlu0 %775 }
  0xd2   : > { %v778_v24 = vpop.permute.xlu1 %777  ;;  %914 = vrot.lane.b32.xlu0 %v1729_v12, %s1528_s8 }
  0xd3   : > { %912 = vrot.lane.b32.xlu1 %v1459_v17, %s1528_s8  ;;  %v780_v45 = vsel %vm779_vm0, %v776_v23, %v778_v24 }
  0xd5   : > { %v820_v25 = vpop.permute.xlu0 %819 }
  0xd6   : > { %v782_v26 = vpop.permute.xlu1 %781  ;;  %884 = vrot.lane.b32.xlu0 %v778_v24, %s1528_s8  ;;  %v823_v48 = vsel %vm779_vm0, %v820_v25, %v822_v18 }
  0xd9   : > { %v784_v27 = vpop.permute.xlu0 %783 }
  0xda   : > { %v825_v28 = vpop.permute.xlu1 %824  ;;  %918 = vrot.lane.b32.xlu0 %v822_v18, %s1528_s8  ;;  %v786_v52 = vsel %vm785_vm4, %v782_v26, %v784_v27 }
  0xdd   : > { %v827_v29 = vpop.permute.xlu0 %826 }
  0xde   : > { %v788_v30 = vpop.permute.xlu1 %787  ;;  %888 = vrot.lane.b32.xlu0 %v784_v27, %s1528_s8  ;;  %v828_v56 = vsel %vm785_vm4, %v825_v28, %v827_v29 }
  0xe1   : > { %v790_v31 = vpop.permute.xlu0 %789 }
  0xe2   : > { %v830_v32 = vpop.permute.xlu1 %829  ;;  %922 = vrot.lane.b32.xlu0 %v827_v29, %s1528_s8  ;;  %v792_v58 = vsel %vm791_vm6, %v788_v30, %v790_v31 }
  0xe5   : > { %v832_v33 = vpop.permute.xlu0 %831 }
  0xe6   : > { %v794_v34 = vpop.permute.xlu1 %793  ;;  %892 = vrot.lane.b32.xlu0 %v790_v31, %s1528_s8  ;;  %v833_v59 = vsel %vm791_vm6, %v830_v32, %v832_v33 }
  0xe7   : > { %894 = vrot.lane.b32.xlu1 %v794_v34, %s1528_s8 }
  0xe9   : > { %v796_v35 = vpop.permute.xlu0 %795 }
  0xea   : > { %v798_v36 = vpop.permute.xlu1 %797  ;;  %926 = vrot.lane.b32.xlu0 %v832_v33, %s1528_s8 }
  0xeb   : > { %v800_v62 = vsel %vm799_vm2, %v796_v35, %v798_v36 }
  0xed   : > { %v835_v38 = vpop.permute.xlu0 %834 }
  0xee   : > { %v837_v39 = vpop.permute.xlu1 %836  ;;  %910 = vrot.lane.b32.xlu0 %v818_v37, %s1528_s8 }
  0xef   : > { %930 = vrot.lane.b32.xlu1 %v837_v39, %s1528_s8 }
  0xf1   : > { %v839_v40 = vpop.permute.xlu0 %838 }
  0xf2   : > { %v802_v41 = vpop.permute.xlu1 %801  ;;  %896 = vrot.lane.b32.xlu0 %v796_v35, %s1528_s8  ;;  %v840_v44 = vsel %vm799_vm2, %v837_v39, %v839_v40 }
  0xf3   : > { %900 = vrot.lane.b32.xlu1 %v802_v41, %s1528_s8 }
  0xf5   : > { %v804_v42 = vpop.permute.xlu0 %803 }
  0xf6   : > { %v842_v43 = vpop.permute.xlu1 %841  ;;  %928 = vrot.lane.b32.xlu0 %v835_v38, %s1528_s8  ;;  %v806_v47 = vsel %vm805_vm3, %v802_v41, %v804_v42 }
  0xf7   : > { %934 = vrot.lane.b32.xlu1 %v842_v43, %s1528_s8 }
  0xf9   : > { %v844_v46 = vpop.permute.xlu0 %843 }
  0xfa   : > { %932 = vrot.lane.b32.xlu0 %v840_v44, %s1528_s8  ;;  %v850_v49 = vpop.permute.xlu1 %849  ;;  %v845_v51 = vsel %vm805_vm3, %v842_v43, %v844_v46 }
  0xfb   : > { %882 = vrot.lane.b32.xlu1 %v780_v45, %s1528_s8 }
  0xfd   : > { %v852_v50 = vpop.permute.xlu0 %851 }
  0xfe   : > { %902 = vrot.lane.b32.xlu0 %v806_v47, %s1528_s8  ;;  %v857_v53 = vsel %vm811_vm5, %v850_v49, %v852_v50  ;;  %v808_v54 = vpop.permute.xlu1 %807 }
  0xff   : > { %916 = vrot.lane.b32.xlu1 %v823_v48, %s1528_s8 }
 0x101   : > { %v810_v55 = vpop.permute.xlu0 %809 }
 0x102   : > { %936 = vrot.lane.b32.xlu0 %v845_v51, %s1528_s8  ;;  %v812_v57 = vsel %vm811_vm5, %v808_v54, %v810_v55  ;;  %v879_v63 = vpop.permute.xlu1 %878 }
 0x103   : > { %886 = vrot.lane.b32.xlu1 %v786_v52, %s1528_s8 }
 0x105   : > { %v881_v0 = vpop.permute.xlu0 %880 }
 0x106   : > { %940 = vrot.lane.b32.xlu0 %v857_v53, %s1528_s8  ;;  %v947_v18 = vsel %vm946_vm8, %v879_v63, %v881_v0  ;;  %v1463_v53 = vld [vmem:[%s1846_s0 + $0x8] ss:$12 sps:$4 sm:$0xff]   ;;  %v1531_v0 = vmov 0  }
 0x107   : > { %920 = vrot.lane.b32.xlu1 %v828_v56, %s1528_s8 }
 0x10a   : > { %906 = vrot.lane.b32.xlu0 %v812_v57, %s1528_s8 }
 0x10b   : > { %890 = vrot.lane.b32.xlu1 %v792_v58, %s1528_s8 }
 0x10f   : > { %924 = vrot.lane.b32.xlu1 %v833_v59, %s1528_s8 }
 0x113   : > { %898 = vrot.lane.b32.xlu1 %v800_v62, %s1528_s8 }
 0x117   : > { %938 = vrot.lane.b32.xlu1 %v850_v49, %s1528_s8  ;;  %v1460_v49 = vld [vmem:[%s1846_s0] ss:$12 sps:$4 sm:$0xff]  }
 0x11b   : > { %904 = vrot.lane.b32.xlu1 %v808_v54, %s1528_s8 }
 0x13d   : > { %v909_v1 = vpop.permute.xlu1 %908 }
 0x140   : > { %v856_v2 = vpop.permute.xlu0 %855 }
 0x141   : > { %v854_v3 = vpop.permute.xlu1 %853 }
 0x142   : > { %942 = vrot.lane.b32.xlu1 %v854_v3, %s1528_s8  ;;  %v858_v4 = vsel %vm811_vm5, %v854_v3, %v856_v2 }
 0x143   : > { %944 = vrot.lane.b32.xlu0 %v858_v4, %s1528_s8 }
 0x144   : > { %v915_v5 = vpop.permute.xlu0 %914 }
 0x145   : > { %v913_v10 = vpop.permute.xlu1 %912 }
 0x146   : > { %v955_v17 = vsel %vm946_vm8, %v913_v10, %v915_v5 }
 0x148   : > { %v885_v6 = vpop.permute.xlu0 %884 }
 0x14c   : > { %v919_v7 = vpop.permute.xlu0 %918 }
 0x150   : > { %v889_v8 = vpop.permute.xlu0 %888 }
 0x154   : > { %v923_v9 = vpop.permute.xlu0 %922 }
 0x158   : > { %v893_v11 = vpop.permute.xlu0 %892 }
 0x159   : > { %v895_v12 = vpop.permute.xlu1 %894 }
 0x15c   : > { %v927_v13 = vpop.permute.xlu0 %926 }
 0x160   : > { %v911_v14 = vpop.permute.xlu0 %910 }
 0x161   : > { %v931_v15 = vpop.permute.xlu1 %930  ;;  %v954_v16 = vsel %vm946_vm8, %v909_v1, %v911_v14  ;;  %v1075_v1 = vsel %vm1074_vm10, 1, %v1531_v0 }
 0x162   : > { %1353 = vmatprep.subr.bf16.mxu0 %v954_v16 }
 0x163   : > { %1354 = vmatpush3.bf16.msra.mxu0 %v947_v18 }
 0x164   : > { %1355 = vmatprep.subr.bf16.mxu0 %v955_v17  ;;  %v897_v21 = vpop.permute.xlu0 %896 }
 0x165   : > { %v901_v19 = vpop.permute.xlu1 %900 }
 0x168   : > { %v929_v24 = vpop.permute.xlu0 %928 }
 0x169   : > { %v935_v20 = vpop.permute.xlu1 %934 }
 0x16c   : > { %v933_v28 = vpop.permute.xlu0 %932 }
 0x16d   : > { %v883_v22 = vpop.permute.xlu1 %882  ;;  %v959_v41 = vsel %vm946_vm8, %v931_v15, %v933_v28 }
 0x16e   : > { %v948_v23 = vsel %vm946_vm8, %v883_v22, %v885_v6 }
 0x16f   : > { %1356 = vmatpush3.bf16.msra.mxu0 %v948_v23 }
 0x170   : > { %v903_v32 = vpop.permute.xlu0 %902 }
 0x171   : > { %v917_v25 = vpop.permute.xlu1 %916  ;;  %v952_v42 = vsel %vm946_vm8, %v901_v19, %v903_v32 }
 0x172   : > { %v956_v26 = vsel %vm946_vm8, %v917_v25, %v919_v7 }
 0x173   : > { %1357 = vmatprep.subr.bf16.mxu0 %v956_v26 }
 0x174   : > { %v937_v36 = vpop.permute.xlu0 %936 }
 0x175   : > { %v887_v27 = vpop.permute.xlu1 %886  ;;  %v960_v44 = vsel %vm946_vm8, %v935_v20, %v937_v36 }
 0x176   : > { %v949_v29 = vsel %vm946_vm8, %v887_v27, %v889_v8 }
 0x177   : > { %1358 = vmatpush3.bf16.msra.mxu0 %v949_v29 }
 0x178   : > { %v941_v39 = vpop.permute.xlu0 %940 }
 0x179   : > { %v921_v30 = vpop.permute.xlu1 %920 }
 0x17a   : > { %v957_v31 = vsel %vm946_vm8, %v921_v30, %v923_v9 }
 0x17b   : > { %1359 = vmatprep.subr.bf16.mxu0 %v957_v31 }
 0x17c   : > { %v907_v46 = vpop.permute.xlu0 %906 }
 0x17d   : > { %v891_v33 = vpop.permute.xlu1 %890 }
 0x17e   : > { %v950_v34 = vsel %vm946_vm8, %v891_v33, %v893_v11 }
 0x17f   : > { %1360 = vmatpush3.bf16.msra.mxu0 %v950_v34 }
 0x181   : > { %v925_v35 = vpop.permute.xlu1 %924 }
 0x182   : > { %v958_v37 = vsel %vm946_vm8, %v925_v35, %v927_v13 }
 0x183   : > { %1361 = vmatprep.subr.bf16.mxu0 %v958_v37 }
 0x184   : > { %1362 = vmatpush3.bf16.msra.mxu0 %v895_v12 }
 0x185   : > { %v899_v38 = vpop.permute.xlu1 %898  ;;  %1363 = vmatprep.subr.bf16.mxu0 %v929_v24 }
 0x186   : > { %v951_v40 = vsel %vm946_vm8, %v897_v21, %v899_v38 }
 0x188   : > { %1364 = vmatpush3.bf16.msra.mxu0 %v951_v40 }
 0x189   : > { %1365 = vmatprep.subr.bf16.mxu0 %v959_v41  ;;  %v939_v43 = vpop.permute.xlu1 %938 }
 0x18a   : > { %v961_v45 = vsel %vm946_vm8, %v939_v43, %v941_v39 }
 0x18b   : > { %1379 = vmatpush3.bf16.msra.mxu1 %v961_v45 }
 0x18c   : > { %1366 = vmatpush3.bf16.msra.mxu0 %v952_v42  ;;  %1380 = vmatprep.subr.bf16.mxu1 %v1529_v60  ;;  %v1076_v60 = vlaneseq }
 0x18d   : > { %1367 = vmatprep.subr.bf16.mxu0 %v960_v44  ;;  %v905_v47 = vpop.permute.xlu1 %904 }
 0x18e   : > { %v953_v48 = vsel %vm946_vm8, %v905_v47, %v907_v46  ;;  %v1077_v62 = vshrl.u32 %v1076_v60, 7 }
 0x190   : > { %1368 = vmatpush3.bf16.msra.mxu0 %v953_v48  ;;  %v1078_v63 = vsub.s32 0, %v1077_v62 }
 0x192   : > { %v1079_v4 = vrot.slane %v1075_v1, %v1078_v63 }
 0x193   : > { %1018 = vmatmul.mubr.bf16.vlgmr.msra.gmra.mrb[0].mxu0 %v1460_v49 }
 0x194   : > { %vm1080_vm12 = vcmp.eq.s32.totalorder %v1079_v4, 1 }
 0x1b4   : > { %v943_v50 = vpop.permute.xlu1 %942 }
 0x1b5   : > { %v945_v51 = vpop.permute.xlu0 %944 }
 0x1b6   : > { %v962_v52 = vsel %vm946_vm8, %v943_v50, %v945_v51 }
 0x1b7   : > { %1381 = vmatpush3.bf16.msra.mxu1 %v962_v52 }
 0x1ba   : > { %1383 = vmatmul.mubr.msk.bf16.vlgmr.msra.gmra.mrb[0].mxu1 %vm981_vm9, %v1463_v53 }
 0x266   : > { %v1369_v54 = vpop.f32.mrb[0].mxu0 }
 0x267   : > { %v1370_v55 = vpop.f32.mrb[1].mxu0 }
 0x268   : > { %v1371_v56 = vadd.f32 %v1370_v55, %v1369_v54  ;;  %v1372_v57 = vpop.f32.mrb[2].mxu0 }
 0x269   : > { %v1373_v58 = vpop.f32.mrb[3].mxu0 }
 0x26a   : > { %v1374_v59 = vadd.f32 %v1373_v58, %v1372_v57 }
 0x28d   : > { %v1060_v2 = vpop.f32.mrb[0].mxu1 }
 0x28e   : > { %v1061_v3 = vadd.f32 %v1371_v56, %v1060_v2  ;;  %v1384_v5 = vpop.f32.mrb[1].mxu1 }
 0x28f   : > { %v1063_v6 = vpop.f32.mrb[2].mxu1 }
 0x290   : > { %vm1067_vm11 = vcmp.gt.f32.partialorder %v1061_v3, 0.0  ;;  %v1069_v7 = vmul.f32 0.2, %v1061_v3  ;;  %v1064_v8 = vadd.f32 %v1374_v59, %v1063_v6  ;;  %v1385_v9 = vpop.f32.mrb[3].mxu1 }
 0x292   : > { %v1071_v10 = vsel %vm1067_vm11, %v1061_v3, %v1069_v7  ;;  %vm1068_vm13 = vcmp.gt.f32.partialorder %v1064_v8, 0.0  ;;  %v1070_v11 = vmul.f32 0.2, %v1064_v8  ;;  %1099 = sbr.rel (!%p1673_p1) target bundleno = 673 (0x2a1), region = 302 }
 0x293   : > { %v1081_v13 = vsel %vm1080_vm12, %v1071_v10, 0.0 }
 0x294   : > { %v1072_v12 = vsel %vm1068_vm13, %v1064_v8, %v1070_v11 }
 0x295   : > { %v1082_v14 = vsel %vm1080_vm12, %v1072_v12, 0.0 }
 0x296   : > { %v1351_v15 = vpack.c.bf16 %v1082_v14, %v1081_v13 }
 0x298   : > { %1352 = vst [vmem:[%s716_s24] sm:$0xff] %v1351_v15  }
 0x29f   : > { %v1117_v16 = vld [vmem:[%s716_s24] sm:$0xf]  ;;  %v1119_v17 = vld [vmem:[%s716_s24 + $0x4] sm:$0xf] }
 0x2a0   : > { %1118 = vst [vmem:[%s1101_s21] sm:$0xf] %v1117_v16  ;;  %1120 = vst [vmem:[%s1101_s21 + $0x8] sm:$0xf] %v1119_v17 }
 0x2a1 PF: > { %s1877_s11 = sld [smem:[#allocation10_spill]]  ;;  %s1878_s8 = sld [smem:[#allocation14_spill]] }
 0x2a2   : > { %s1879_s15 = sld [smem:[#allocation12_spill]]  ;;  %s1880_s25 = sld [smem:[#allocation11_spill]] }
 0x2a3   : > { %s1881_s27 = smov %s1498_s28  ;;  %s1883_s29 = smov %s1506_s30 }
 0x2a4   : > { %s1885_s9 = smov %s1514_s10 }
 0x2a7   : > { %p15_p7 = scmp.ge.s32.totalorder %s1877_s11, 4   ;;  %s1882_s28 = smov %s1878_s8 }
 0x2a8   : > { %s1884_s30 = smov %s1879_s15  ;;  %s1886_s10 = smov %s1880_s25 }
 0x2a9   :  { %17 = sbr.rel (!%p15_p7) target bundleno = 7 (0x7), region = 417 }

// kernel: unet_forward_nchw.23
= control target key start
LH: loop header
LB: loop body
LE: loop exit
PB: predicated region body
PF: predicated region fallthrough
CT: control target
= control target key end

     0   :  { %s1424_s27 = smov 0   ;;  %s1796_s0 = inlined_call_operand.vmem [shape: bf16[8,144], index: 0, kind: input, shape index: {}]   ;;  %s1797_s1 = inlined_call_operand.vmem [shape: f32[1,768], index: 1, kind: input, shape index: {}]   ;;  %s1798_s2 = inlined_call_operand.vmem [shape: bf16[8,768], index: 2, kind: input, shape index: {}, may-alias: {2,3,4}]   ;;  %s1799_s3 = inlined_call_operand.vmem [shape: bf16[8,768], index: 3, kind: input, shape index: {}, may-alias: {2,3,4}]   ;;  %s1800_s4 = inlined_call_operand.vmem [shape: bf16[8,768], index: 4, kind: input, shape index: {}, may-alias: {2,3,4}]   ;;  %s1801_s5 = inlined_call_operand.vmem [shape: bf16[8,768], index: 5, kind: input, shape index: {}, may-alias: {5,6,7}]   ;;  %s1802_s6 = inlined_call_operand.vmem [shape: bf16[8,768], index: 6, kind: input, shape index: {}, may-alias: {5,6,7}]   ;;  %s1803_s7 = inlined_call_operand.vmem [shape: bf16[8,768], index: 7, kind: input, shape index: {}, may-alias: {5,6,7}]   ;;  %s1804_s8 = inlined_call_operand.vmem [shape: bf16[8,768], index: 8, kind: output, shape index: {}]  }
   0x1 LB: > { %s1281_s28 = sadd.s32 4294967295, %s1367_s27   ;;  %p1289_p0 = scmp.ge.s32.totalorder %s1367_s27, 1  ;;  %s1367_s27 = sphi %s1424_s27, %s18_s27  }
   0x2   : > { %p384_p1 = scmp.lt.s32.totalorder %s1367_s27, 3 }
   0x4   : > { %p385_p2 = pnand %p1289_p0, %p384_p1 }
   0x5   : > { %s459_s29 = smul.u32 (!%p385_p2), 3, %s1281_s28  ;;  %s482_s30 = sadd.s32 (!%p385_p2), 1, %s1281_s28  ;;  %vm568_vm0 = vcmask (!%p385_p2), 1039360   ;;  %vm725_vm1 = vcmask (!%p385_p2), 1043456   ;;  %v1377_v26 = vmov (!%p385_p2), 0   ;;  %vm580_vm2 = vcmask (!%p385_p2), 1031168  }
   0x6   : > { %388 = sbr.rel (%p385_p2) target bundleno = 613 (0x265), region = 52  ;;  %s1369_s20 = smov (!%p385_p2), 127   ;;  %1071 = vmatprep.subr.bf16.mxu1 (!%p385_p2), %v1377_v26  ;;  %vm592_vm3 = vcmask (!%p385_p2), 900096   ;;  %vm602_vm4 = vcmask (!%p385_p2), 891904   ;;  %vm615_vm5 = vcmask (!%p385_p2), 883712   ;;  %vm627_vm6 = vcmask (!%p385_p2), 752640  }
   0x7   : > { %p460_p3 = scmp.lt.s32.totalorder (!%p385_p2), %s459_s29, 5  ;;  %s483_s9 = smul.u32 (!%p385_p2), 3, %s482_s30  ;;  %vm639_vm7 = vcmask (!%p385_p2), 744448   ;;  %vm651_vm8 = vcmask (!%p385_p2), 736256   ;;  %vm1026_vm9 = vcmask (!%p385_p2), 130048   ;;  %vm971_vm10 = vcmask (!%p385_p2), 154624  }
   0x8   : > { %s1290_s10 = sadd.s32 (!%p385_p2), 4294967295, %s459_s29  ;;  %s1372_s11 = smov (!%p385_p2), 109  }
   0x9   : > { %p1434_p4 = scmp.lt.s32.totalorder (!%p385_p2), %s483_s9, 5  ;;  %p466_p5 = scmp.gt.s32.totalorder (!%p385_p2), %s1290_s10, 0 }
   0xa   : > { %p1291_p6 = scmp.lt.s32.totalorder (!%p385_p2), %s1290_s10, 5  ;;  %s1373_s16 = smov (!%p385_p2), 108  }
   0xb   : > { %s1374_s17 = smov (!%p385_p2), 92  }
   0xd   : > { %s1807_s29 = smov (!%p460_p3, %s459_s29), 5  ;;  %s1809_s9 = smov (!%p1434_p4, %s483_s9), 5 }
   0xe   : > { %s1439_s12 = sshll.u32 %s1807_s29, 2  ;;  %s1811_s9 = smov (!%p1434_p4, %s1809_s9), 5 }
   0xf   : > { %s510_s15 = scalar_lea.vmem %s1802_s6, %s1439_s12  ;;  %s480_s18 = scalar_lea.vmem %s1799_s3, %s1439_s12 }
  0x10   : > { %v1449_v0 = vld [vmem:[%s510_s15 + $0x8] ss:$0 sps:$4 sm:$0xff]   ;;  %v544_v1 = vld [vmem:[%s510_s15] sm:$0xff]  ;;  %s467_s19 = scalar_select %p466_p5, %s1290_s10, 0 }
  0x11   : > { %v1453_v2 = vcombine.low %v544_v1, %v544_v1  ;;  %v532_v3 = vld [vmem:[%s480_s18] sm:$0xff]  ;;  %826 = vrot.lane.b32.xlu1 %v1449_v0, %s1369_s20  ;;  %v1463_v5 = vcombine.high %v544_v1, %v544_v1  ;;  %s1468_s21 = sshll.u32 %s1811_s9, 2  ;;  %v1497_v11 = vld [vmem:[%s480_s18 + $0x8] ss:$0 sps:$4 sm:$0xff]   ;;  %s1370_s9 = smov 126  }
  0x12   : > { %v1457_v4 = vcombine.high %v532_v3, %v532_v3  ;;  %s1813_s19 = smov (!%p1291_p6, %s467_s19), 5  ;;  %s519_s24 = scalar_lea.vmem %s1803_s7, %s1468_s21  ;;  %v1487_v8 = vcombine.low %v532_v3, %v532_v3 }
  0x13   : > { %822 = vrot.lane.b32.xlu0 %v1453_v2, %s1369_s20  ;;  %s1296_s25 = sshll.u32 %s1813_s19, 2  ;;  %v1477_v6 = vld [vmem:[%s519_s24] sm:$0xf]  ;;  %s1371_s10 = smov 110  }
  0x14   : > { %s471_s30 = scalar_lea.vmem %s1798_s2, %s1296_s25  ;;  %v713_v7 = vrot.slane %v1477_v6, 4  ;;  %s489_s15 = scalar_lea.vmem %s1800_s4, %s1468_s21 }
  0x15   : > { %564 = vrot.lane.b32.xlu1 %v1457_v4, %s1369_s20  ;;  %v1489_v9 = vld [vmem:[%s471_s30] sm:$0xf]  ;;  %s1375_s18 = smov 91   ;;  %s1376_s21 = smov 90  }
  0x16   : > { %v556_v10 = vrot.slane %v1489_v9, 4  ;;  %v534_v12 = vld [vmem:[%s489_s15] sm:$0xf]  ;;  %s501_s24 = scalar_lea.vmem %s1801_s5, %s1296_s25  ;;  %s1378_s19 = smov 19  }
  0x17   : > { %824 = vrot.lane.b32.xlu0 %v1463_v5, %s1369_s20  ;;  %v606_v13 = vrot.slane %v534_v12, 4  ;;  %v1566_v14 = vld [vmem:[%s501_s24] sm:$0xf]  ;;  %s462_s30 = scalar_lea.vmem %s1797_s1, %s1807_s29 }
  0x18   : > { %v656_v15 = vrot.slane %v1566_v14, 4 }
  0x19   : > { %828 = vrot.lane.b32.xlu1 %v713_v7, %s1369_s20 }
  0x1b   : > { %562 = vrot.lane.b32.xlu0 %v1487_v8, %s1369_s20 }
  0x1d   : > { %560 = vrot.lane.b32.xlu1 %v556_v10, %s1369_s20 }
  0x1f   : > { %566 = vrot.lane.b32.xlu0 %v1497_v11, %s1369_s20 }
  0x21   : > { %576 = vrot.lane.b32.xlu1 %v1457_v4, %s1370_s9 }
  0x23   : > { %574 = vrot.lane.b32.xlu0 %v1487_v8, %s1370_s9 }
  0x25   : > { %586 = vrot.lane.b32.xlu1 %v1487_v8, %s1371_s10 }
  0x27   : > { %578 = vrot.lane.b32.xlu0 %v1497_v11, %s1370_s9 }
  0x29   : > { %590 = vrot.lane.b32.xlu1 %v1497_v11, %s1371_s10 }
  0x2b   : > { %588 = vrot.lane.b32.xlu0 %v1457_v4, %s1371_s10 }
  0x2d   : > { %584 = vrot.lane.b32.xlu1 %v556_v10, %s1371_s10 }
  0x2f   : > { %572 = vrot.lane.b32.xlu0 %v1489_v9, %s1370_s9 }
  0x31   : > { %598 = vrot.lane.b32.xlu1 %v1457_v4, %s1372_s11 }
  0x33   : > { %596 = vrot.lane.b32.xlu0 %v1487_v8, %s1372_s11 }
  0x35   : > { %607 = vrot.lane.b32.xlu1 %v1487_v8, %s1373_s16 }
  0x37   : > { %600 = vrot.lane.b32.xlu0 %v1497_v11, %s1372_s11 }
  0x39   : > { %611 = vrot.lane.b32.xlu1 %v1497_v11, %s1373_s16 }
  0x3b   : > { %609 = vrot.lane.b32.xlu0 %v1457_v4, %s1373_s16 }
  0x3d   : > { %619 = vrot.lane.b32.xlu1 %v1487_v8, %s1374_s17 }
  0x3f   : > { %613 = vrot.lane.b32.xlu0 %v606_v13, %s1373_s16 }
  0x41   : > { %623 = vrot.lane.b32.xlu1 %v1497_v11, %s1374_s17 }
  0x43   : > { %621 = vrot.lane.b32.xlu0 %v1457_v4, %s1374_s17 }
  0x45   : > { %633 = vrot.lane.b32.xlu1 %v1457_v4, %s1375_s18 }
  0x47   : > { %631 = vrot.lane.b32.xlu0 %v1487_v8, %s1375_s18 }
  0x49   : > { %625 = vrot.lane.b32.xlu1 %v534_v12, %s1374_s17 }
  0x4b   : > { %635 = vrot.lane.b32.xlu0 %v1497_v11, %s1375_s18 }
  0x4d   : > { %643 = vrot.lane.b32.xlu1 %v1487_v8, %s1376_s21 }
  0x4f   : > { %637 = vrot.lane.b32.xlu0 %v606_v13, %s1375_s18 }
  0x51   : > { %647 = vrot.lane.b32.xlu1 %v1497_v11, %s1376_s21 }
  0x53   : > { %645 = vrot.lane.b32.xlu0 %v1457_v4, %s1376_s21 }
  0x55   : > { %662 = vrot.lane.b32.xlu1 %v1453_v2, %s1369_s20 }
  0x57   : > { %649 = vrot.lane.b32.xlu0 %v534_v12, %s1376_s21 }
  0x59   : > { %666 = vrot.lane.b32.xlu1 %v1449_v0, %s1369_s20 }
  0x5b   : > { %664 = vrot.lane.b32.xlu0 %v1463_v5, %s1369_s20 }
  0x5d   : > { %675 = vrot.lane.b32.xlu1 %v1463_v5, %s1370_s9 }
  0x5f   : > { %673 = vrot.lane.b32.xlu0 %v1453_v2, %s1370_s9 }
  0x61   : > { %660 = vrot.lane.b32.xlu1 %v1566_v14, %s1369_s20 }
  0x63   : > { %677 = vrot.lane.b32.xlu0 %v1449_v0, %s1370_s9 }
  0x65   : > { %684 = vrot.lane.b32.xlu1 %v1453_v2, %s1371_s10 }
  0x67   : > { %671 = vrot.lane.b32.xlu0 %v656_v15, %s1370_s9 }
  0x69   : > { %688 = vrot.lane.b32.xlu1 %v1449_v0, %s1371_s10 }
  0x6b   : > { %686 = vrot.lane.b32.xlu0 %v1463_v5, %s1371_s10 }
  0x6d   : > { %695 = vrot.lane.b32.xlu1 %v1463_v5, %s1372_s11 }
  0x6f   : > { %693 = vrot.lane.b32.xlu0 %v1453_v2, %s1372_s11 }
  0x71   : > { %682 = vrot.lane.b32.xlu1 %v1566_v14, %s1371_s10  ;;  %s528_s10 = scalar_lea.vmem %s1804_s8, %s1439_s12 }
  0x73   : > { %697 = vrot.lane.b32.xlu0 %v1449_v0, %s1372_s11 }
  0x75   : > { %704 = vrot.lane.b32.xlu1 %v1463_v5, %s1373_s16 }
  0x77   : > { %702 = vrot.lane.b32.xlu0 %v1453_v2, %s1373_s16 }
  0x79   : > { %714 = vrot.lane.b32.xlu1 %v1453_v2, %s1374_s17 }
  0x7b   : > { %706 = vrot.lane.b32.xlu0 %v1449_v0, %s1373_s16 }
  0x7d   : > { %718 = vrot.lane.b32.xlu1 %v1449_v0, %s1374_s17 }
  0x7f   : > { %716 = vrot.lane.b32.xlu0 %v1463_v5, %s1374_s17 }
  0x81   : > { %720 = vrot.lane.b32.xlu1 %v713_v7, %s1374_s17 }
  0x83   : > { %708 = vrot.lane.b32.xlu0 %v1477_v6, %s1373_s16  ;;  %v827_v16 = vpop.permute.xlu1 %826 }
  0x85   : > { %v823_v17 = vpop.permute.xlu0 %822 }
  0x87   : > { %v565_v18 = vpop.permute.xlu1 %564 }
  0x89   : > { %v825_v19 = vpop.permute.xlu0 %824 }
  0x8a   : > { %v830_v20 = vsel %vm568_vm0, %v823_v17, %v825_v19  ;;  %v831_v32 = vsel %vm568_vm0, %v825_v19, %v827_v16 }
  0x8b   : > { %v835_v21 = vsel %vm725_vm1, %v1453_v2, %v830_v20  ;;  %v829_v22 = vpop.permute.xlu1 %828  ;;  %v838_v36 = vsel %vm725_vm1, %v1463_v5, %v831_v32 }
  0x8c   : > { %849 = vrot.lane.b32.xlu0 %v835_v21, %s1375_s18  ;;  %v832_v24 = vsel %vm568_vm0, %v827_v16, %v829_v22  ;;  %v844_v48 = vsel %vm725_vm1, %v1477_v6, %v829_v22 }
  0x8d   : > { %v563_v23 = vpop.permute.xlu0 %562  ;;  %v841_v30 = vsel %vm725_vm1, %v1449_v0, %v832_v24 }
  0x8e   : > { %v570_v25 = vsel %vm568_vm0, %v563_v23, %v565_v18 }
  0x8f   : > { %v731_v27 = vsel %vm725_vm1, %v1487_v8, %v570_v25  ;;  %v561_v28 = vpop.permute.xlu1 %560 }
  0x90   : > { %901 = vrot.lane.b32.xlu0 %v731_v27, %s1378_s19  ;;  %v569_v33 = vsel %vm568_vm0, %v561_v28, %v563_v23 }
  0x91   : > { %v567_v29 = vpop.permute.xlu0 %566  ;;  %v728_v38 = vsel %vm725_vm1, %v1489_v9, %v569_v33 }
  0x92   : > { %v737_v31 = vsel %vm725_vm1, %v1497_v11, %v567_v29  ;;  %v571_v37 = vsel %vm568_vm0, %v565_v18, %v567_v29 }
  0x93   : > { %905 = vrot.lane.b32.xlu1 %v737_v31, %s1378_s19  ;;  %v577_v34 = vpop.permute.xlu1 %576  ;;  %v734_v41 = vsel %vm725_vm1, %v1457_v4, %v571_v37 }
  0x94   : > { %853 = vrot.lane.b32.xlu0 %v841_v30, %s1375_s18 }
  0x95   : > { %v575_v35 = vpop.permute.xlu0 %574 }
  0x96   : > { %v582_v42 = vsel %vm580_vm2, %v575_v35, %v577_v34 }
  0x97   : > { %851 = vrot.lane.b32.xlu1 %v838_v36, %s1375_s18  ;;  %v587_v39 = vpop.permute.xlu1 %586 }
  0x98   : > { %899 = vrot.lane.b32.xlu0 %v728_v38, %s1378_s19 }
  0x99   : > { %v579_v40 = vpop.permute.xlu0 %578 }
  0x9a   : > { %v583_v44 = vsel %vm580_vm2, %v577_v34, %v579_v40 }
  0x9b   : > { %903 = vrot.lane.b32.xlu1 %v734_v41, %s1378_s19  ;;  %v591_v43 = vpop.permute.xlu1 %590 }
  0x9c   : > { %v749_v57 = vsel %vm725_vm1, %v579_v40, %v591_v43 }
  0x9d   : > { %v589_v45 = vpop.permute.xlu0 %588 }
  0x9e   : > { %v594_v46 = vsel %vm592_vm3, %v587_v39, %v589_v45  ;;  %v595_v47 = vsel %vm592_vm3, %v589_v45, %v591_v43 }
  0x9f   : > { %855 = vrot.lane.b32.xlu1 %v844_v48, %s1375_s18  ;;  %v743_v49 = vsel %vm725_vm1, %v582_v42, %v594_v46  ;;  %v585_v50 = vpop.permute.xlu1 %584  ;;  %v746_v51 = vsel %vm725_vm1, %v583_v44, %v595_v47 }
  0xa0   : > { %909 = vrot.lane.b32.xlu0 %v743_v49, %s1378_s19  ;;  %v593_v52 = vsel %vm592_vm3, %v585_v50, %v587_v39 }
  0xa1   : > { %v573_v53 = vpop.permute.xlu0 %572 }
  0xa2   : > { %v581_v54 = vsel %vm580_vm2, %v573_v53, %v575_v35 }
  0xa3   : > { %911 = vrot.lane.b32.xlu1 %v746_v51, %s1378_s19  ;;  %v740_v55 = vsel %vm725_vm1, %v581_v54, %v593_v52  ;;  %v599_v56 = vpop.permute.xlu1 %598 }
  0xa4   : > { %907 = vrot.lane.b32.xlu0 %v740_v55, %s1378_s19 }
  0xa5   : > { %v597_v58 = vpop.permute.xlu0 %596 }
  0xa6   : > { %v603_v61 = vsel %vm602_vm4, %v597_v58, %v599_v56 }
  0xa7   : > { %913 = vrot.lane.b32.xlu1 %v749_v57, %s1378_s19  ;;  %v608_v59 = vpop.permute.xlu1 %607 }
  0xa8   : > { %v752_v10 = vsel %vm725_vm1, %v597_v58, %v608_v59 }
  0xa9   : > { %v601_v60 = vpop.permute.xlu0 %600 }
  0xaa   : > { %v604_v62 = vsel %vm602_vm4, %v599_v56, %v601_v60 }
  0xab   : > { %v612_v63 = vpop.permute.xlu1 %611 }
  0xad   : > { %v610_v1 = vpop.permute.xlu0 %609 }
  0xae   : > { %v616_v3 = vsel %vm615_vm5, %v608_v59, %v610_v1  ;;  %v617_v4 = vsel %vm615_vm5, %v610_v1, %v612_v63 }
  0xaf   : > { %v758_v6 = vsel %vm725_vm1, %v604_v62, %v617_v4  ;;  %v755_v7 = vsel %vm725_vm1, %v603_v61, %v616_v3  ;;  %v620_v8 = vpop.permute.xlu1 %619 }
  0xb0   : > { %919 = vrot.lane.b32.xlu1 %v758_v6, %s1378_s19  ;;  %917 = vrot.lane.b32.xlu0 %v755_v7, %s1378_s19 }
  0xb1   : > { %v614_v9 = vpop.permute.xlu0 %613 }
  0xb2   : > { %v618_v11 = vsel %vm615_vm5, %v612_v63, %v614_v9 }
  0xb3   : > { %v761_v12 = vsel %vm725_vm1, %v601_v60, %v618_v11  ;;  %v624_v13 = vpop.permute.xlu1 %623 }
  0xb4   : > { %915 = vrot.lane.b32.xlu0 %v752_v10, %s1378_s19  ;;  %921 = vrot.lane.b32.xlu1 %v761_v12, %s1378_s19 }
  0xb5   : > { %v622_v16 = vpop.permute.xlu0 %621 }
  0xb6   : > { %v628_v17 = vsel %vm627_vm6, %v620_v8, %v622_v16  ;;  %v629_v22 = vsel %vm627_vm6, %v622_v16, %v624_v13 }
  0xb7   : > { %v634_v18 = vpop.permute.xlu1 %633 }
  0xb9   : > { %v632_v19 = vpop.permute.xlu0 %631 }
  0xba   : > { %v640_v20 = vsel %vm639_vm7, %v632_v19, %v634_v18  ;;  %v764_v25 = vsel %vm725_vm1, %v620_v8, %v632_v19 }
  0xbb   : > { %v767_v21 = vsel %vm725_vm1, %v628_v17, %v640_v20  ;;  %v626_v23 = vpop.permute.xlu1 %625 }
  0xbc   : > { %925 = vrot.lane.b32.xlu0 %v767_v21, %s1378_s19  ;;  %v630_v29 = vsel %vm627_vm6, %v624_v13, %v626_v23 }
  0xbd   : > { %v636_v24 = vpop.permute.xlu0 %635 }
  0xbe   : > { %v641_v27 = vsel %vm639_vm7, %v634_v18, %v636_v24 }
  0xbf   : > { %v770_v28 = vsel %vm725_vm1, %v629_v22, %v641_v27  ;;  %v644_v30 = vpop.permute.xlu1 %643 }
  0xc0   : > { %923 = vrot.lane.b32.xlu0 %v764_v25, %s1378_s19  ;;  %927 = vrot.lane.b32.xlu1 %v770_v28, %s1378_s19  ;;  %v776_v42 = vsel %vm725_vm1, %v644_v30, %v656_v15 }
  0xc1   : > { %v638_v31 = vpop.permute.xlu0 %637 }
  0xc2   : > { %v642_v32 = vsel %vm639_vm7, %v636_v24, %v638_v31 }
  0xc3   : > { %v773_v33 = vsel %vm725_vm1, %v630_v29, %v642_v32  ;;  %v648_v34 = vpop.permute.xlu1 %647 }
  0xc4   : > { %929 = vrot.lane.b32.xlu1 %v773_v33, %s1378_s19 }
  0xc5   : > { %v646_v35 = vpop.permute.xlu0 %645 }
  0xc6   : > { %v652_v36 = vsel %vm651_vm8, %v644_v30, %v646_v35  ;;  %v653_v37 = vsel %vm651_vm8, %v646_v35, %v648_v34  ;;  %v1736_v35 = vld [vmem:[%s1796_s0] sm:$0xff] }
  0xc7   : > { %v779_v38 = vsel %vm725_vm1, %v652_v36, %v1453_v2  ;;  %v782_v39 = vsel %vm725_vm1, %v653_v37, %v1463_v5  ;;  %v663_v40 = vpop.permute.xlu1 %662  ;;  %v1322_v36 = vcombine.high %v1736_v35, %v1736_v35 }
  0xc8   : > { %933 = vrot.lane.b32.xlu0 %v779_v38, %s1378_s19  ;;  %935 = vrot.lane.b32.xlu1 %v782_v39, %s1378_s19 }
  0xc9   : > { %v650_v41 = vpop.permute.xlu0 %649  ;;  %1323 = vmatprep.mubr.msk.bf16.mxu0 %vm1026_vm9, %v1322_v36  ;;  %1324 = vmatprep.mubr.msk.bf16.mxu1 %vm1026_vm9, %v1322_v36 }
  0xca   : > { %v654_v43 = vsel %vm651_vm8, %v648_v34, %v650_v41 }
  0xcb   : > { %v785_v44 = vsel %vm725_vm1, %v654_v43, %v1449_v0  ;;  %v667_v45 = vpop.permute.xlu1 %666 }
  0xcc   : > { %931 = vrot.lane.b32.xlu0 %v776_v42, %s1378_s19  ;;  %937 = vrot.lane.b32.xlu1 %v785_v44, %s1378_s19 }
  0xcd   : > { %v665_v2 = vpop.permute.xlu0 %664 }
  0xce   : > { %v669_v5 = vsel %vm568_vm0, %v663_v40, %v665_v2  ;;  %v670_v15 = vsel %vm568_vm0, %v665_v2, %v667_v45 }
  0xcf   : > { %v676_v46 = vpop.permute.xlu1 %675 }
  0xd1   : > { %v674_v47 = vpop.permute.xlu0 %673 }
  0xd2   : > { %v680_v48 = vsel %vm580_vm2, %v674_v47, %v676_v46 }
  0xd3   : > { %v791_v14 = vsel %vm725_vm1, %v669_v5, %v680_v48  ;;  %v661_v49 = vpop.permute.xlu1 %660 }
  0xd4   : > { %941 = vrot.lane.b32.xlu0 %v791_v14, %s1378_s19  ;;  %v668_v55 = vsel %vm568_vm0, %v661_v49, %v663_v40 }
  0xd5   : > { %v678_v0 = vpop.permute.xlu0 %677 }
  0xd6   : > { %v681_v50 = vsel %vm580_vm2, %v676_v46, %v678_v0  ;;  %v797_v54 = vsel %vm725_vm1, %v667_v45, %v678_v0 }
  0xd7   : > { %v794_v51 = vsel %vm725_vm1, %v670_v15, %v681_v50  ;;  %v685_v52 = vpop.permute.xlu1 %684 }
  0xd8   : > { %943 = vrot.lane.b32.xlu1 %v794_v51, %s1378_s19 }
  0xd9   : > { %v672_v53 = vpop.permute.xlu0 %671 }
  0xda   : > { %v679_v56 = vsel %vm580_vm2, %v672_v53, %v674_v47 }
  0xdb   : > { %v788_v57 = vsel %vm725_vm1, %v668_v55, %v679_v56  ;;  %v689_v58 = vpop.permute.xlu1 %688 }
  0xdc   : > { %945 = vrot.lane.b32.xlu1 %v797_v54, %s1378_s19  ;;  %939 = vrot.lane.b32.xlu0 %v788_v57, %s1378_s19 }
  0xdd   : > { %v687_v59 = vpop.permute.xlu0 %686 }
  0xde   : > { %v691_v60 = vsel %vm592_vm3, %v685_v52, %v687_v59  ;;  %v692_v3 = vsel %vm592_vm3, %v687_v59, %v689_v58 }
  0xdf   : > { %v696_v61 = vpop.permute.xlu1 %695 }
  0xe1   : > { %v694_v62 = vpop.permute.xlu0 %693 }
  0xe2   : > { %v699_v63 = vsel %vm602_vm4, %v694_v62, %v696_v61 }
  0xe3   : > { %v803_v1 = vsel %vm725_vm1, %v691_v60, %v699_v63  ;;  %v683_v4 = vpop.permute.xlu1 %682 }
  0xe4   : > { %949 = vrot.lane.b32.xlu0 %v803_v1, %s1378_s19  ;;  %v690_v6 = vsel %vm592_vm3, %v683_v4, %v685_v52 }
  0xe5   : > { %v698_v7 = vpop.permute.xlu0 %697  ;;  %v800_v9 = vsel %vm725_vm1, %v690_v6, %v694_v62 }
  0xe6   : > { %v700_v8 = vsel %vm602_vm4, %v696_v61, %v698_v7  ;;  %v809_v13 = vsel %vm725_vm1, %v689_v58, %v698_v7 }
  0xe7   : > { %v806_v10 = vsel %vm725_vm1, %v692_v3, %v700_v8  ;;  %v705_v11 = vpop.permute.xlu1 %704 }
  0xe8   : > { %947 = vrot.lane.b32.xlu0 %v800_v9, %s1378_s19  ;;  %951 = vrot.lane.b32.xlu1 %v806_v10, %s1378_s19 }
  0xe9   : > { %v703_v12 = vpop.permute.xlu0 %702 }
  0xea   : > { %v710_v18 = vsel %vm615_vm5, %v703_v12, %v705_v11 }
  0xeb   : > { %v715_v16 = vpop.permute.xlu1 %714 }
  0xec   : > { %953 = vrot.lane.b32.xlu1 %v809_v13, %s1378_s19  ;;  %v812_v30 = vsel %vm725_vm1, %v703_v12, %v715_v16 }
  0xed   : > { %v707_v17 = vpop.permute.xlu0 %706 }
  0xee   : > { %v711_v19 = vsel %vm615_vm5, %v705_v11, %v707_v17 }
  0xef   : > { %v719_v20 = vpop.permute.xlu1 %718 }
  0xf1   : > { %v717_v21 = vpop.permute.xlu0 %716 }
  0xf2   : > { %v722_v22 = vsel %vm627_vm6, %v715_v16, %v717_v21  ;;  %v723_v23 = vsel %vm627_vm6, %v717_v21, %v719_v20 }
  0xf3   : > { %v818_v24 = vsel %vm725_vm1, %v711_v19, %v723_v23  ;;  %v815_v25 = vsel %vm725_vm1, %v710_v18, %v722_v22  ;;  %v721_v27 = vpop.permute.xlu1 %720 }
  0xf4   : > { %959 = vrot.lane.b32.xlu1 %v818_v24, %s1378_s19  ;;  %957 = vrot.lane.b32.xlu0 %v815_v25, %s1378_s19  ;;  %v724_v28 = vsel %vm627_vm6, %v719_v20, %v721_v27 }
  0xf5   : > { %v709_v29 = vpop.permute.xlu0 %708 }
  0xf6   : > { %v712_v31 = vsel %vm615_vm5, %v707_v17, %v709_v29 }
  0xf7   : > { %v821_v32 = vsel %vm725_vm1, %v712_v31, %v724_v28 }
  0xf8   : > { %955 = vrot.lane.b32.xlu0 %v812_v30, %s1378_s19  ;;  %961 = vrot.lane.b32.xlu1 %v821_v32, %s1378_s19 }
  0xfe   : > { %v850_v33 = vpop.permute.xlu0 %849 }
 0x102   : > { %v902_v34 = vpop.permute.xlu0 %901 }
 0x105   : > { %v906_v37 = vpop.permute.xlu1 %905 }
 0x106   : > { %v854_v38 = vpop.permute.xlu0 %853 }
 0x109   : > { %v852_v39 = vpop.permute.xlu1 %851 }
 0x10a   : > { %v857_v40 = vsel %vm639_vm7, %v850_v33, %v852_v39  ;;  %v858_v41 = vsel %vm639_vm7, %v852_v39, %v854_v38  ;;  %v900_v42 = vpop.permute.xlu0 %899 }
 0x10b   : > { %965 = vrot.lane.b32.xlu0 %v857_v40, %s1378_s19  ;;  %967 = vrot.lane.b32.xlu1 %v858_v41, %s1378_s19  ;;  %v972_v2 = vsel %vm971_vm10, %v900_v42, %v902_v34  ;;  %v1321_v41 = vcombine.low %v1736_v35, %v1736_v35 }
 0x10d   : > { %v904_v43 = vpop.permute.xlu1 %903 }
 0x10e   : > { %v974_v44 = vsel %vm971_vm10, %v904_v43, %v906_v37  ;;  %v973_v45 = vsel %vm971_vm10, %v902_v34, %v904_v43 }
 0x10f   : > { %1072 = vmatpush1.bf16.msra.mxu1 %v974_v44  ;;  %963 = vrot.lane.b32.xlu0 %v850_v33, %s1378_s19  ;;  %v1123_v44 = vlaneseq }
 0x110   : > { %1030 = vmatprep.subr.bf16.mxu0 %v973_v45  ;;  %1073 = vmatprep.subr.bf16.mxu1 %v1377_v26  ;;  %v1120_v45 = vld [vmem:[%s462_s30] sm:$0x7] }
 0x111   : > { %1031 = vmatpush1.bf16.msra.mxu0 %v972_v2  ;;  %v856_v5 = vpop.permute.xlu1 %855  ;;  %v1124_v2 = vshrl.u32 %v1123_v44, 7  ;;  %vm1121_vm11 = vcmp.gt.f32.partialorder %v1120_v45, 0.0 }
 0x112   : > { %v910_v46 = vpop.permute.xlu0 %909  ;;  %v859_v47 = vsel %vm639_vm7, %v854_v38, %v856_v5 }
 0x113   : > { %969 = vrot.lane.b32.xlu1 %v859_v47, %s1378_s19  ;;  %v1125_v5 = vsub.s32 0, %v1124_v2  ;;  %v1129_v47 = vsub.s32 1, %v1124_v2 }
 0x115   : > { %v912_v48 = vpop.permute.xlu1 %911 }
 0x116   : > { %v908_v14 = vpop.permute.xlu0 %907  ;;  %v976_v15 = vsel %vm971_vm10, %v910_v46, %v912_v48 }
 0x117   : > { %1032 = vmatprep.subr.bf16.mxu0 %v976_v15  ;;  %v975_v49 = vsel %vm971_vm10, %v908_v14, %v910_v46  ;;  %v1122_v46 = vsel %vm1121_vm11, 1, %v1377_v26 }
 0x118   : > { %1033 = vmatpush1.bf16.msra.mxu0 %v975_v49  ;;  %v1126_v35 = vrot.slane %v1122_v46, %v1125_v5  ;;  %v1130_v14 = vrot.slane %v1122_v46, %v1129_v47 }
 0x119   : > { %v914_v0 = vpop.permute.xlu1 %913 }
 0x11a   : > { %v977_v50 = vsel %vm971_vm10, %v912_v48, %v914_v0  ;;  %v1133_v48 = vsub.s32 2, %v1124_v2  ;;  %vm1135_vm13 = vcmp.eq.s32.totalorder %v1126_v35, 1  ;;  %vm1136_vm15 = vcmp.eq.s32.totalorder %v1130_v14, 1 }
 0x11b   : > { %1074 = vmatpush1.bf16.msra.mxu1 %v977_v50 }
 0x11c   : > { %1075 = vmatprep.subr.bf16.mxu1 %v1377_v26  ;;  %v1134_v50 = vrot.slane %v1122_v46, %v1133_v48 }
 0x11e   : > { %vm1137_vm1 = vcmp.eq.s32.totalorder %v1134_v50, 1 }
 0x122   : > { %v920_v51 = vpop.permute.xlu1 %919  ;;  %v918_v52 = vpop.permute.xlu0 %917 }
 0x123   : > { %v979_v53 = vsel %vm971_vm10, %v918_v52, %v920_v51 }
 0x124   : > { %1034 = vmatprep.subr.bf16.mxu0 %v979_v53 }
 0x126   : > { %v922_v54 = vpop.permute.xlu1 %921  ;;  %v916_v55 = vpop.permute.xlu0 %915 }
 0x127   : > { %v978_v56 = vsel %vm971_vm10, %v916_v55, %v918_v52  ;;  %v980_v57 = vsel %vm971_vm10, %v920_v51, %v922_v54 }
 0x128   : > { %1035 = vmatpush1.bf16.msra.mxu0 %v978_v56  ;;  %1076 = vmatpush1.bf16.msra.mxu1 %v980_v57 }
 0x129   : > { %1077 = vmatprep.subr.bf16.mxu1 %v1377_v26 }
 0x12e   : > { %v926_v58 = vpop.permute.xlu0 %925 }
 0x132   : > { %v928_v59 = vpop.permute.xlu1 %927  ;;  %v924_v60 = vpop.permute.xlu0 %923 }
 0x133   : > { %v982_v61 = vsel %vm971_vm10, %v926_v58, %v928_v59  ;;  %v981_v62 = vsel %vm971_vm10, %v924_v60, %v926_v58 }
 0x134   : > { %1036 = vmatprep.subr.bf16.mxu0 %v982_v61 }
 0x135   : > { %1037 = vmatpush1.bf16.msra.mxu0 %v981_v62 }
 0x136   : > { %v930_v63 = vpop.permute.xlu1 %929 }
 0x137   : > { %v983_v1 = vsel %vm971_vm10, %v928_v59, %v930_v63 }
 0x138   : > { %1078 = vmatpush1.bf16.msra.mxu1 %v983_v1 }
 0x139   : > { %1079 = vmatprep.subr.bf16.mxu1 %v1377_v26 }
 0x13a   : > { %v934_v3 = vpop.permute.xlu0 %933  ;;  %v936_v4 = vpop.permute.xlu1 %935 }
 0x13b   : > { %v985_v6 = vsel %vm971_vm10, %v934_v3, %v936_v4 }
 0x13c   : > { %1038 = vmatprep.subr.bf16.mxu0 %v985_v6 }
 0x13e   : > { %v932_v7 = vpop.permute.xlu0 %931  ;;  %v938_v8 = vpop.permute.xlu1 %937 }
 0x13f   : > { %v984_v9 = vsel %vm971_vm10, %v932_v7, %v934_v3  ;;  %v986_v10 = vsel %vm971_vm10, %v936_v4, %v938_v8 }
 0x140   : > { %1039 = vmatpush1.bf16.msra.mxu0 %v984_v9  ;;  %1080 = vmatpush1.bf16.msra.mxu1 %v986_v10 }
 0x141   : > { %1081 = vmatprep.subr.bf16.mxu1 %v1377_v26 }
 0x146   : > { %v942_v11 = vpop.permute.xlu0 %941 }
 0x14a   : > { %v944_v12 = vpop.permute.xlu1 %943 }
 0x14b   : > { %v988_v13 = vsel %vm971_vm10, %v942_v11, %v944_v12 }
 0x14c   : > { %1040 = vmatprep.subr.bf16.mxu0 %v988_v13 }
 0x14e   : > { %v946_v16 = vpop.permute.xlu1 %945  ;;  %v940_v17 = vpop.permute.xlu0 %939 }
 0x14f   : > { %v987_v18 = vsel %vm971_vm10, %v940_v17, %v942_v11  ;;  %v989_v19 = vsel %vm971_vm10, %v944_v12, %v946_v16 }
 0x150   : > { %1041 = vmatpush1.bf16.msra.mxu0 %v987_v18  ;;  %1082 = vmatpush1.bf16.msra.mxu1 %v989_v19 }
 0x151   : > { %1083 = vmatprep.subr.bf16.mxu1 %v1377_v26 }
 0x156   : > { %v950_v20 = vpop.permute.xlu0 %949 }
 0x15a   : > { %v952_v21 = vpop.permute.xlu1 %951  ;;  %v948_v22 = vpop.permute.xlu0 %947 }
 0x15b   : > { %v991_v23 = vsel %vm971_vm10, %v950_v20, %v952_v21  ;;  %v990_v24 = vsel %vm971_vm10, %v948_v22, %v950_v20 }
 0x15c   : > { %1042 = vmatprep.subr.bf16.mxu0 %v991_v23 }
 0x15d   : > { %1043 = vmatpush1.bf16.msra.mxu0 %v990_v24 }
 0x15e   : > { %v954_v25 = vpop.permute.xlu1 %953 }
 0x15f   : > { %v992_v27 = vsel %vm971_vm10, %v952_v21, %v954_v25 }
 0x160   : > { %1084 = vmatpush1.bf16.msra.mxu1 %v992_v27 }
 0x161   : > { %1085 = vmatprep.subr.bf16.mxu1 %v1377_v26 }
 0x166   : > { %v960_v28 = vpop.permute.xlu1 %959  ;;  %v958_v29 = vpop.permute.xlu0 %957 }
 0x167   : > { %v994_v30 = vsel %vm971_vm10, %v958_v29, %v960_v28 }
 0x168   : > { %1044 = vmatprep.subr.bf16.mxu0 %v994_v30 }
 0x16a   : > { %v962_v31 = vpop.permute.xlu1 %961  ;;  %v956_v32 = vpop.permute.xlu0 %955 }
 0x16b   : > { %v993_v33 = vsel %vm971_vm10, %v956_v32, %v958_v29  ;;  %v995_v34 = vsel %vm971_vm10, %v960_v28, %v962_v31 }
 0x16c   : > { %1045 = vmatpush1.bf16.msra.mxu0 %v993_v33  ;;  %1086 = vmatpush1.bf16.msra.mxu1 %v995_v34 }
 0x16d   : > { %1087 = vmatprep.subr.bf16.mxu1 %v1377_v26 }
 0x17d   : > { %v968_v36 = vpop.permute.xlu1 %967  ;;  %v966_v37 = vpop.permute.xlu0 %965 }
 0x17e   : > { %v997_v38 = vsel %vm971_vm10, %v966_v37, %v968_v36 }
 0x17f   : > { %1046 = vmatprep.subr.bf16.mxu0 %v997_v38 }
 0x181   : > { %v964_v39 = vpop.permute.xlu0 %963 }
 0x182   : > { %v996_v40 = vsel %vm971_vm10, %v964_v39, %v966_v37 }
 0x183   : > { %1047 = vmatpush1.bf16.msra.mxu0 %v996_v40 }
 0x185   : > { %v970_v42 = vpop.permute.xlu1 %969 }
 0x186   : > { %1063 = vmatmul.mubr.bf16.vlgmr.msra.gmra.mrb[0].mxu0 %v1321_v41  ;;  %v998_v43 = vsel %vm971_vm10, %v968_v36, %v970_v42 }
 0x187   : > { %1088 = vmatpush1.bf16.msra.mxu1 %v998_v43 }
 0x18a   : > { %1104 = vmatmul.mubr.bf16.vlgmr.msra.gmra.mrb[0].mxu1 %v1321_v41 }
 0x259   : > { %v1064_v15 = vpop.f32.mrb[0].mxu0 }
 0x25a   : > { %vm1111_vm12 = vcmp.gt.f32.partialorder %v1064_v15, 0.0  ;;  %v1114_v49 = vmul.f32 0.2, %v1064_v15  ;;  %v1066_v0 = vpop.f32.mrb[1].mxu0 }
 0x25b   : > { %vm1112_vm14 = vcmp.gt.f32.partialorder %v1066_v0, 0.0  ;;  %v1115_v51 = vmul.f32 0.2, %v1066_v0  ;;  %v1068_v52 = vpop.f32.mrb[2].mxu0 }
 0x25c   : > { %v1117_v53 = vsel %vm1111_vm12, %v1064_v15, %v1114_v49  ;;  %v1069_v54 = vpop.f32.mrb[3].mxu0 }
 0x25d   : > { %v1138_v55 = vsel %vm1135_vm13, %v1117_v53, 0.0  ;;  %v1118_v56 = vsel %vm1112_vm14, %v1066_v0, %v1115_v51  ;;  %v1105_v26 = vpop.f32.mrb[0].mxu1 }
 0x25e   : > { %v1139_v57 = vsel %vm1136_vm15, %v1118_v56, 0.0  ;;  %vm1113_vm0 = vcmp.gt.f32.partialorder %v1105_v26, 0.0  ;;  %v1116_v58 = vmul.f32 0.2, %v1105_v26  ;;  %v1107_v59 = vpop.f32.mrb[1].mxu1 }
 0x25f   : > { %v1333_v60 = vpack.c.bf16 %v1139_v57, %v1138_v55  ;;  %v1108_v61 = vpop.f32.mrb[2].mxu1 }
 0x260   : > { %v1119_v62 = vsel %vm1113_vm0, %v1105_v26, %v1116_v58  ;;  %v1109_v63 = vpop.f32.mrb[3].mxu1 }
 0x261   : > { %1154 = vst [vmem:[%s528_s10] sm:$0xff] %v1333_v60  ;;  %v1140_v1 = vsel %vm1137_vm1, %v1119_v62, 0.0 }
 0x262   : > { %v1334_v3 = vpack.c.bf16 %v1140_v1, %v1140_v1 }
 0x264   : > { %1155 = vst [vmem:[%s528_s10 + $0x8] sm:$0xf] %v1334_v3 }
 0x265 PF: > { %s18_s27 = sadd.s32 1, %s1367_s27  }
 0x266   : > { %p15_p7 = scmp.ge.s32.totalorder %s18_s27, 4  }
 0x268   :  { %17 = sbr.rel (!%p15_p7) target bundleno = 1 (0x1), region = 100 }

// kernel: unet_forward_nchw.25
= control target key start
LH: loop header
LB: loop body
LE: loop exit
PB: predicated region body
PF: predicated region fallthrough
CT: control target
= control target key end

     0   :  { %s355_s12 = smov 0   ;;  %s378_s0 = inlined_call_operand.vmem [shape: bf16[4,8], index: 0, kind: input, shape index: {}]   ;;  %s379_s1 = inlined_call_operand.vmem [shape: bf16[8,512], index: 1, kind: input, shape index: {}]   ;;  %s380_s2 = inlined_call_operand.vmem [shape: f32[4,256], index: 2, kind: input, shape index: {}]   ;;  %s381_s3 = inlined_call_operand.vmem [shape: f32[4,512], index: 3, kind: output, shape index: {}]  }
   0x1 LB: > { %s299_s13 = sadd.s32 4294967295, %s332_s12   ;;  %p303_p0 = scmp.ge.s32.totalorder %s332_s12, 1  ;;  %s332_s12 = sphi %s355_s12, %s13_s12  }
   0x2   : > { %p138_p1 = scmp.lt.s32.totalorder %s332_s12, 3 }
   0x4   : > { %p139_p2 = pnand %p303_p0, %p138_p1 }
   0x5   : > { %s304_s14 = sshll.u32 (!%p139_p2), %s299_s13, 1  ;;  %v334_v0 = vmov (!%p139_p2), 0   ;;  %vm190_vm0 = vcmask (!%p139_p2), 1043456   ;;  %v175_v5 = vld [vmem:[%s378_s0] sm:$0x3] (!%p139_p2)  ;;  %vm186_vm1 = vcmask (!%p139_p2), 64512  }
   0x6   : > { %142 = sbr.rel (%p139_p2) target bundleno = 241 (0xf1), region = 32  ;;  %p163_p3 = scmp.lt.s32.totalorder (!%p139_p2), %s304_s14, 3  ;;  %229 = vmatprep.mubr.bf16.mxu0 (!%p139_p2), %v334_v0  ;;  %v177_v6 = vld [vmem:[%s380_s2] sm:$0xff] (!%p139_p2) }
   0x7   : > { %v184_v7 = vcombine.high (!%p139_p2), %v177_v6, %v177_v6 }
   0xd   : > { %s383_s14 = smov (!%p163_p3, %s304_s14), 3 }
   0xe   : > { %s305_s15 = sshll.u32 %s383_s14, 2 }
   0xf   : > { %s166_s18 = scalar_lea.vmem %s379_s1, %s305_s15  ;;  %s172_s25 = scalar_lea.vmem %s381_s3, %s305_s15 }
  0x10   : > { %v176_v1 = vld [vmem:[%s166_s18] sm:$0xff] }
  0x11   : > { %v309_v2 = vcombine.high %v176_v1, %v176_v1  ;;  %v308_v3 = vcombine.low %v176_v1, %v176_v1 }
  0x13   : > { %310 = vmatprep.subr.msk.bf16.mxu0 %vm190_vm0, %v309_v2  ;;  %v192_v4 = vsel %vm190_vm0, %v308_v3, 0 }
  0x14   : > { %198 = vmatpush1.bf16.msra.mxu0 %v192_v4 }
  0x17   : > { %311 = vmatmul.mubr.msk.bf16.vlgmr.msra.gmra.mrb[0].mxu0 %vm186_vm1, %v175_v5 }
  0xea   : > { %v231_v8 = vpop.f32.mrb[0].mxu0 }
  0xeb   : > { %v232_v9 = vadd.f32 %v231_v8, %v177_v6  ;;  %v233_v10 = vpop.f32.mrb[1].mxu0 }
  0xec   : > { %v234_v11 = vadd.f32 %v233_v10, %v184_v7  ;;  %v235_v12 = vpop.f32.mrb[2].mxu0 }
  0xed   : > { %v236_v13 = vpop.f32.mrb[3].mxu0 }
  0xee   : > { %v240_v14 = vcombine.low %v232_v9, %v234_v11 }
  0xf0   : > { %242 = vst [vmem:[%s172_s25] sm:$0xff] %v240_v14 }
  0xf1 PF: > { %s13_s12 = sadd.s32 1, %s332_s12  }
  0xf2   : > { %p10_p4 = scmp.ge.s32.totalorder %s13_s12, 4  }
  0xf4   :  { %12 = sbr.rel (!%p10_p4) target bundleno = 1 (0x1), region = 62 }

</bundles_post_ra>
